<compile_context>
chip_gen: v7x
topology: tpu7x:2x2x1
jax: 0.10.0
libtpu: 0.0.40
codegen_flags: <defaults>
</compile_context>

<pallas_src>
import functools

import jax
import jax.numpy as jnp
from jax.experimental import pallas as pl
from jax.experimental.pallas import tpu as pltpu


# -----------------------------------------------------------------------------
# Kernel
# -----------------------------------------------------------------------------
def vae_forward_kernel(
    x_ref, eps_ref,
    w1_ref, b1_ref,
    wml_ref, bml_ref,      # fused [mu | logvar] head, each half padded to lat_pad lanes
    w2_ref, b2_ref,
    w3_ref, b3_ref,
    recon_ref, mulv_ref,   # mulv = packed (TB, 2*lat_pad) [mu | logvar]
    *, d_lat, lat_pad,
):
  x = x_ref[...]                                                   # (TB, D_in)

  # --- encoder: h = relu(x @ W1 + b1) ---------------------------------------
  h = jnp.dot(x, w1_ref[...], preferred_element_type=jnp.float32) + b1_ref[...]
  h = jnp.maximum(h, 0.0)                                          # (TB, D_mid)

  # --- fused mu/logvar head: one MXU pass, one lane-dense (TB, 128) store ---
  ml = jnp.dot(h, wml_ref[...], preferred_element_type=jnp.float32) + bml_ref[...]
  mulv_ref[...] = ml                                               # (TB, 2*lat_pad)

  # --- reparameterize at the true latent width (no padded activation math) --
  mu = ml[:, :d_lat]                                               # (TB, d_lat)
  logvar = ml[:, lat_pad:lat_pad + d_lat]                          # (TB, d_lat)
  z = mu + eps_ref[...] * jnp.exp(0.5 * logvar)                    # (TB, d_lat)

  # --- decoder: sigmoid(relu(z @ W2 + b2) @ W3 + b3) -------------------------
  o2 = jnp.dot(z, w2_ref[...], preferred_element_type=jnp.float32) + b2_ref[...]
  o2 = jnp.maximum(o2, 0.0)                                        # (TB, D_mid)
  logits = jnp.dot(o2, w3_ref[...], preferred_element_type=jnp.float32) + b3_ref[...]
  recon_ref[...] = jax.nn.sigmoid(logits)                          # (TB, D_out)


# -----------------------------------------------------------------------------
# Helpers
# -----------------------------------------------------------------------------
def _round_up(n, m):
  return ((n + m - 1) // m) * m


def _pad_axis(a, axis, target):
  pads = [(0, 0)] * a.ndim
  pads[axis] = (0, target - a.shape[axis])
  return jnp.pad(a, pads)


def _num_tensorcores():
  """2 TensorCores per chip on v7x-class TPUs, else 1 (v5e/v6e)."""
  try:
    kind = jax.devices()[0].device_kind.lower().replace(" ", "")
    if "v7" in kind or "7x" in kind:
      return 2
  except Exception:
    pass
  return 1


def _choose_tile_b(batch, n_cores):
  """One big tile on 1-TC chips; >=2 parallel tiles on 2-TC chips."""
  if batch <= 8:
    return batch                              # full-array block is always legal
  per_core = -(-batch // n_cores)             # cdiv
  cap = 256 if n_cores == 1 else 128          # v5e/v6e: single step; v7x: split
  tile = min(cap, _round_up(per_core, 8))
  if tile >= batch:
    return batch                              # single full-array tile
  return tile                                 # multiple of 8; last tile ragged


# -----------------------------------------------------------------------------
# One-time parameter preparation (NOT in the per-forward hot path)
# -----------------------------------------------------------------------------
def prepare_params(params, dtype=jnp.float32):
  """Lay out PyTorch-convention (out,in) weights for the kernel, once."""
  d_lat = params["mu_w"].shape[0]
  lat_pad = _round_up(max(d_lat, 1), 64)      # mu/logvar each padded to 64 lanes

  w1 = jnp.asarray(params["fc1_w"], dtype).T                          # (d_in, d_mid)
  wmu = _pad_axis(jnp.asarray(params["mu_w"], dtype).T, 1, lat_pad)   # (d_mid, lat_pad)
  wlv = _pad_axis(jnp.asarray(params["logvar_w"], dtype).T, 1, lat_pad)
  wml = jnp.concatenate([wmu, wlv], axis=1)                           # (d_mid, 2*lat_pad)
  w2 = jnp.asarray(params["fc2_w"], dtype).T                          # (d_lat, d_mid), unpadded
  w3 = jnp.asarray(params["fc3_w"], dtype).T                          # (d_mid, d_out)

  b1 = jnp.asarray(params["fc1_b"], dtype)[None, :]
  bml = jnp.concatenate([
      _pad_axis(jnp.asarray(params["mu_b"], dtype), 0, lat_pad),
      _pad_axis(jnp.asarray(params["logvar_b"], dtype), 0, lat_pad),
  ])[None, :]                                                         # (1, 2*lat_pad)
  b2 = jnp.asarray(params["fc2_b"], dtype)[None, :]
  b3 = jnp.asarray(params["fc3_b"], dtype)[None, :]

  return dict(w1=w1, b1=b1, wml=wml, bml=bml, w2=w2, b2=b2, w3=w3, b3=b3,
              d_lat=d_lat, lat_pad=lat_pad)


# -----------------------------------------------------------------------------
# Forward wrapper
# -----------------------------------------------------------------------------
def vae_forward(x_img, eps, prepped):
  """VAE forward pass with one fused Pallas kernel.

  Args:
    x_img: (B, C, H, W) float32 images, C*H*W == input_size.
    eps:   (B, latent_size) float32 standard-normal noise (replaces randn_like).
    prepped: output of prepare_params() (laid-out weights, computed once).
  Returns:
    (reconstruction (B, output_size), mu (B, latent), logvar (B, latent))
  """
  B = x_img.shape[0]
  x = x_img.reshape(B, -1).astype(jnp.float32)        # X.view(-1, input_size)
  eps = eps.astype(jnp.float32)

  d_in = x.shape[1]
  d_mid = prepped["w1"].shape[1]
  d_out = prepped["w3"].shape[1]
  d_lat = prepped["d_lat"]
  lat_pad = prepped["lat_pad"]
  assert prepped["w1"].shape[0] == d_in
  assert eps.shape == (B, d_lat)

  n_cores = _num_tensorcores()
  tile_b = _choose_tile_b(B, n_cores)
  n_steps = pl.cdiv(B, tile_b)

  kernel = functools.partial(vae_forward_kernel, d_lat=d_lat, lat_pad=lat_pad)

  def batch_map(i):
    return (i, 0)

  def const_map(i):
    return (0, 0)

  weights = (prepped["w1"], prepped["b1"], prepped["wml"], prepped["bml"],
             prepped["w2"], prepped["b2"], prepped["w3"], prepped["b3"])

  out_shape = (
      jax.ShapeDtypeStruct((B, d_out), jnp.float32),        # reconstruction
      jax.ShapeDtypeStruct((B, 2 * lat_pad), jnp.float32),  # packed [mu | logvar]
  )

  def run(weight_mode):
    def wspec(shape):
      if weight_mode is None:
        return pl.BlockSpec(shape, const_map)
      return pl.BlockSpec(shape, const_map, pipeline_mode=weight_mode)

    in_specs = [
        pl.BlockSpec((tile_b, d_in), batch_map),            # x
        pl.BlockSpec((tile_b, d_lat), batch_map),           # eps (true latent width)
        wspec((d_in, d_mid)),                               # w1
        wspec((1, d_mid)),                                  # b1
        wspec((d_mid, 2 * lat_pad)),                        # wml
        wspec((1, 2 * lat_pad)),                            # bml
        wspec((d_lat, d_mid)),                              # w2 (unpadded)
        wspec((1, d_mid)),                                  # b2
        wspec((d_mid, d_out)),                              # w3
        wspec((1, d_out)),                                  # b3
    ]
    out_specs = (
        pl.BlockSpec((tile_b, d_out), batch_map),
        pl.BlockSpec((tile_b, 2 * lat_pad), batch_map),
    )
    return pl.pallas_call(
        kernel,
        out_shape=out_shape,
        grid=(n_steps,),
        in_specs=in_specs,
        out_specs=out_specs,
        compiler_params=pltpu.CompilerParams(
            dimension_semantics=("parallel",)),   # shards batch tiles across TCs on v7x
    )(x, eps, *weights)

  # Grid-invariant weights want single buffering; fall back to default double
  # buffering if the installed JAX rejects pipeline_mode on this path.
  try:
    recon, mulv = run(pl.Buffered(1))
  except Exception:
    recon, mulv = run(None)

  # Keep these slice offsets in sync with the (lat_pad | lat_pad) packing above.
  mu = mulv[:, :d_lat]
  logvar = mulv[:, lat_pad:lat_pad + d_lat]
  return recon, mu, logvar


# -----------------------------------------------------------------------------
# Parameter init (deterministic, synthetic) + pure-JAX reference
# -----------------------------------------------------------------------------
def init_params(key, input_size, mid_layer_size, latent_size, output_size):
  keys = jax.random.split(key, 10)

  def linear(kw, kb, fan_in, fan_out):
    # PyTorch nn.Linear default init: U(-1/sqrt(fan_in), 1/sqrt(fan_in)).
    bound = 1.0 / jnp.sqrt(fan_in)
    w = jax.random.uniform(kw, (fan_out, fan_in), jnp.float32, -bound, bound)
    b = jax.random.uniform(kb, (fan_out,), jnp.float32, -bound, bound)
    return w, b

  p = {}
  p["fc1_w"], p["fc1_b"] = linear(keys[0], keys[1], input_size, mid_layer_size)
  p["mu_w"], p["mu_b"] = linear(keys[2], keys[3], mid_layer_size, latent_size)
  p["logvar_w"], p["logvar_b"] = linear(keys[4], keys[5], mid_layer_size, latent_size)
  p["fc2_w"], p["fc2_b"] = linear(keys[6], keys[7], latent_size, mid_layer_size)
  p["fc3_w"], p["fc3_b"] = linear(keys[8], keys[9], mid_layer_size, output_size)
  return p


def vae_forward_ref(x_img, eps, params):
  x = x_img.reshape(x_img.shape[0], -1)
  h = jax.nn.relu(x @ params["fc1_w"].T + params["fc1_b"])
  mu = h @ params["mu_w"].T + params["mu_b"]
  logvar = h @ params["logvar_w"].T + params["logvar_b"]
  z = mu + eps * jnp.exp(0.5 * logvar)
  o2 = jax.nn.relu(z @ params["fc2_w"].T + params["fc2_b"])
  recon = jax.nn.sigmoid(o2 @ params["fc3_w"].T + params["fc3_b"])
  return recon, mu, logvar


if __name__ == "__main__":
  # Small shapes consistent with the module: input_size = H*W, latent = 30
  # (module default, exercises the non-128-aligned latent path).  B=200 is not a
  # tile multiple on v7x, exercising the ragged last-tile path there.
  B, H, W = 200, 16, 16
  INPUT_SIZE = H * W        # 256
  MID = 128
  LATENT = 30
  OUTPUT_SIZE = INPUT_SIZE  # 256

  key = jax.random.PRNGKey(0)
  k_params, k_x, k_eps = jax.random.split(key, 3)

  params = init_params(k_params, INPUT_SIZE, MID, LATENT, OUTPUT_SIZE)
  prepped = prepare_params(params)   # once per parameter update, NOT per forward

  # NCHW image input, like an MNIST-style batch fed to the PyTorch module.
  x_img = jax.random.uniform(k_x, (B, 1, H, W), jnp.float32)
  # Deterministic epsilon standing in for torch.randn_like(std).
  eps = jax.random.normal(k_eps, (B, LATENT), jnp.float32)

  recon, mu, logvar = jax.block_until_ready(vae_forward(x_img, eps, prepped))

  recon_ref, mu_ref, logvar_ref = vae_forward_ref(x_img, eps, params)
  assert recon.shape == (B, OUTPUT_SIZE)
  assert mu.shape == (B, LATENT) and logvar.shape == (B, LATENT)
  assert jnp.allclose(recon, recon_ref, atol=2e-5, rtol=2e-5)
  assert jnp.allclose(mu, mu_ref, atol=2e-5, rtol=2e-5)
  assert jnp.allclose(logvar, logvar_ref, atol=2e-5, rtol=2e-5)

  print("KERNEL_OK")
</pallas_src>

<mosaic_0001>
module attributes {stable_mosaic.version = 11 : i64} {
  func.func @vae_forward_kernel(%arg0: i32, %arg1: memref<200x256xf32, #tpu.memory_space<vmem>>, %arg2: memref<200x30xf32, #tpu.memory_space<vmem>>, %arg3: memref<256x128xf32, #tpu.memory_space<vmem>>, %arg4: memref<1x128xf32, #tpu.memory_space<vmem>>, %arg5: memref<128x128xf32, #tpu.memory_space<vmem>>, %arg6: memref<1x128xf32, #tpu.memory_space<vmem>>, %arg7: memref<30x128xf32, #tpu.memory_space<vmem>>, %arg8: memref<1x128xf32, #tpu.memory_space<vmem>>, %arg9: memref<128x256xf32, #tpu.memory_space<vmem>>, %arg10: memref<1x256xf32, #tpu.memory_space<vmem>>, %arg11: memref<200x256xf32, #tpu.memory_space<vmem>>, %arg12: memref<200x128xf32, #tpu.memory_space<vmem>>) attributes {dimension_semantics = [#tpu.dimension_semantics<parallel>], iteration_bounds = array<i64: 1>, scalar_prefetch = 0 : i64, scratch_operands = 0 : i64, tpu.core_type = #tpu.core_type<tc>, window_params = [{transform_indices = @transform_0, window_bounds = array<i64: 200, 256>}, {transform_indices = @transform_1, window_bounds = array<i64: 200, 30>}, {pipeline_mode = #tpu.pipeline_mode<synchronous>, transform_indices = @transform_2, window_bounds = array<i64: 256, 128>}, {pipeline_mode = #tpu.pipeline_mode<synchronous>, transform_indices = @transform_3, window_bounds = array<i64: 1, 128>}, {pipeline_mode = #tpu.pipeline_mode<synchronous>, transform_indices = @transform_4, window_bounds = array<i64: 128, 128>}, {pipeline_mode = #tpu.pipeline_mode<synchronous>, transform_indices = @transform_5, window_bounds = array<i64: 1, 128>}, {pipeline_mode = #tpu.pipeline_mode<synchronous>, transform_indices = @transform_6, window_bounds = array<i64: 30, 128>}, {pipeline_mode = #tpu.pipeline_mode<synchronous>, transform_indices = @transform_7, window_bounds = array<i64: 1, 128>}, {pipeline_mode = #tpu.pipeline_mode<synchronous>, transform_indices = @transform_8, window_bounds = array<i64: 128, 256>}, {pipeline_mode = #tpu.pipeline_mode<synchronous>, transform_indices = @transform_9, window_bounds = array<i64: 1, 256>}, {transform_indices = @transform_10, window_bounds = array<i64: 200, 256>}, {transform_indices = @transform_11, window_bounds = array<i64: 200, 128>}]} {
    %c0 = arith.constant 0 : index
    %c0_0 = arith.constant 0 : index
    %0 = vector.load %arg1[%c0, %c0_0] : memref<200x256xf32, #tpu.memory_space<vmem>>, vector<200x256xf32>
    %c0_1 = arith.constant 0 : index
    %c0_2 = arith.constant 0 : index
    %1 = vector.load %arg3[%c0_1, %c0_2] : memref<256x128xf32, #tpu.memory_space<vmem>>, vector<256x128xf32>
    %cst = arith.constant dense<0.000000e+00> : vector<200x128xf32>
    %2 = tpu.matmul %0, %1, %cst {dimension_numbers = #tpu.dot_dimension_numbers<[1], [0], [0], [1], [0, 0, 1, 1], [], []>} : vector<200x256xf32>, vector<256x128xf32>, vector<200x128xf32> -> vector<200x128xf32>
    %c0_3 = arith.constant 0 : index
    %c0_4 = arith.constant 0 : index
    %3 = vector.load %arg4[%c0_3, %c0_4] : memref<1x128xf32, #tpu.memory_space<vmem>>, vector<1x128xf32>
    %4 = vector.broadcast %3 : vector<1x128xf32> to vector<200x128xf32>
    %5 = arith.addf %2, %4 : vector<200x128xf32>
    %cst_5 = arith.constant 0.000000e+00 : f32
    %6 = vector.broadcast %cst_5 : f32 to vector<200x128xf32>
    %7 = arith.maximumf %5, %6 : vector<200x128xf32>
    %c0_6 = arith.constant 0 : index
    %c0_7 = arith.constant 0 : index
    %8 = vector.load %arg5[%c0_6, %c0_7] : memref<128x128xf32, #tpu.memory_space<vmem>>, vector<128x128xf32>
    %cst_8 = arith.constant dense<0.000000e+00> : vector<200x128xf32>
    %9 = tpu.matmul %7, %8, %cst_8 {dimension_numbers = #tpu.dot_dimension_numbers<[1], [0], [0], [1], [0, 0, 1, 1], [], []>} : vector<200x128xf32>, vector<128x128xf32>, vector<200x128xf32> -> vector<200x128xf32>
    %c0_9 = arith.constant 0 : index
    %c0_10 = arith.constant 0 : index
    %10 = vector.load %arg6[%c0_9, %c0_10] : memref<1x128xf32, #tpu.memory_space<vmem>>, vector<1x128xf32>
    %11 = vector.broadcast %10 : vector<1x128xf32> to vector<200x128xf32>
    %12 = arith.addf %9, %11 : vector<200x128xf32>
    %c0_11 = arith.constant 0 : index
    %c0_12 = arith.constant 0 : index
    %13 = vector.load %arg12[%c0_11, %c0_12] : memref<200x128xf32, #tpu.memory_space<vmem>>, vector<200x128xf32>
    tpu.vector_store %arg12[%c0_11, %c0_12], %12 {strides = array<i32>} : memref<200x128xf32, #tpu.memory_space<vmem>>, vector<200x128xf32>,
    %14 = vector.extract_strided_slice %12 {offsets = [0, 0], sizes = [200, 30], strides = [1, 1]} : vector<200x128xf32> to vector<200x30xf32>
    %15 = vector.extract_strided_slice %12 {offsets = [0, 64], sizes = [200, 30], strides = [1, 1]} : vector<200x128xf32> to vector<200x30xf32>
    %c0_13 = arith.constant 0 : index
    %c0_14 = arith.constant 0 : index
    %16 = vector.load %arg2[%c0_13, %c0_14] : memref<200x30xf32, #tpu.memory_space<vmem>>, vector<200x30xf32>
    %cst_15 = arith.constant 5.000000e-01 : f32
    %17 = vector.broadcast %cst_15 : f32 to vector<200x30xf32>
    %18 = arith.mulf %17, %15 : vector<200x30xf32>
    %19 = math.exp %18 : vector<200x30xf32>
    %20 = arith.mulf %16, %19 : vector<200x30xf32>
    %21 = arith.addf %14, %20 : vector<200x30xf32>
    %c0_16 = arith.constant 0 : index
    %c0_17 = arith.constant 0 : index
    %22 = vector.load %arg7[%c0_16, %c0_17] : memref<30x128xf32, #tpu.memory_space<vmem>>, vector<30x128xf32>
    %cst_18 = arith.constant dense<0.000000e+00> : vector<200x128xf32>
    %23 = tpu.matmul %21, %22, %cst_18 {dimension_numbers = #tpu.dot_dimension_numbers<[1], [0], [0], [1], [0, 0, 1, 1], [], []>} : vector<200x30xf32>, vector<30x128xf32>, vector<200x128xf32> -> vector<200x128xf32>
    %c0_19 = arith.constant 0 : index
    %c0_20 = arith.constant 0 : index
    %24 = vector.load %arg8[%c0_19, %c0_20] : memref<1x128xf32, #tpu.memory_space<vmem>>, vector<1x128xf32>
    %25 = vector.broadcast %24 : vector<1x128xf32> to vector<200x128xf32>
    %26 = arith.addf %23, %25 : vector<200x128xf32>
    %cst_21 = arith.constant 0.000000e+00 : f32
    %27 = vector.broadcast %cst_21 : f32 to vector<200x128xf32>
    %28 = arith.maximumf %26, %27 : vector<200x128xf32>
    %c0_22 = arith.constant 0 : index
    %c0_23 = arith.constant 0 : index
    %29 = vector.load %arg9[%c0_22, %c0_23] : memref<128x256xf32, #tpu.memory_space<vmem>>, vector<128x256xf32>
    %cst_24 = arith.constant dense<0.000000e+00> : vector<200x256xf32>
    %30 = tpu.matmul %28, %29, %cst_24 {dimension_numbers = #tpu.dot_dimension_numbers<[1], [0], [0], [1], [0, 0, 1, 1], [], []>} : vector<200x128xf32>, vector<128x256xf32>, vector<200x256xf32> -> vector<200x256xf32>
    %c0_25 = arith.constant 0 : index
    %c0_26 = arith.constant 0 : index
    %31 = vector.load %arg10[%c0_25, %c0_26] : memref<1x256xf32, #tpu.memory_space<vmem>>, vector<1x256xf32>
    %32 = vector.broadcast %31 : vector<1x256xf32> to vector<200x256xf32>
    %33 = arith.addf %30, %32 : vector<200x256xf32>
    %34 = arith.negf %33 : vector<200x256xf32>
    %35 = math.exp %34 : vector<200x256xf32>
    %cst_27 = arith.constant 1.000000e+00 : f32
    %36 = vector.broadcast %cst_27 : f32 to vector<200x256xf32>
    %37 = arith.addf %36, %35 : vector<200x256xf32>
    %38 = arith.divf %36, %37 : vector<200x256xf32>
    %c0_28 = arith.constant 0 : index
    %c0_29 = arith.constant 0 : index
    %39 = vector.load %arg11[%c0_28, %c0_29] : memref<200x256xf32, #tpu.memory_space<vmem>>, vector<200x256xf32>
    tpu.vector_store %arg11[%c0_28, %c0_29], %38 {strides = array<i32>} : memref<200x256xf32, #tpu.memory_space<vmem>>, vector<200x256xf32>,
    return
  }
  func.func @transform_0(%arg0: i32) -> (i32, i32) {
    %c0_i32 = arith.constant 0 : i32
    %c0_i32_0 = arith.constant 0 : i32
    return %arg0, %c0_i32 : i32, i32
  }
  func.func @transform_1(%arg0: i32) -> (i32, i32) {
    %c0_i32 = arith.constant 0 : i32
    %c0_i32_0 = arith.constant 0 : i32
    return %arg0, %c0_i32 : i32, i32
  }
  func.func @transform_2(%arg0: i32) -> (i32, i32) {
    %c0_i32 = arith.constant 0 : i32
    %c0_i32_0 = arith.constant 0 : i32
    %c0_i32_1 = arith.constant 0 : i32
    return %c0_i32, %c0_i32_0 : i32, i32
  }
  func.func @transform_3(%arg0: i32) -> (i32, i32) {
    %c0_i32 = arith.constant 0 : i32
    %c0_i32_0 = arith.constant 0 : i32
    %c0_i32_1 = arith.constant 0 : i32
    return %c0_i32, %c0_i32_0 : i32, i32
  }
  func.func @transform_4(%arg0: i32) -> (i32, i32) {
    %c0_i32 = arith.constant 0 : i32
    %c0_i32_0 = arith.constant 0 : i32
    %c0_i32_1 = arith.constant 0 : i32
    return %c0_i32, %c0_i32_0 : i32, i32
  }
  func.func @transform_5(%arg0: i32) -> (i32, i32) {
    %c0_i32 = arith.constant 0 : i32
    %c0_i32_0 = arith.constant 0 : i32
    %c0_i32_1 = arith.constant 0 : i32
    return %c0_i32, %c0_i32_0 : i32, i32
  }
  func.func @transform_6(%arg0: i32) -> (i32, i32) {
    %c0_i32 = arith.constant 0 : i32
    %c0_i32_0 = arith.constant 0 : i32
    %c0_i32_1 = arith.constant 0 : i32
    return %c0_i32, %c0_i32_0 : i32, i32
  }
  func.func @transform_7(%arg0: i32) -> (i32, i32) {
    %c0_i32 = arith.constant 0 : i32
    %c0_i32_0 = arith.constant 0 : i32
    %c0_i32_1 = arith.constant 0 : i32
    return %c0_i32, %c0_i32_0 : i32, i32
  }
  func.func @transform_8(%arg0: i32) -> (i32, i32) {
    %c0_i32 = arith.constant 0 : i32
    %c0_i32_0 = arith.constant 0 : i32
    %c0_i32_1 = arith.constant 0 : i32
    return %c0_i32, %c0_i32_0 : i32, i32
  }
  func.func @transform_9(%arg0: i32) -> (i32, i32) {
    %c0_i32 = arith.constant 0 : i32
    %c0_i32_0 = arith.constant 0 : i32
    %c0_i32_1 = arith.constant 0 : i32
    return %c0_i32, %c0_i32_0 : i32, i32
  }
  func.func @transform_10(%arg0: i32) -> (i32, i32) {
    %c0_i32 = arith.constant 0 : i32
    %c0_i32_0 = arith.constant 0 : i32
    return %arg0, %c0_i32 : i32, i32
  }
  func.func @transform_11(%arg0: i32) -> (i32, i32) {
    %c0_i32 = arith.constant 0 : i32
    %c0_i32_0 = arith.constant 0 : i32
    return %arg0, %c0_i32 : i32, i32
  }
}

module attributes {stable_mosaic.version = 11 : i64} {
  func.func @vae_forward_kernel(%arg0: i32, %arg1: memref<200x256xf32, #tpu.memory_space<vmem>>, %arg2: memref<200x30xf32, #tpu.memory_space<vmem>>, %arg3: memref<256x128xf32, #tpu.memory_space<vmem>>, %arg4: memref<1x128xf32, #tpu.memory_space<vmem>>, %arg5: memref<128x128xf32, #tpu.memory_space<vmem>>, %arg6: memref<1x128xf32, #tpu.memory_space<vmem>>, %arg7: memref<30x128xf32, #tpu.memory_space<vmem>>, %arg8: memref<1x128xf32, #tpu.memory_space<vmem>>, %arg9: memref<128x256xf32, #tpu.memory_space<vmem>>, %arg10: memref<1x256xf32, #tpu.memory_space<vmem>>, %arg11: memref<200x256xf32, #tpu.memory_space<vmem>>, %arg12: memref<200x128xf32, #tpu.memory_space<vmem>>) attributes {dimension_semantics = [#tpu.dimension_semantics<parallel>], iteration_bounds = array<i64: 1>, scalar_prefetch = 0 : i64, scratch_operands = 0 : i64, tpu.core_type = #tpu.core_type<tc>, window_params = [{transform_indices = @transform_0, window_bounds = array<i64: 200, 256>}, {transform_indices = @transform_1, window_bounds = array<i64: 200, 30>}, {pipeline_mode = #tpu.pipeline_mode<synchronous>, transform_indices = @transform_2, window_bounds = array<i64: 256, 128>}, {pipeline_mode = #tpu.pipeline_mode<synchronous>, transform_indices = @transform_3, window_bounds = array<i64: 1, 128>}, {pipeline_mode = #tpu.pipeline_mode<synchronous>, transform_indices = @transform_4, window_bounds = array<i64: 128, 128>}, {pipeline_mode = #tpu.pipeline_mode<synchronous>, transform_indices = @transform_5, window_bounds = array<i64: 1, 128>}, {pipeline_mode = #tpu.pipeline_mode<synchronous>, transform_indices = @transform_6, window_bounds = array<i64: 30, 128>}, {pipeline_mode = #tpu.pipeline_mode<synchronous>, transform_indices = @transform_7, window_bounds = array<i64: 1, 128>}, {pipeline_mode = #tpu.pipeline_mode<synchronous>, transform_indices = @transform_8, window_bounds = array<i64: 128, 256>}, {pipeline_mode = #tpu.pipeline_mode<synchronous>, transform_indices = @transform_9, window_bounds = array<i64: 1, 256>}, {transform_indices = @transform_10, window_bounds = array<i64: 200, 256>}, {transform_indices = @transform_11, window_bounds = array<i64: 200, 128>}]} {
    %c0 = arith.constant 0 : index
    %c0_0 = arith.constant 0 : index
    %0 = vector.load %arg1[%c0, %c0_0] : memref<200x256xf32, #tpu.memory_space<vmem>>, vector<200x256xf32>
    %c0_1 = arith.constant 0 : index
    %c0_2 = arith.constant 0 : index
    %1 = vector.load %arg3[%c0_1, %c0_2] : memref<256x128xf32, #tpu.memory_space<vmem>>, vector<256x128xf32>
    %cst = arith.constant dense<0.000000e+00> : vector<200x128xf32>
    %2 = tpu.matmul %0, %1, %cst {dimension_numbers = #tpu.dot_dimension_numbers<[1], [0], [0], [1], [0, 0, 1, 1], [], []>} : vector<200x256xf32>, vector<256x128xf32>, vector<200x128xf32> -> vector<200x128xf32>
    %c0_3 = arith.constant 0 : index
    %c0_4 = arith.constant 0 : index
    %3 = vector.load %arg4[%c0_3, %c0_4] : memref<1x128xf32, #tpu.memory_space<vmem>>, vector<1x128xf32>
    %4 = vector.broadcast %3 : vector<1x128xf32> to vector<200x128xf32>
    %5 = arith.addf %2, %4 : vector<200x128xf32>
    %cst_5 = arith.constant 0.000000e+00 : f32
    %6 = vector.broadcast %cst_5 : f32 to vector<200x128xf32>
    %7 = arith.maximumf %5, %6 : vector<200x128xf32>
    %c0_6 = arith.constant 0 : index
    %c0_7 = arith.constant 0 : index
    %8 = vector.load %arg5[%c0_6, %c0_7] : memref<128x128xf32, #tpu.memory_space<vmem>>, vector<128x128xf32>
    %cst_8 = arith.constant dense<0.000000e+00> : vector<200x128xf32>
    %9 = tpu.matmul %7, %8, %cst_8 {dimension_numbers = #tpu.dot_dimension_numbers<[1], [0], [0], [1], [0, 0, 1, 1], [], []>} : vector<200x128xf32>, vector<128x128xf32>, vector<200x128xf32> -> vector<200x128xf32>
    %c0_9 = arith.constant 0 : index
    %c0_10 = arith.constant 0 : index
    %10 = vector.load %arg6[%c0_9, %c0_10] : memref<1x128xf32, #tpu.memory_space<vmem>>, vector<1x128xf32>
    %11 = vector.broadcast %10 : vector<1x128xf32> to vector<200x128xf32>
    %12 = arith.addf %9, %11 : vector<200x128xf32>
    %c0_11 = arith.constant 0 : index
    %c0_12 = arith.constant 0 : index
    %13 = vector.load %arg12[%c0_11, %c0_12] : memref<200x128xf32, #tpu.memory_space<vmem>>, vector<200x128xf32>
    tpu.vector_store %arg12[%c0_11, %c0_12], %12 {strides = array<i32>} : memref<200x128xf32, #tpu.memory_space<vmem>>, vector<200x128xf32>,
    %14 = vector.extract_strided_slice %12 {offsets = [0, 0], sizes = [200, 30], strides = [1, 1]} : vector<200x128xf32> to vector<200x30xf32>
    %15 = vector.extract_strided_slice %12 {offsets = [0, 64], sizes = [200, 30], strides = [1, 1]} : vector<200x128xf32> to vector<200x30xf32>
    %c0_13 = arith.constant 0 : index
    %c0_14 = arith.constant 0 : index
    %16 = vector.load %arg2[%c0_13, %c0_14] : memref<200x30xf32, #tpu.memory_space<vmem>>, vector<200x30xf32>
    %cst_15 = arith.constant 5.000000e-01 : f32
    %17 = vector.broadcast %cst_15 : f32 to vector<200x30xf32>
    %18 = arith.mulf %17, %15 : vector<200x30xf32>
    %19 = math.exp %18 : vector<200x30xf32>
    %20 = arith.mulf %16, %19 : vector<200x30xf32>
    %21 = arith.addf %14, %20 : vector<200x30xf32>
    %c0_16 = arith.constant 0 : index
    %c0_17 = arith.constant 0 : index
    %22 = vector.load %arg7[%c0_16, %c0_17] : memref<30x128xf32, #tpu.memory_space<vmem>>, vector<30x128xf32>
    %cst_18 = arith.constant dense<0.000000e+00> : vector<200x128xf32>
    %23 = tpu.matmul %21, %22, %cst_18 {dimension_numbers = #tpu.dot_dimension_numbers<[1], [0], [0], [1], [0, 0, 1, 1], [], []>} : vector<200x30xf32>, vector<30x128xf32>, vector<200x128xf32> -> vector<200x128xf32>
    %c0_19 = arith.constant 0 : index
    %c0_20 = arith.constant 0 : index
    %24 = vector.load %arg8[%c0_19, %c0_20] : memref<1x128xf32, #tpu.memory_space<vmem>>, vector<1x128xf32>
    %25 = vector.broadcast %24 : vector<1x128xf32> to vector<200x128xf32>
    %26 = arith.addf %23, %25 : vector<200x128xf32>
    %cst_21 = arith.constant 0.000000e+00 : f32
    %27 = vector.broadcast %cst_21 : f32 to vector<200x128xf32>
    %28 = arith.maximumf %26, %27 : vector<200x128xf32>
    %c0_22 = arith.constant 0 : index
    %c0_23 = arith.constant 0 : index
    %29 = vector.load %arg9[%c0_22, %c0_23] : memref<128x256xf32, #tpu.memory_space<vmem>>, vector<128x256xf32>
    %cst_24 = arith.constant dense<0.000000e+00> : vector<200x256xf32>
    %30 = tpu.matmul %28, %29, %cst_24 {dimension_numbers = #tpu.dot_dimension_numbers<[1], [0], [0], [1], [0, 0, 1, 1], [], []>} : vector<200x128xf32>, vector<128x256xf32>, vector<200x256xf32> -> vector<200x256xf32>
    %c0_25 = arith.constant 0 : index
    %c0_26 = arith.constant 0 : index
    %31 = vector.load %arg10[%c0_25, %c0_26] : memref<1x256xf32, #tpu.memory_space<vmem>>, vector<1x256xf32>
    %32 = vector.broadcast %31 : vector<1x256xf32> to vector<200x256xf32>
    %33 = arith.addf %30, %32 : vector<200x256xf32>
    %34 = arith.negf %33 : vector<200x256xf32>
    %35 = math.exp %34 : vector<200x256xf32>
    %cst_27 = arith.constant 1.000000e+00 : f32
    %36 = vector.broadcast %cst_27 : f32 to vector<200x256xf32>
    %37 = arith.addf %36, %35 : vector<200x256xf32>
    %38 = arith.divf %36, %37 : vector<200x256xf32>
    %c0_28 = arith.constant 0 : index
    %c0_29 = arith.constant 0 : index
    %39 = vector.load %arg11[%c0_28, %c0_29] : memref<200x256xf32, #tpu.memory_space<vmem>>, vector<200x256xf32>
    tpu.vector_store %arg11[%c0_28, %c0_29], %38 {strides = array<i32>} : memref<200x256xf32, #tpu.memory_space<vmem>>, vector<200x256xf32>,
    return
  }
  func.func @transform_0(%arg0: i32) -> (i32, i32) {
    %c0_i32 = arith.constant 0 : i32
    %c0_i32_0 = arith.constant 0 : i32
    return %arg0, %c0_i32 : i32, i32
  }
  func.func @transform_1(%arg0: i32) -> (i32, i32) {
    %c0_i32 = arith.constant 0 : i32
    %c0_i32_0 = arith.constant 0 : i32
    return %arg0, %c0_i32 : i32, i32
  }
  func.func @transform_2(%arg0: i32) -> (i32, i32) {
    %c0_i32 = arith.constant 0 : i32
    %c0_i32_0 = arith.constant 0 : i32
    %c0_i32_1 = arith.constant 0 : i32
    return %c0_i32, %c0_i32_0 : i32, i32
  }
  func.func @transform_3(%arg0: i32) -> (i32, i32) {
    %c0_i32 = arith.constant 0 : i32
    %c0_i32_0 = arith.constant 0 : i32
    %c0_i32_1 = arith.constant 0 : i32
    return %c0_i32, %c0_i32_0 : i32, i32
  }
  func.func @transform_4(%arg0: i32) -> (i32, i32) {
    %c0_i32 = arith.constant 0 : i32
    %c0_i32_0 = arith.constant 0 : i32
    %c0_i32_1 = arith.constant 0 : i32
    return %c0_i32, %c0_i32_0 : i32, i32
  }
  func.func @transform_5(%arg0: i32) -> (i32, i32) {
    %c0_i32 = arith.constant 0 : i32
    %c0_i32_0 = arith.constant 0 : i32
    %c0_i32_1 = arith.constant 0 : i32
    return %c0_i32, %c0_i32_0 : i32, i32
  }
  func.func @transform_6(%arg0: i32) -> (i32, i32) {
    %c0_i32 = arith.constant 0 : i32
    %c0_i32_0 = arith.constant 0 : i32
    %c0_i32_1 = arith.constant 0 : i32
    return %c0_i32, %c0_i32_0 : i32, i32
  }
  func.func @transform_7(%arg0: i32) -> (i32, i32) {
    %c0_i32 = arith.constant 0 : i32
    %c0_i32_0 = arith.constant 0 : i32
    %c0_i32_1 = arith.constant 0 : i32
    return %c0_i32, %c0_i32_0 : i32, i32
  }
  func.func @transform_8(%arg0: i32) -> (i32, i32) {
    %c0_i32 = arith.constant 0 : i32
    %c0_i32_0 = arith.constant 0 : i32
    %c0_i32_1 = arith.constant 0 : i32
    return %c0_i32, %c0_i32_0 : i32, i32
  }
  func.func @transform_9(%arg0: i32) -> (i32, i32) {
    %c0_i32 = arith.constant 0 : i32
    %c0_i32_0 = arith.constant 0 : i32
    %c0_i32_1 = arith.constant 0 : i32
    return %c0_i32, %c0_i32_0 : i32, i32
  }
  func.func @transform_10(%arg0: i32) -> (i32, i32) {
    %c0_i32 = arith.constant 0 : i32
    %c0_i32_0 = arith.constant 0 : i32
    return %arg0, %c0_i32 : i32, i32
  }
  func.func @transform_11(%arg0: i32) -> (i32, i32) {
    %c0_i32 = arith.constant 0 : i32
    %c0_i32_0 = arith.constant 0 : i32
    return %arg0, %c0_i32 : i32, i32
  }
}

</mosaic_0001>

<bundles_post_ra>
// kernel: tpu_custom_call.1
= control target key start
LH: loop header
LB: loop body
LE: loop exit
PB: predicated region body
PF: predicated region fallthrough
CT: control target
= control target key end

     0   :  { %17 = vsyncpa [#allocation3], 0  ;;  %s3533_s0 = inlined_call_operand.hbm [shape: f32[200,256], index: 0, kind: input, shape index: {}]   ;;  %s3534_s1 = inlined_call_operand.vmem [shape: f32[200,30], index: 1, kind: input, shape index: {}]   ;;  %s3535_s2 = inlined_call_operand.vmem [shape: f32[256,128], index: 2, kind: input, shape index: {}]   ;;  %s3536_s3 = inlined_call_operand.vmem [shape: f32[1,128], index: 3, kind: input, shape index: {}]   ;;  %s3537_s4 = inlined_call_operand.hbm [shape: f32[128,128], index: 4, kind: input, shape index: {}]   ;;  %s3538_s5 = inlined_call_operand.vmem [shape: f32[1,128], index: 5, kind: input, shape index: {}]   ;;  %s3539_s6 = inlined_call_operand.hbm [shape: f32[30,128], index: 6, kind: input, shape index: {}]   ;;  %s3540_s7 = inlined_call_operand.vmem [shape: f32[1,128], index: 7, kind: input, shape index: {}]   ;;  %s3541_s8 = inlined_call_operand.hbm [shape: f32[128,256], index: 8, kind: input, shape index: {}]   ;;  %s3542_s9 = inlined_call_operand.vmem [shape: f32[1,256], index: 9, kind: input, shape index: {}]   ;;  %s3543_s10 = inlined_call_operand.hbm [shape: f32[200,256], index: 10, kind: output, shape index: {0}]   ;;  %s3544_s11 = inlined_call_operand.hbm [shape: f32[200,128], index: 11, kind: output, shape index: {1}]  }
   0x1   :  { %18 = vsyncpa [#allocation6], 0 }
   0x2   :  { %19 = vsyncpa [#allocation9], 0 }
   0x3   :  { %20 = vsyncpa [#allocation4], 0 }
   0x4   :  { %21 = vsyncpa [#allocation12], 0  ;;  %s2709_s17 = smov [#allocation5]   ;;  %s2567_s21 = scalar_lea.hbm %s3537_s4, 2048 }
   0x5   :  { %s45_s18 = sshll.u32 %s2709_s17, 4  ;;  %p2568_p0 = scmp.ne.s32.totalorder %s3537_s4, %s2567_s21  ;;  %s46_s18 = int_to_ptr.vmem [resolvable:$true] %s45_s18 }
   0x6   :  { %p2571_p1 = scmp.lt.u32.totalorder %s2567_s21, %s3537_s4 }
   0x8   :  { %p2573_p2 = pnand %p2571_p1, %p2568_p0 }
   0xa   :  { %2576 = shalt.err (!%p2573_p2)
}
   0xb   :  { %s2577_s26 = scalar_lea.vmem %s46_s18, 2048  ;;  %p2582_p4 = scmp.lt.s32.totalorder %s46_s18, %s46_s18 }
   0xc   :  { %p2578_p3 = scmp.ne.s32.totalorder %s46_s18, %s2577_s26  ;;  %p2583_p5 = scmp.lt.s32.totalorder %s2577_s26, %s2577_s26 }
   0xe   :  { %p2584_p6 = por %p2583_p5, %p2582_p4 }
  0x10   :  { %p2585_p7 = pnand %p2584_p6, %p2578_p3 }
  0x12   :  { %2588 = shalt.err (!%p2585_p7)
}
  0x13   :  { %s2710_s27 = smov 128   ;;  %s2711_s28 = smov 8  }
  0x14   :  { %51 = dma.hbm_to_vmem [thread:$0]  %s3537_s4, 2048, %s46_s18, [#allocation6], %s2710_s27, %s2710_s27, %s2711_s28  }
  0x15   :  { %s2712_s12 = smov [#allocation2]   ;;  %s2589_s16 = scalar_lea.hbm %s3533_s0, 6400 }
  0x16   :  { %s27_s13 = sshll.u32 %s2712_s12, 4  ;;  %p2590_p8 = scmp.ne.s32.totalorder %s3533_s0, %s2589_s16  ;;  %s28_s13 = int_to_ptr.vmem [resolvable:$true] %s27_s13 }
  0x17   :  { %p2593_p9 = scmp.lt.u32.totalorder %s2589_s16, %s3533_s0 }
  0x19   :  { %p2595_p10 = pnand %p2593_p9, %p2590_p8 }
  0x1b   :  { %2598 = shalt.err (!%p2595_p10)
}
  0x1c   :  { %s2599_s22 = scalar_lea.vmem %s28_s13, 6400  ;;  %p2604_p12 = scmp.lt.s32.totalorder %s28_s13, %s28_s13 }
  0x1d   :  { %p2600_p11 = scmp.ne.s32.totalorder %s28_s13, %s2599_s22  ;;  %p2605_p13 = scmp.lt.s32.totalorder %s2599_s22, %s2599_s22 }
  0x1f   :  { %p2606_p0 = por %p2605_p13, %p2604_p12 }
  0x21   :  { %p2607_p1 = pnand %p2606_p0, %p2600_p11 }
  0x23   :  { %2610 = shalt.err (!%p2607_p1)
}
  0x24   :  { %s2713_s4 = smov 256   ;;  %s2714_s18 = smov 16  }
  0x25   :  { %33 = dma.hbm_to_vmem [thread:$0]  %s3533_s0, 6400, %s28_s13, [#allocation3], %s2713_s4, %s2713_s4, %s2714_s18  }
  0x26   :  { %s2715_s25 = smov [#allocation7]   ;;  %s2716_s29 = smov [#allocation8]  }
  0x27   :  { %s59_s26 = sshll.u32 %s2715_s25, 4  ;;  %s73_s30 = sshll.u32 %s2716_s29, 4  ;;  %s60_s26 = int_to_ptr.vmem [resolvable:$true] %s59_s26  ;;  %s2814_s30 = int_to_ptr.vmem [resolvable:$true] %s73_s30 }
  0x28   :  { %s2611_s15 = scalar_lea.hbm %s3539_s6, 512 }
  0x29   :  { %p2612_p2 = scmp.ne.s32.totalorder %s3539_s6, %s2611_s15  ;;  %p2615_p3 = scmp.lt.u32.totalorder %s2611_s15, %s3539_s6 }
  0x2b   :  { %p2617_p4 = pnand %p2615_p3, %p2612_p2 }
  0x2d   :  { %2620 = shalt.err (!%p2617_p4)
}
  0x2e   :  { %s2621_s0 = scalar_lea.vmem %s60_s26, 512  ;;  %p2626_p6 = scmp.lt.s32.totalorder %s60_s26, %s60_s26 }
  0x2f   :  { %p2622_p5 = scmp.ne.s32.totalorder %s60_s26, %s2621_s0  ;;  %p2627_p7 = scmp.lt.s32.totalorder %s2621_s0, %s2621_s0 }
  0x31   :  { %p2628_p8 = por %p2627_p7, %p2626_p6 }
  0x33   :  { %p2629_p9 = pnand %p2628_p8, %p2622_p5 }
  0x35   :  { %2632 = shalt.err (!%p2629_p9)
}
  0x36   :  { %65 = dma.hbm_to_vmem [thread:$0]  %s3539_s6, 512, %s60_s26, [#allocation6], %s2710_s27, %s2710_s27, %s2711_s28  }
  0x37   :  { %s2633_s24 = scalar_lea.hbm %s3541_s8, 4096 }
  0x38   :  { %p2634_p10 = scmp.ne.s32.totalorder %s3541_s8, %s2633_s24  ;;  %p2637_p11 = scmp.lt.u32.totalorder %s2633_s24, %s3541_s8 }
  0x3a   :  { %p2639_p12 = pnand %p2637_p11, %p2634_p10 }
  0x3c   :  { %2642 = shalt.err (!%p2639_p12)
}
  0x3d   :  { %s2643_s15 = scalar_lea.vmem %s2814_s30, 4096  ;;  %p2648_p0 = scmp.lt.s32.totalorder %s2814_s30, %s2814_s30 }
  0x3e   :  { %p2644_p13 = scmp.ne.s32.totalorder %s2814_s30, %s2643_s15  ;;  %p2649_p1 = scmp.lt.s32.totalorder %s2643_s15, %s2643_s15 }
  0x40   :  { %p2650_p2 = por %p2649_p1, %p2648_p0 }
  0x42   :  { %p2651_p3 = pnand %p2650_p2, %p2644_p13 }
  0x44   :  { %2654 = shalt.err (!%p2651_p3)
}
  0x45   :  { %79 = dma.hbm_to_vmem [thread:$0]  %s3541_s8, 4096, %s2814_s30, [#allocation9], %s2713_s4, %s2713_s4, %s2714_s18  }
  0x46   :  { %2699 = dma.done.wait [#allocation3], 6400  }
  0x47   :  { %2700 = vsyncadd [#allocation3], 4294960896 }
  0x48   :  { %2701 = dma.done.wait [#allocation6], 2560  }
  0x49   :  { %2702 = vsyncadd [#allocation6], 4294964736 }
  0x4a   :  { %2703 = dma.done.wait [#allocation9], 4096  }
  0x4b   :  { %2704 = vsyncadd [#allocation9], 4294963200  ;;  %v2717_v0 = vmov 0.0|0.0   ;;  %v144_v1 = vld [vmem:[%s3535_s2] sm:$0xff]  ;;  %v145_v2 = vld [vmem:[%s3535_s2 + $0x8] sm:$0xff]  ;;  %vm2718_vm0 = vmmov 0  }
  0x4c   :  { %2175 = vmatprep.subr.bf16.mxu0 %v2717_v0  ;;  %2223 = vmatprep.subr.bf16.mxu1 %v2717_v0  ;;  %v146_v3 = vld [vmem:[%s3535_s2 + $0x10] sm:$0xff]  ;;  %v2176_v4 = vpack.c.bf16 %v145_v2, %v144_v1  ;;  %v147_v5 = vld [vmem:[%s3535_s2 + $0x18] sm:$0xff]  ;;  %v148_v7 = vld [vmem:[%s3535_s2 + $0x20] sm:$0xff]  ;;  %vm973_vm1 = vcmask 1045504   ;;  %vm2720_vm2 = vmmov 1   ;;  %vm897_vm4 = vcmask 244736  }
  0x4d   :  { %v2179_v6 = vpack.c.bf16 %v147_v5, %v146_v3  ;;  %v149_v8 = vld [vmem:[%s3535_s2 + $0x28] sm:$0xff]  ;;  %v150_v10 = vld [vmem:[%s3535_s2 + $0x30] sm:$0xff]  ;;  %v151_v11 = vld [vmem:[%s3535_s2 + $0x38] sm:$0xff]  ;;  %s2722_s6 = smov [#allocation11]  }
  0x4e   :  { %2177 = vmatpush1.bf16.msra.mxu0 %v2176_v4  ;;  %v2182_v9 = vpack.c.bf16 %v149_v8, %v148_v7  ;;  %v95_v12 = vld [vmem:[#allocation2 + $0x8] sm:$0xff]  ;;  %v2185_v13 = vpack.c.bf16 %v151_v11, %v150_v10  ;;  %v152_v14 = vld [vmem:[%s3535_s2 + $0x40] sm:$0xff]  ;;  %v154_v17 = vld [vmem:[%s3535_s2 + $0x50] sm:$0xff]  ;;  %s1818_s26 = sshll.u32 %s2722_s6, 4  ;;  %s1819_s26 = int_to_ptr.vmem [resolvable:$true] %s1818_s26 }
  0x4f   :  { %2178 = vmatprep.subr.bf16.mxu0 %v2717_v0  ;;  %247 = vmatprep.mubr.f32.mxu0 %v95_v12  ;;  %v153_v15 = vld [vmem:[%s3535_s2 + $0x48] sm:$0xff]  ;;  %v155_v18 = vld [vmem:[%s3535_s2 + $0x58] sm:$0xff]  ;;  %v156_v20 = vld [vmem:[%s3535_s2 + $0x60] sm:$0xff]  ;;  %s2655_s16 = scalar_lea.vmem %s1819_s26, 3200  ;;  %p2660_p5 = scmp.lt.s32.totalorder %s1819_s26, %s1819_s26 }
  0x50   :  { %v2188_v16 = vpack.c.bf16 %v153_v15, %v152_v14  ;;  %v2191_v19 = vpack.c.bf16 %v155_v18, %v154_v17  ;;  %v157_v21 = vld [vmem:[%s3535_s2 + $0x68] sm:$0xff]  ;;  %v158_v23 = vld [vmem:[%s3535_s2 + $0x70] sm:$0xff]  ;;  %v159_v24 = vld [vmem:[%s3535_s2 + $0x78] sm:$0xff]  ;;  %p2656_p4 = scmp.ne.s32.totalorder %s1819_s26, %s2655_s16  ;;  %p2661_p6 = scmp.lt.s32.totalorder %s2655_s16, %s2655_s16 }
  0x51   :  { %v2194_v22 = vpack.c.bf16 %v157_v21, %v156_v20  ;;  %v2197_v25 = vpack.c.bf16 %v159_v24, %v158_v23  ;;  %v160_v26 = vld [vmem:[%s3535_s2 + $0x80] sm:$0xff]  ;;  %v161_v27 = vld [vmem:[%s3535_s2 + $0x88] sm:$0xff]  ;;  %v162_v29 = vld [vmem:[%s3535_s2 + $0x90] sm:$0xff] }
  0x52   :  { %2180 = vmatpush1.bf16.msra.mxu0 %v2179_v6  ;;  %v2200_v28 = vpack.c.bf16 %v161_v27, %v160_v26  ;;  %v163_v30 = vld [vmem:[%s3535_s2 + $0x98] sm:$0xff]  ;;  %v398_v31 = vld [vmem:[#allocation5] sm:$0xff]  ;;  %v400_v33 = vld [vmem:[#allocation5 + $0x10] sm:$0xff]  ;;  %p2662_p7 = por %p2661_p6, %p2660_p5 }
  0x53   :  { %2181 = vmatprep.subr.bf16.mxu0 %v2717_v0  ;;  %v399_v32 = vld [vmem:[#allocation5 + $0x8] sm:$0xff]  ;;  %v2203_v34 = vpack.c.bf16 %v163_v30, %v162_v29  ;;  %v401_v36 = vld [vmem:[#allocation5 + $0x18] sm:$0xff]  ;;  %v164_v37 = vld [vmem:[%s3535_s2 + $0xa0] sm:$0xff] }
  0x54   :  { %v2224_v35 = vpack.c.bf16 %v399_v32, %v398_v31  ;;  %v165_v38 = vld [vmem:[%s3535_s2 + $0xa8] sm:$0xff]  ;;  %v2227_v39 = vpack.c.bf16 %v401_v36, %v400_v33  ;;  %v402_v40 = vld [vmem:[#allocation5 + $0x20] sm:$0xff]  ;;  %v403_v41 = vld [vmem:[#allocation5 + $0x28] sm:$0xff]  ;;  %p2663_p8 = pnand %p2662_p7, %p2656_p4 }
  0x55   :  { %v2206_v42 = vpack.c.bf16 %v165_v38, %v164_v37  ;;  %v166_v43 = vld [vmem:[%s3535_s2 + $0xb0] sm:$0xff]  ;;  %v167_v44 = vld [vmem:[%s3535_s2 + $0xb8] sm:$0xff]  ;;  %v2230_v45 = vpack.c.bf16 %v403_v41, %v402_v40  ;;  %v404_v46 = vld [vmem:[#allocation5 + $0x30] sm:$0xff] }
  0x56   :  { %2183 = vmatpush1.bf16.msra.mxu0 %v2182_v9  ;;  %2225 = vmatpush3.bf16.msra.mxu1 %v2224_v35  ;;  %v405_v47 = vld [vmem:[#allocation5 + $0x38] sm:$0xff]  ;;  %v2209_v48 = vpack.c.bf16 %v167_v44, %v166_v43  ;;  %v168_v49 = vld [vmem:[%s3535_s2 + $0xc0] sm:$0xff]  ;;  %v406_v52 = vld [vmem:[#allocation5 + $0x40] sm:$0xff] }
  0x57   :  { %2184 = vmatprep.subr.bf16.mxu0 %v2717_v0  ;;  %2226 = vmatprep.subr.bf16.mxu1 %v2717_v0  ;;  %v169_v50 = vld [vmem:[%s3535_s2 + $0xc8] sm:$0xff]  ;;  %v2233_v51 = vpack.c.bf16 %v405_v47, %v404_v46  ;;  %v407_v53 = vld [vmem:[#allocation5 + $0x48] sm:$0xff]  ;;  %v170_v55 = vld [vmem:[%s3535_s2 + $0xd0] sm:$0xff] }
  0x58   :  { %v2212_v54 = vpack.c.bf16 %v169_v50, %v168_v49  ;;  %v171_v56 = vld [vmem:[%s3535_s2 + $0xd8] sm:$0xff]  ;;  %v2236_v57 = vpack.c.bf16 %v407_v53, %v406_v52  ;;  %v408_v58 = vld [vmem:[#allocation5 + $0x50] sm:$0xff]  ;;  %v409_v59 = vld [vmem:[#allocation5 + $0x58] sm:$0xff] }
  0x59   :  { %v2215_v60 = vpack.c.bf16 %v171_v56, %v170_v55  ;;  %v172_v61 = vld [vmem:[%s3535_s2 + $0xe0] sm:$0xff]  ;;  %v173_v62 = vld [vmem:[%s3535_s2 + $0xe8] sm:$0xff]  ;;  %v2239_v63 = vpack.c.bf16 %v409_v59, %v408_v58  ;;  %v410_v1 = vld [vmem:[#allocation5 + $0x60] sm:$0xff] }
  0x5a   :  { %2186 = vmatpush1.bf16.msra.mxu0 %v2185_v13  ;;  %2228 = vmatpush3.bf16.msra.mxu1 %v2227_v39  ;;  %v411_v2 = vld [vmem:[#allocation5 + $0x68] sm:$0xff]  ;;  %v2218_v3 = vpack.c.bf16 %v173_v62, %v172_v61  ;;  %v174_v4 = vld [vmem:[%s3535_s2 + $0xf0] sm:$0xff]  ;;  %v94_v8 = vld [vmem:[#allocation2] sm:$0xff] }
  0x5b   :  { %2187 = vmatprep.subr.bf16.mxu0 %v2717_v0  ;;  %2229 = vmatprep.subr.bf16.mxu1 %v2717_v0  ;;  %v175_v5 = vld [vmem:[%s3535_s2 + $0xf8] sm:$0xff]  ;;  %v2242_v6 = vpack.c.bf16 %v411_v2, %v410_v1  ;;  %v96_v10 = vld [vmem:[#allocation2 + $0x10] sm:$0xff]  ;;  %v99_v11 = vld [vmem:[#allocation2 + $0x28] sm:$0xff] }
  0x5c   :  { %v2221_v7 = vpack.c.bf16 %v175_v5, %v174_v4  ;;  %v97_v9 = vld [vmem:[#allocation2 + $0x18] sm:$0xff]  ;;  %v98_v12 = vld [vmem:[#allocation2 + $0x20] sm:$0xff]  ;;  %v100_v14 = vld [vmem:[#allocation2 + $0x30] sm:$0xff] }
  0x5d   :  { %v101_v13 = vld [vmem:[#allocation2 + $0x38] sm:$0xff]  ;;  %v103_v15 = vld [vmem:[#allocation2 + $0x48] sm:$0xff]  ;;  %v104_v18 = vld [vmem:[#allocation2 + $0x50] sm:$0xff] }
  0x5e   :  { %2189 = vmatpush1.bf16.msra.mxu0 %v2188_v16  ;;  %2231 = vmatpush3.bf16.msra.mxu1 %v2230_v45  ;;  %v102_v16 = vld [vmem:[#allocation2 + $0x40] sm:$0xff]  ;;  %v105_v17 = vld [vmem:[#allocation2 + $0x58] sm:$0xff]  ;;  %v111_v23 = vld [vmem:[#allocation2 + $0x88] sm:$0xff] }
  0x5f   :  { %2190 = vmatprep.subr.bf16.mxu0 %v2717_v0  ;;  %2232 = vmatprep.subr.bf16.mxu1 %v2717_v0  ;;  %v106_v20 = vld [vmem:[#allocation2 + $0x60] sm:$0xff]  ;;  %v109_v21 = vld [vmem:[#allocation2 + $0x78] sm:$0xff]  ;;  %v112_v26 = vld [vmem:[#allocation2 + $0x90] sm:$0xff] }
  0x60   :  { %v110_v24 = vld [vmem:[#allocation2 + $0x80] sm:$0xff]  ;;  %v115_v27 = vld [vmem:[#allocation2 + $0xa8] sm:$0xff]  ;;  %v117_v29 = vld [vmem:[#allocation2 + $0xb8] sm:$0xff] }
  0x61   :  { %v116_v30 = vld [vmem:[#allocation2 + $0xb0] sm:$0xff]  ;;  %v119_v31 = vld [vmem:[#allocation2 + $0xc8] sm:$0xff]  ;;  %v118_v32 = vld [vmem:[#allocation2 + $0xc0] sm:$0xff] }
  0x62   :  { %2192 = vmatpush1.bf16.msra.mxu0 %v2191_v19  ;;  %2234 = vmatpush3.bf16.msra.mxu1 %v2233_v51  ;;  %v107_v19 = vld [vmem:[#allocation2 + $0x68] sm:$0xff]  ;;  %v121_v33 = vld [vmem:[#allocation2 + $0xd8] sm:$0xff]  ;;  %v122_v36 = vld [vmem:[#allocation2 + $0xe0] sm:$0xff] }
  0x63   :  { %2193 = vmatprep.subr.bf16.mxu0 %v2717_v0  ;;  %2235 = vmatprep.subr.bf16.mxu1 %v2717_v0  ;;  %v123_v35 = vld [vmem:[#allocation2 + $0xe8] sm:$0xff]  ;;  %v125_v37 = vld [vmem:[#allocation2 + $0xf8] sm:$0xff]  ;;  %v124_v38 = vld [vmem:[#allocation2 + $0xf0] sm:$0xff] }
  0x64   :  { %v127_v39 = vld [vmem:[#allocation2 + $0x108] sm:$0xff]  ;;  %v126_v40 = vld [vmem:[#allocation2 + $0x100] sm:$0xff]  ;;  %v129_v41 = vld [vmem:[#allocation2 + $0x118] sm:$0xff] }
  0x65   :  { %v131_v43 = vld [vmem:[#allocation2 + $0x128] sm:$0xff]  ;;  %v130_v44 = vld [vmem:[#allocation2 + $0x120] sm:$0xff]  ;;  %v133_v45 = vld [vmem:[#allocation2 + $0x138] sm:$0xff] }
  0x66   :  { %2195 = vmatpush1.bf16.msra.mxu0 %v2194_v22  ;;  %2237 = vmatpush3.bf16.msra.mxu1 %v2236_v57  ;;  %v108_v22 = vld [vmem:[#allocation2 + $0x70] sm:$0xff]  ;;  %v135_v47 = vld [vmem:[#allocation2 + $0x148] sm:$0xff]  ;;  %v137_v49 = vld [vmem:[#allocation2 + $0x158] sm:$0xff]  ;;  %v2719_v57 = vmov 0.0  }
  0x67   :  { %2196 = vmatprep.subr.bf16.mxu0 %v2717_v0  ;;  %2238 = vmatprep.subr.bf16.mxu1 %v2717_v0  ;;  %v132_v46 = vld [vmem:[#allocation2 + $0x130] sm:$0xff]  ;;  %v139_v51 = vld [vmem:[#allocation2 + $0x168] sm:$0xff]  ;;  %v412_v52 = vld [vmem:[#allocation5 + $0x70] sm:$0xff] }
  0x68   :  { %v136_v50 = vld [vmem:[#allocation2 + $0x150] sm:$0xff]  ;;  %v413_v53 = vld [vmem:[#allocation5 + $0x78] sm:$0xff]  ;;  %v138_v55 = vld [vmem:[#allocation2 + $0x160] sm:$0xff]  ;;  %2017 = vmatprep.mubr.msk.f32.mxu1 %vm2718_vm0, %v2719_v57 }
  0x69   :  { %v141_v56 = vld [vmem:[#allocation2 + $0x178] sm:$0xff]  ;;  %v140_v58 = vld [vmem:[#allocation2 + $0x170] sm:$0xff]  ;;  %v143_v59 = vld [vmem:[#allocation2 + $0x188] sm:$0xff] }
  0x6a   :  { %2198 = vmatpush1.bf16.msra.mxu0 %v2197_v25  ;;  %2240 = vmatpush3.bf16.msra.mxu1 %v2239_v63  ;;  %v113_v25 = vld [vmem:[#allocation2 + $0x98] sm:$0xff]  ;;  %v2978_v61 = vld [vmem:[%s3536_s3] ss:$0 sm:$0xff]  ;;  %vm2252_vm3 = vmpackc.low %vm973_vm1, %vm2720_vm2 }
  0x6b   :  { %2199 = vmatprep.subr.bf16.mxu0 %v2717_v0  ;;  %2241 = vmatprep.subr.bf16.mxu1 %v2717_v0 }
  0x6e   :  { %2201 = vmatpush1.bf16.msra.mxu0 %v2200_v28  ;;  %2243 = vmatpush3.bf16.msra.mxu1 %v2242_v6  ;;  %v114_v28 = vld [vmem:[#allocation2 + $0xa0] sm:$0xff] }
  0x6f   :  { %2202 = vmatprep.subr.bf16.mxu0 %v2717_v0  ;;  %2244 = vmatprep.subr.bf16.mxu1 %v2717_v0 }
  0x72   :  { %2204 = vmatpush1.bf16.msra.mxu0 %v2203_v34  ;;  %v120_v34 = vld [vmem:[#allocation2 + $0xd0] sm:$0xff] }
  0x73   :  { %2205 = vmatprep.subr.bf16.mxu0 %v2717_v0 }
  0x76   :  { %2207 = vmatpush1.bf16.msra.mxu0 %v2206_v42  ;;  %v128_v42 = vld [vmem:[#allocation2 + $0x110] sm:$0xff] }
  0x77   :  { %2208 = vmatprep.subr.bf16.mxu0 %v2717_v0 }
  0x7a   :  { %2210 = vmatpush1.bf16.msra.mxu0 %v2209_v48  ;;  %v134_v48 = vld [vmem:[#allocation2 + $0x140] sm:$0xff] }
  0x7b   :  { %2211 = vmatprep.subr.bf16.mxu0 %v2717_v0 }
  0x7e   :  { %2213 = vmatpush1.bf16.msra.mxu0 %v2212_v54  ;;  %v2245_v54 = vpack.c.bf16 %v413_v53, %v412_v52 }
  0x7f   :  { %2214 = vmatprep.subr.bf16.mxu0 %v2717_v0 }
  0x80   :  { %2246 = vmatpush3.bf16.msra.mxu1 %v2245_v54 }
  0x81   :  { %2247 = vmatprep.subr.bf16.mxu1 %v2717_v0 }
  0x82   :  { %2216 = vmatpush1.bf16.msra.mxu0 %v2215_v60  ;;  %v142_v60 = vld [vmem:[#allocation2 + $0x180] sm:$0xff] }
  0x83   :  { %2217 = vmatprep.subr.bf16.mxu0 %v2717_v0 }
  0x86   :  { %2219 = vmatpush1.bf16.msra.mxu0 %v2218_v3 }
  0x87   :  { %2220 = vmatprep.subr.bf16.mxu0 %v2717_v0 }
  0x8a   :  { %2222 = vmatpush1.bf16.msra.mxu0 %v2221_v7 }
  0x8d   :  { %248 = vmatmul.mubr.f32.vlgmr.msra.gmra.mrb[0].mxu0 %v94_v8 }
  0x8e   :  { %252 = vmatprep.mubr.f32.mxu0 %v97_v9 }
  0x91   :  { %253 = vmatmul.mubr.f32.gmra.mrb[2].mxu0 %v96_v10 }
  0x92   :  { %257 = vmatprep.mubr.f32.mxu0 %v99_v11 }
  0x95   :  { %258 = vmatmul.mubr.f32.gmra.mrb[4].mxu0 %v98_v12 }
  0x96   :  { %262 = vmatprep.mubr.f32.mxu0 %v101_v13 }
  0x99   :  { %263 = vmatmul.mubr.f32.gmra.mrb[6].mxu0 %v100_v14 }
  0x9a   :  { %267 = vmatprep.mubr.f32.mxu0 %v103_v15 }
  0x9d   :  { %268 = vmatmul.mubr.f32.gmra.mrb[8].mxu0 %v102_v16 }
  0x9e   :  { %272 = vmatprep.mubr.f32.mxu0 %v105_v17 }
  0xa1   :  { %273 = vmatmul.mubr.f32.gmra.mrb[10].mxu0 %v104_v18 }
  0xa2   :  { %277 = vmatprep.mubr.f32.mxu0 %v107_v19 }
  0xa5   :  { %278 = vmatmul.mubr.f32.gmra.mrb[12].mxu0 %v106_v20 }
  0xa6   :  { %282 = vmatprep.mubr.f32.mxu0 %v109_v21 }
  0xa9   :  { %283 = vmatmul.mubr.f32.gmra.mrb[14].mxu0 %v108_v22 }
  0xaa   :  { %287 = vmatprep.mubr.f32.mxu0 %v111_v23 }
  0xad   :  { %288 = vmatmul.mubr.f32.gmra.mrb[16].mxu0 %v110_v24 }
  0xae   :  { %292 = vmatprep.mubr.f32.mxu0 %v113_v25 }
  0xb1   :  { %293 = vmatmul.mubr.f32.gmra.mrb[18].mxu0 %v112_v26 }
  0xb2   :  { %297 = vmatprep.mubr.f32.mxu0 %v115_v27 }
  0xb5   :  { %298 = vmatmul.mubr.f32.gmra.mrb[20].mxu0 %v114_v28 }
  0xb6   :  { %302 = vmatprep.mubr.f32.mxu0 %v117_v29 }
  0xb9   :  { %303 = vmatmul.mubr.f32.gmra.mrb[22].mxu0 %v116_v30 }
  0xba   :  { %307 = vmatprep.mubr.f32.mxu0 %v119_v31 }
  0xbd   :  { %308 = vmatmul.mubr.f32.gmra.mrb[24].mxu0 %v118_v32 }
  0xbe   :  { %312 = vmatprep.mubr.f32.mxu0 %v121_v33 }
  0xc1   :  { %313 = vmatmul.mubr.f32.gmra.mrb[26].mxu0 %v120_v34 }
  0xc2   :  { %317 = vmatprep.mubr.f32.mxu0 %v123_v35 }
  0xc5   :  { %318 = vmatmul.mubr.f32.gmra.mrb[28].mxu0 %v122_v36 }
  0xc6   :  { %322 = vmatprep.mubr.f32.mxu0 %v125_v37 }
  0xc9   :  { %323 = vmatmul.mubr.f32.gmra.mrb[30].mxu0 %v124_v38 }
  0xca   :  { %327 = vmatprep.mubr.f32.mxu0 %v127_v39 }
  0xcd   :  { %328 = vmatmul.mubr.f32.gmra.mrb[32].mxu0 %v126_v40 }
  0xce   :  { %332 = vmatprep.mubr.f32.mxu0 %v129_v41 }
  0xd1   :  { %333 = vmatmul.mubr.f32.gmra.mrb[34].mxu0 %v128_v42 }
  0xd2   :  { %337 = vmatprep.mubr.f32.mxu0 %v131_v43 }
  0xd5   :  { %338 = vmatmul.mubr.f32.gmra.mrb[36].mxu0 %v130_v44 }
  0xd6   :  { %342 = vmatprep.mubr.f32.mxu0 %v133_v45 }
  0xd9   :  { %343 = vmatmul.mubr.f32.gmra.mrb[38].mxu0 %v132_v46 }
  0xda   :  { %347 = vmatprep.mubr.f32.mxu0 %v135_v47 }
  0xdd   :  { %348 = vmatmul.mubr.f32.gmra.mrb[40].mxu0 %v134_v48 }
  0xde   :  { %352 = vmatprep.mubr.f32.mxu0 %v137_v49 }
  0xe1   :  { %353 = vmatmul.mubr.f32.gmra.mrb[42].mxu0 %v136_v50 }
  0xe2   :  { %357 = vmatprep.mubr.f32.mxu0 %v139_v51 }
  0xe5   :  { %358 = vmatmul.mubr.f32.gmra.mrb[44].mxu0 %v138_v55 }
  0xe6   :  { %362 = vmatprep.mubr.f32.mxu0 %v141_v56 }
  0xe9   :  { %363 = vmatmul.mubr.f32.gmra.mrb[46].mxu0 %v140_v58 }
  0xea   :  { %367 = vmatprep.mubr.f32.mxu0 %v143_v59 }
  0xed   :  { %368 = vmatmul.mubr.f32.gmra.mrb[48].mxu0 %v142_v60 }
  0xee   :  { %1300 = vmatprep.mubr.f32.mxu0 %v2719_v57 }
 0x160   :  { %v249_v62 = vpop.f32.mrb[0].mxu0 }
 0x161   :  { %v250_v63 = vadd.f32 %v2978_v61, %v249_v62  ;;  %v251_v1 = vpop.f32.mrb[1].mxu0 }
 0x163   :  { %v373_v2 = vmax.f32 %v250_v63, 0.0 }
 0x164   :  { %v254_v3 = vpop.f32.mrb[2].mxu0 }
 0x165   :  { %v255_v4 = vadd.f32 %v2978_v61, %v254_v3  ;;  %v256_v5 = vpop.f32.mrb[3].mxu0  ;;  %2018 = vmatmul.mubr.f32.vlgmr.msra.gmra.mrb[0].mxu1 %v373_v2 }
 0x166   :  { %2020 = vmatprep.mubr.msk.f32.mxu1 %vm2718_vm0, %v2719_v57 }
 0x167   :  { %v374_v6 = vmax.f32 %v255_v4, 0.0 }
 0x168   :  { %v259_v7 = vpop.f32.mrb[4].mxu0 }
 0x169   :  { %v260_v8 = vadd.f32 %v2978_v61, %v259_v7  ;;  %v261_v9 = vpop.f32.mrb[5].mxu0  ;;  %2021 = vmatmul.mubr.f32.gmra.mrb[2].mxu1 %v374_v6 }
 0x16a   :  { %2023 = vmatprep.mubr.msk.f32.mxu1 %vm2718_vm0, %v2719_v57 }
 0x16b   :  { %v375_v10 = vmax.f32 %v260_v8, 0.0 }
 0x16c   :  { %v264_v11 = vpop.f32.mrb[6].mxu0 }
 0x16d   :  { %v265_v12 = vadd.f32 %v2978_v61, %v264_v11  ;;  %v266_v13 = vpop.f32.mrb[7].mxu0  ;;  %2024 = vmatmul.mubr.f32.gmra.mrb[4].mxu1 %v375_v10 }
 0x16e   :  { %2026 = vmatprep.mubr.msk.f32.mxu1 %vm2718_vm0, %v2719_v57 }
 0x16f   :  { %v376_v14 = vmax.f32 %v265_v12, 0.0 }
 0x170   :  { %v269_v15 = vpop.f32.mrb[8].mxu0 }
 0x171   :  { %v270_v16 = vadd.f32 %v2978_v61, %v269_v15  ;;  %v271_v17 = vpop.f32.mrb[9].mxu0  ;;  %2027 = vmatmul.mubr.f32.gmra.mrb[6].mxu1 %v376_v14 }
 0x172   :  { %2029 = vmatprep.mubr.msk.f32.mxu1 %vm2718_vm0, %v2719_v57 }
 0x173   :  { %v377_v18 = vmax.f32 %v270_v16, 0.0 }
 0x174   :  { %v274_v19 = vpop.f32.mrb[10].mxu0 }
 0x175   :  { %v275_v20 = vadd.f32 %v2978_v61, %v274_v19  ;;  %v276_v21 = vpop.f32.mrb[11].mxu0  ;;  %2030 = vmatmul.mubr.f32.gmra.mrb[8].mxu1 %v377_v18 }
 0x176   :  { %2032 = vmatprep.mubr.msk.f32.mxu1 %vm2718_vm0, %v2719_v57 }
 0x177   :  { %v378_v22 = vmax.f32 %v275_v20, 0.0 }
 0x178   :  { %v279_v23 = vpop.f32.mrb[12].mxu0 }
 0x179   :  { %v280_v24 = vadd.f32 %v2978_v61, %v279_v23  ;;  %v281_v25 = vpop.f32.mrb[13].mxu0  ;;  %2033 = vmatmul.mubr.f32.gmra.mrb[10].mxu1 %v378_v22 }
 0x17a   :  { %2035 = vmatprep.mubr.msk.f32.mxu1 %vm2718_vm0, %v2719_v57 }
 0x17b   :  { %v379_v26 = vmax.f32 %v280_v24, 0.0 }
 0x17c   :  { %v284_v27 = vpop.f32.mrb[14].mxu0 }
 0x17d   :  { %v285_v28 = vadd.f32 %v2978_v61, %v284_v27  ;;  %v286_v29 = vpop.f32.mrb[15].mxu0  ;;  %2036 = vmatmul.mubr.f32.gmra.mrb[12].mxu1 %v379_v26 }
 0x17e   :  { %2038 = vmatprep.mubr.msk.f32.mxu1 %vm2718_vm0, %v2719_v57 }
 0x17f   :  { %v380_v30 = vmax.f32 %v285_v28, 0.0 }
 0x180   :  { %v289_v31 = vpop.f32.mrb[16].mxu0 }
 0x181   :  { %v290_v32 = vadd.f32 %v2978_v61, %v289_v31  ;;  %v291_v33 = vpop.f32.mrb[17].mxu0  ;;  %2039 = vmatmul.mubr.f32.gmra.mrb[14].mxu1 %v380_v30 }
 0x182   :  { %2041 = vmatprep.mubr.msk.f32.mxu1 %vm2718_vm0, %v2719_v57 }
 0x183   :  { %v381_v34 = vmax.f32 %v290_v32, 0.0 }
 0x184   :  { %v294_v35 = vpop.f32.mrb[18].mxu0 }
 0x185   :  { %v295_v36 = vadd.f32 %v2978_v61, %v294_v35  ;;  %v296_v37 = vpop.f32.mrb[19].mxu0  ;;  %2042 = vmatmul.mubr.f32.gmra.mrb[16].mxu1 %v381_v34 }
 0x186   :  { %2044 = vmatprep.mubr.msk.f32.mxu1 %vm2718_vm0, %v2719_v57 }
 0x187   :  { %v382_v38 = vmax.f32 %v295_v36, 0.0 }
 0x188   :  { %v299_v39 = vpop.f32.mrb[20].mxu0 }
 0x189   :  { %v300_v40 = vadd.f32 %v2978_v61, %v299_v39  ;;  %v301_v41 = vpop.f32.mrb[21].mxu0  ;;  %2045 = vmatmul.mubr.f32.gmra.mrb[18].mxu1 %v382_v38  ;;  %v886_v38 = vld [vmem:[#allocation7] sm:$0xff]  ;;  %v887_v39 = vld [vmem:[#allocation7 + $0x8] sm:$0xff] }
 0x18a   :  { %2047 = vmatprep.mubr.msk.f32.mxu1 %vm2718_vm0, %v2719_v57  ;;  %v888_v41 = vld [vmem:[#allocation7 + $0x10] sm:$0xff] }
 0x18b   :  { %v383_v42 = vmax.f32 %v300_v40, 0.0  ;;  %v2248_v40 = vpack.c.bf16 %v887_v39, %v886_v38 }
 0x18c   :  { %v304_v43 = vpop.f32.mrb[22].mxu0 }
 0x18d   :  { %v305_v44 = vadd.f32 %v2978_v61, %v304_v43  ;;  %v306_v45 = vpop.f32.mrb[23].mxu0  ;;  %2048 = vmatmul.mubr.f32.gmra.mrb[20].mxu1 %v383_v42  ;;  %v889_v42 = vld [vmem:[#allocation7 + $0x18] sm:$0x3f]  ;;  %v3059_v43 = vld [vmem:[%s3538_s5] ss:$0 sm:$0xff]  ;;  %s2721_s5 = smov 64  }
 0x18e   :  { %2050 = vmatprep.mubr.msk.f32.mxu1 %vm2718_vm0, %v2719_v57  ;;  %2249 = vmatpush3.bf16.msra.mxu1 %v2248_v40 }
 0x18f   :  { %v384_v46 = vmax.f32 %v305_v44, 0.0  ;;  %2250 = vmatprep.subr.bf16.mxu1 %v2717_v0 }
 0x190   :  { %v309_v47 = vpop.f32.mrb[24].mxu0 }
 0x191   :  { %v310_v48 = vadd.f32 %v2978_v61, %v309_v47  ;;  %v311_v49 = vpop.f32.mrb[25].mxu0  ;;  %2051 = vmatmul.mubr.f32.gmra.mrb[22].mxu1 %v384_v46 }
 0x192   :  { %2053 = vmatprep.mubr.msk.f32.mxu1 %vm2718_vm0, %v2719_v57 }
 0x193   :  { %v385_v50 = vmax.f32 %v310_v48, 0.0 }
 0x194   :  { %v314_v51 = vpop.f32.mrb[26].mxu0 }
 0x195   :  { %v315_v52 = vadd.f32 %v2978_v61, %v314_v51  ;;  %v316_v53 = vpop.f32.mrb[27].mxu0  ;;  %2054 = vmatmul.mubr.f32.gmra.mrb[24].mxu1 %v385_v50 }
 0x196   :  { %2056 = vmatprep.mubr.msk.f32.mxu1 %vm2718_vm0, %v2719_v57 }
 0x197   :  { %v386_v54 = vmax.f32 %v315_v52, 0.0 }
 0x198   :  { %v319_v55 = vpop.f32.mrb[28].mxu0 }
 0x199   :  { %v320_v56 = vadd.f32 %v2978_v61, %v319_v55  ;;  %v321_v58 = vpop.f32.mrb[29].mxu0  ;;  %2057 = vmatmul.mubr.f32.gmra.mrb[26].mxu1 %v386_v54 }
 0x19a   :  { %2059 = vmatprep.mubr.msk.f32.mxu1 %vm2718_vm0, %v2719_v57 }
 0x19b   :  { %v387_v59 = vmax.f32 %v320_v56, 0.0 }
 0x19c   :  { %v324_v60 = vpop.f32.mrb[30].mxu0 }
 0x19d   :  { %v325_v62 = vadd.f32 %v2978_v61, %v324_v60  ;;  %v326_v63 = vpop.f32.mrb[31].mxu0  ;;  %2060 = vmatmul.mubr.f32.gmra.mrb[28].mxu1 %v387_v59 }
 0x19e   :  { %2062 = vmatprep.mubr.msk.f32.mxu1 %vm2718_vm0, %v2719_v57 }
 0x19f   :  { %v388_v1 = vmax.f32 %v325_v62, 0.0 }
 0x1a0   :  { %v329_v2 = vpop.f32.mrb[32].mxu0 }
 0x1a1   :  { %v330_v3 = vadd.f32 %v2978_v61, %v329_v2  ;;  %v331_v4 = vpop.f32.mrb[33].mxu0  ;;  %2063 = vmatmul.mubr.f32.gmra.mrb[30].mxu1 %v388_v1 }
 0x1a2   :  { %2065 = vmatprep.mubr.msk.f32.mxu1 %vm2718_vm0, %v2719_v57 }
 0x1a3   :  { %v389_v5 = vmax.f32 %v330_v3, 0.0 }
 0x1a4   :  { %v334_v6 = vpop.f32.mrb[34].mxu0 }
 0x1a5   :  { %v335_v7 = vadd.f32 %v2978_v61, %v334_v6  ;;  %v336_v8 = vpop.f32.mrb[35].mxu0  ;;  %2066 = vmatmul.mubr.f32.gmra.mrb[32].mxu1 %v389_v5 }
 0x1a6   :  { %2068 = vmatprep.mubr.msk.f32.mxu1 %vm2718_vm0, %v2719_v57 }
 0x1a7   :  { %v390_v9 = vmax.f32 %v335_v7, 0.0 }
 0x1a8   :  { %v339_v10 = vpop.f32.mrb[36].mxu0 }
 0x1a9   :  { %v340_v11 = vadd.f32 %v2978_v61, %v339_v10  ;;  %v341_v12 = vpop.f32.mrb[37].mxu0  ;;  %2069 = vmatmul.mubr.f32.gmra.mrb[34].mxu1 %v390_v9 }
 0x1aa   :  { %2071 = vmatprep.mubr.msk.f32.mxu1 %vm2718_vm0, %v2719_v57 }
 0x1ab   :  { %v391_v13 = vmax.f32 %v340_v11, 0.0 }
 0x1ac   :  { %v344_v14 = vpop.f32.mrb[38].mxu0 }
 0x1ad   :  { %v345_v15 = vadd.f32 %v2978_v61, %v344_v14  ;;  %v346_v16 = vpop.f32.mrb[39].mxu0  ;;  %2072 = vmatmul.mubr.f32.gmra.mrb[36].mxu1 %v391_v13 }
 0x1ae   :  { %2074 = vmatprep.mubr.msk.f32.mxu1 %vm2718_vm0, %v2719_v57 }
 0x1af   :  { %v392_v17 = vmax.f32 %v345_v15, 0.0 }
 0x1b0   :  { %v349_v18 = vpop.f32.mrb[40].mxu0 }
 0x1b1   :  { %v350_v19 = vadd.f32 %v2978_v61, %v349_v18  ;;  %v351_v20 = vpop.f32.mrb[41].mxu0  ;;  %2075 = vmatmul.mubr.f32.gmra.mrb[38].mxu1 %v392_v17 }
 0x1b2   :  { %2077 = vmatprep.mubr.msk.f32.mxu1 %vm2718_vm0, %v2719_v57 }
 0x1b3   :  { %v393_v21 = vmax.f32 %v350_v19, 0.0 }
 0x1b4   :  { %v354_v22 = vpop.f32.mrb[42].mxu0 }
 0x1b5   :  { %v355_v23 = vadd.f32 %v2978_v61, %v354_v22  ;;  %v356_v24 = vpop.f32.mrb[43].mxu0  ;;  %2078 = vmatmul.mubr.f32.gmra.mrb[40].mxu1 %v393_v21 }
 0x1b6   :  { %2080 = vmatprep.mubr.msk.f32.mxu1 %vm2718_vm0, %v2719_v57 }
 0x1b7   :  { %v394_v25 = vmax.f32 %v355_v23, 0.0 }
 0x1b8   :  { %v359_v26 = vpop.f32.mrb[44].mxu0 }
 0x1b9   :  { %v360_v27 = vadd.f32 %v2978_v61, %v359_v26  ;;  %v361_v28 = vpop.f32.mrb[45].mxu0  ;;  %2081 = vmatmul.mubr.f32.gmra.mrb[42].mxu1 %v394_v25 }
 0x1ba   :  { %2083 = vmatprep.mubr.msk.f32.mxu1 %vm2718_vm0, %v2719_v57 }
 0x1bb   :  { %v395_v29 = vmax.f32 %v360_v27, 0.0 }
 0x1bc   :  { %v364_v30 = vpop.f32.mrb[46].mxu0 }
 0x1bd   :  { %v365_v31 = vadd.f32 %v2978_v61, %v364_v30  ;;  %v366_v32 = vpop.f32.mrb[47].mxu0  ;;  %2084 = vmatmul.mubr.f32.gmra.mrb[44].mxu1 %v395_v29 }
 0x1be   :  { %2086 = vmatprep.mubr.msk.f32.mxu1 %vm2718_vm0, %v2719_v57 }
 0x1bf   :  { %v396_v33 = vmax.f32 %v365_v31, 0.0 }
 0x1c0   :  { %v369_v34 = vpop.f32.mrb[48].mxu0 }
 0x1c1   :  { %v370_v35 = vadd.f32 %v2978_v61, %v369_v34  ;;  %v371_v36 = vpop.f32.mrb[49].mxu0  ;;  %2087 = vmatmul.mubr.f32.gmra.mrb[46].mxu1 %v396_v33  ;;  %v2251_v61 = vpack.c.bf16 %v889_v42, %v888_v41 }
 0x1c2   :  { %2089 = vmatprep.mubr.msk.f32.mxu1 %vm2718_vm0, %v2719_v57 }
 0x1c3   :  { %v397_v37 = vmax.f32 %v370_v35, 0.0  ;;  %2253 = vmatpush3.bf16.msk.msra.mxu1 %vm2252_vm3, %v2251_v61 }
 0x1c5   :  { %2090 = vmatmul.mubr.f32.gmra.mrb[48].mxu1 %v397_v37 }
 0x1c6   :  { %2100 = vmatprep.mubr.msk.f32.mxu1 %vm2718_vm0, %v2719_v57 }
 0x238   :  { %v487_v44 = vpop.f32.mrb[0].mxu1 }
 0x239   :  { %v3062_v45 = vadd.f32 %v3059_v43, %v487_v44  ;;  %v2019_v46 = vpop.f32.mrb[1].mxu1 }
 0x23b   :  { %611 = vst [vmem:[#allocation11] sm:$0xff] %v3062_v45  ;;  %v661_v0 = vmul.f32 0.5, %v3062_v45 }
 0x23c   :  { %v492_v47 = vpop.f32.mrb[2].mxu1 }
 0x23d   :  { %v686_v48 = vmul.f32 1.442695, %v661_v0  ;;  %v3067_v49 = vadd.f32 %v3059_v43, %v492_v47  ;;  %v2022_v50 = vpop.f32.mrb[3].mxu1 }
 0x23f   :  { %2317 = vpow2.f32 %v686_v48  ;;  %612 = vst [vmem:[#allocation11 + $0x8] sm:$0xff] %v3067_v49  ;;  %v662_v51 = vmul.f32 0.5, %v3067_v49 }
 0x240   :  { %v497_v52 = vpop.f32.mrb[4].mxu1 }
 0x241   :  { %v688_v53 = vmul.f32 1.442695, %v662_v51  ;;  %v3072_v54 = vadd.f32 %v3059_v43, %v497_v52  ;;  %v2025_v55 = vpop.f32.mrb[5].mxu1 }
 0x243   :  { %2319 = vpow2.f32 %v688_v53  ;;  %613 = vst [vmem:[#allocation11 + $0x10] sm:$0xff] %v3072_v54  ;;  %v663_v56 = vmul.f32 0.5, %v3072_v54 }
 0x244   :  { %v502_v58 = vpop.f32.mrb[6].mxu1 }
 0x245   :  { %v690_v59 = vmul.f32 1.442695, %v663_v56  ;;  %v3077_v60 = vadd.f32 %v3059_v43, %v502_v58  ;;  %v2028_v62 = vpop.f32.mrb[7].mxu1 }
 0x247   :  { %2321 = vpow2.f32 %v690_v59  ;;  %614 = vst [vmem:[#allocation11 + $0x18] sm:$0xff] %v3077_v60  ;;  %v664_v63 = vmul.f32 0.5, %v3077_v60 }
 0x248   :  { %v507_v1 = vpop.f32.mrb[8].mxu1 }
 0x249   :  { %v2318_v2 = vpop.eup %2317  ;;  %v692_v3 = vmul.f32 1.442695, %v664_v63  ;;  %v3082_v4 = vadd.f32 %v3059_v43, %v507_v1  ;;  %v2031_v5 = vpop.f32.mrb[9].mxu1 }
 0x24a   :  { %761 = vrot.lane.b32.xlu0 %v2318_v2, %s2721_s5 }
 0x24b   :  { %2323 = vpow2.f32 %v692_v3  ;;  %615 = vst [vmem:[#allocation11 + $0x20] sm:$0xff] %v3082_v4  ;;  %v665_v6 = vmul.f32 0.5, %v3082_v4 }
 0x24c   :  { %v512_v7 = vpop.f32.mrb[10].mxu1 }
 0x24d   :  { %v2320_v8 = vpop.eup %2319  ;;  %v694_v9 = vmul.f32 1.442695, %v665_v6  ;;  %v3088_v10 = vadd.f32 %v3059_v43, %v512_v7  ;;  %v2034_v11 = vpop.f32.mrb[11].mxu1 }
 0x24e   :  { %763 = vrot.lane.b32.xlu0 %v2320_v8, %s2721_s5 }
 0x24f   :  { %2325 = vpow2.f32 %v694_v9  ;;  %616 = vst [vmem:[#allocation11 + $0x28] sm:$0xff] %v3088_v10  ;;  %v666_v12 = vmul.f32 0.5, %v3088_v10 }
 0x250   :  { %v517_v13 = vpop.f32.mrb[12].mxu1 }
 0x251   :  { %v2322_v14 = vpop.eup %2321  ;;  %v696_v15 = vmul.f32 1.442695, %v666_v12  ;;  %v3094_v16 = vadd.f32 %v3059_v43, %v517_v13  ;;  %v2037_v17 = vpop.f32.mrb[13].mxu1 }
 0x252   :  { %765 = vrot.lane.b32.xlu1 %v2322_v14, %s2721_s5 }
 0x253   :  { %2327 = vpow2.f32 %v696_v15  ;;  %617 = vst [vmem:[#allocation11 + $0x30] sm:$0xff] %v3094_v16  ;;  %v667_v18 = vmul.f32 0.5, %v3094_v16 }
 0x254   :  { %v522_v19 = vpop.f32.mrb[14].mxu1 }
 0x255   :  { %v2324_v20 = vpop.eup %2323  ;;  %v698_v21 = vmul.f32 1.442695, %v667_v18  ;;  %v3100_v22 = vadd.f32 %v3059_v43, %v522_v19  ;;  %v2040_v23 = vpop.f32.mrb[15].mxu1 }
 0x256   :  { %767 = vrot.lane.b32.xlu1 %v2324_v20, %s2721_s5 }
 0x257   :  { %2329 = vpow2.f32 %v698_v21  ;;  %618 = vst [vmem:[#allocation11 + $0x38] sm:$0xff] %v3100_v22  ;;  %v668_v24 = vmul.f32 0.5, %v3100_v22 }
 0x258   :  { %v527_v25 = vpop.f32.mrb[16].mxu1 }
 0x259   :  { %v2326_v26 = vpop.eup %2325  ;;  %v700_v27 = vmul.f32 1.442695, %v668_v24  ;;  %v3106_v28 = vadd.f32 %v3059_v43, %v527_v25  ;;  %v2043_v29 = vpop.f32.mrb[17].mxu1 }
 0x25a   :  { %769 = vrot.lane.b32.xlu0 %v2326_v26, %s2721_s5 }
 0x25b   :  { %2331 = vpow2.f32 %v700_v27  ;;  %619 = vst [vmem:[#allocation11 + $0x40] sm:$0xff] %v3106_v28  ;;  %v669_v30 = vmul.f32 0.5, %v3106_v28 }
 0x25c   :  { %v532_v31 = vpop.f32.mrb[18].mxu1 }
 0x25d   :  { %v2328_v32 = vpop.eup %2327  ;;  %v702_v33 = vmul.f32 1.442695, %v669_v30  ;;  %v3112_v34 = vadd.f32 %v3059_v43, %v532_v31  ;;  %v2046_v35 = vpop.f32.mrb[19].mxu1 }
 0x25e   :  { %771 = vrot.lane.b32.xlu1 %v2328_v32, %s2721_s5 }
 0x25f   :  { %2333 = vpow2.f32 %v702_v33  ;;  %620 = vst [vmem:[#allocation11 + $0x48] sm:$0xff] %v3112_v34  ;;  %v670_v36 = vmul.f32 0.5, %v3112_v34 }
 0x260   :  { %v537_v37 = vpop.f32.mrb[20].mxu1 }
 0x261   :  { %v2330_v38 = vpop.eup %2329  ;;  %v704_v39 = vmul.f32 1.442695, %v670_v36  ;;  %v3118_v40 = vadd.f32 %v3059_v43, %v537_v37  ;;  %v2049_v41 = vpop.f32.mrb[21].mxu1 }
 0x262   :  { %773 = vrot.lane.b32.xlu0 %v2330_v38, %s2721_s5 }
 0x263   :  { %2335 = vpow2.f32 %v704_v39  ;;  %621 = vst [vmem:[#allocation11 + $0x50] sm:$0xff] %v3118_v40  ;;  %v671_v42 = vmul.f32 0.5, %v3118_v40 }
 0x264   :  { %v542_v61 = vpop.f32.mrb[22].mxu1 }
 0x265   :  { %v2332_v44 = vpop.eup %2331  ;;  %v706_v46 = vmul.f32 1.442695, %v671_v42  ;;  %v3124_v0 = vadd.f32 %v3059_v43, %v542_v61  ;;  %v2052_v47 = vpop.f32.mrb[23].mxu1 }
 0x266   :  { %775 = vrot.lane.b32.xlu1 %v2332_v44, %s2721_s5 }
 0x267   :  { %2337 = vpow2.f32 %v706_v46  ;;  %622 = vst [vmem:[#allocation11 + $0x58] sm:$0xff] %v3124_v0  ;;  %v672_v48 = vmul.f32 0.5, %v3124_v0 }
 0x268   :  { %v547_v50 = vpop.f32.mrb[24].mxu1 }
 0x269   :  { %v2334_v51 = vpop.eup %2333  ;;  %v708_v52 = vmul.f32 1.442695, %v672_v48  ;;  %v3130_v53 = vadd.f32 %v3059_v43, %v547_v50  ;;  %v2055_v55 = vpop.f32.mrb[25].mxu1 }
 0x26a   :  { %777 = vrot.lane.b32.xlu0 %v2334_v51, %s2721_s5 }
 0x26b   :  { %2339 = vpow2.f32 %v708_v52  ;;  %623 = vst [vmem:[#allocation11 + $0x60] sm:$0xff] %v3130_v53  ;;  %v673_v56 = vmul.f32 0.5, %v3130_v53 }
 0x26c   :  { %v552_v58 = vpop.f32.mrb[26].mxu1 }
 0x26d   :  { %v2336_v59 = vpop.eup %2335  ;;  %v710_v62 = vmul.f32 1.442695, %v673_v56  ;;  %v3136_v63 = vadd.f32 %v3059_v43, %v552_v58  ;;  %v2058_v1 = vpop.f32.mrb[27].mxu1 }
 0x26e   :  { %779 = vrot.lane.b32.xlu1 %v2336_v59, %s2721_s5 }
 0x26f   :  { %2341 = vpow2.f32 %v710_v62  ;;  %624 = vst [vmem:[#allocation11 + $0x68] sm:$0xff] %v3136_v63  ;;  %v674_v2 = vmul.f32 0.5, %v3136_v63 }
 0x270   :  { %v557_v3 = vpop.f32.mrb[28].mxu1 }
 0x271   :  { %v2338_v5 = vpop.eup %2337  ;;  %v712_v6 = vmul.f32 1.442695, %v674_v2  ;;  %v3142_v7 = vadd.f32 %v3059_v43, %v557_v3  ;;  %v2061_v8 = vpop.f32.mrb[29].mxu1 }
 0x272   :  { %781 = vrot.lane.b32.xlu0 %v2338_v5, %s2721_s5 }
 0x273   :  { %2343 = vpow2.f32 %v712_v6  ;;  %625 = vst [vmem:[#allocation11 + $0x70] sm:$0xff] %v3142_v7  ;;  %v675_v9 = vmul.f32 0.5, %v3142_v7 }
 0x274   :  { %v562_v11 = vpop.f32.mrb[30].mxu1 }
 0x275   :  { %v2340_v12 = vpop.eup %2339  ;;  %v714_v13 = vmul.f32 1.442695, %v675_v9  ;;  %v3148_v14 = vadd.f32 %v3059_v43, %v562_v11  ;;  %v2064_v15 = vpop.f32.mrb[31].mxu1 }
 0x276   :  { %783 = vrot.lane.b32.xlu1 %v2340_v12, %s2721_s5 }
 0x277   :  { %2345 = vpow2.f32 %v714_v13  ;;  %626 = vst [vmem:[#allocation11 + $0x78] sm:$0xff] %v3148_v14  ;;  %v676_v17 = vmul.f32 0.5, %v3148_v14 }
 0x278   :  { %v567_v18 = vpop.f32.mrb[32].mxu1 }
 0x279   :  { %v2342_v19 = vpop.eup %2341  ;;  %v716_v20 = vmul.f32 1.442695, %v676_v17  ;;  %v3154_v21 = vadd.f32 %v3059_v43, %v567_v18  ;;  %v2067_v23 = vpop.f32.mrb[33].mxu1 }
 0x27a   :  { %785 = vrot.lane.b32.xlu0 %v2342_v19, %s2721_s5 }
 0x27b   :  { %2347 = vpow2.f32 %v716_v20  ;;  %627 = vst [vmem:[#allocation11 + $0x80] sm:$0xff] %v3154_v21  ;;  %v677_v24 = vmul.f32 0.5, %v3154_v21 }
 0x27c   :  { %v572_v25 = vpop.f32.mrb[34].mxu1 }
 0x27d   :  { %v2344_v26 = vpop.eup %2343  ;;  %v718_v27 = vmul.f32 1.442695, %v677_v24  ;;  %v3160_v29 = vadd.f32 %v3059_v43, %v572_v25  ;;  %v2070_v30 = vpop.f32.mrb[35].mxu1 }
 0x27e   :  { %787 = vrot.lane.b32.xlu1 %v2344_v26, %s2721_s5 }
 0x27f   :  { %2349 = vpow2.f32 %v718_v27  ;;  %628 = vst [vmem:[#allocation11 + $0x88] sm:$0xff] %v3160_v29  ;;  %v678_v31 = vmul.f32 0.5, %v3160_v29 }
 0x280   :  { %v577_v32 = vpop.f32.mrb[36].mxu1 }
 0x281   :  { %v2346_v33 = vpop.eup %2345  ;;  %v720_v35 = vmul.f32 1.442695, %v678_v31  ;;  %v3166_v36 = vadd.f32 %v3059_v43, %v577_v32  ;;  %v2073_v37 = vpop.f32.mrb[37].mxu1 }
 0x282   :  { %789 = vrot.lane.b32.xlu0 %v2346_v33, %s2721_s5  ;;  %v1193_v33 = vld [vmem:[#allocation8 + $0x8] sm:$0xff]  ;;  %v1192_v37 = vld [vmem:[#allocation8] sm:$0xff] }
 0x283   :  { %2351 = vpow2.f32 %v720_v35  ;;  %629 = vst [vmem:[#allocation11 + $0x90] sm:$0xff] %v3166_v36  ;;  %v679_v38 = vmul.f32 0.5, %v3166_v36  ;;  %v1195_v35 = vld [vmem:[#allocation8 + $0x18] sm:$0xff] }
 0x284   :  { %v582_v39 = vpop.f32.mrb[38].mxu1 }
 0x285   :  { %v2348_v41 = vpop.eup %2347  ;;  %v722_v42 = vmul.f32 1.442695, %v679_v38  ;;  %v3172_v61 = vadd.f32 %v3059_v43, %v582_v39  ;;  %v2076_v44 = vpop.f32.mrb[39].mxu1  ;;  %v1194_v38 = vld [vmem:[#allocation8 + $0x10] sm:$0xff]  ;;  %v1197_v39 = vld [vmem:[#allocation8 + $0x28] sm:$0xff] }
 0x286   :  { %791 = vrot.lane.b32.xlu1 %v2348_v41, %s2721_s5  ;;  %v1199_v41 = vld [vmem:[#allocation8 + $0x38] sm:$0xff] }
 0x287   :  { %2353 = vpow2.f32 %v722_v42  ;;  %630 = vst [vmem:[#allocation11 + $0x98] sm:$0xff] %v3172_v61  ;;  %v680_v46 = vmul.f32 0.5, %v3172_v61  ;;  %v3209_v42 = vpack.c.bf16 %v1194_v38, %v1192_v37  ;;  %v3211_v44 = vpack.c.bf16 %v1199_v41, %v1197_v39  ;;  %v1218_v38 = vld [vmem:[#allocation8 + $0xd0] sm:$0xff] }
 0x288   :  { %v587_v47 = vpop.f32.mrb[40].mxu1  ;;  %v636_v41 = vld [vmem:[%s3534_s1] sm:$0xff] }
 0x289   :  { %v2350_v48 = vpop.eup %2349  ;;  %v724_v50 = vmul.f32 1.442695, %v680_v46  ;;  %v3178_v51 = vadd.f32 %v3059_v43, %v587_v47  ;;  %v2079_v52 = vpop.f32.mrb[41].mxu1  ;;  %v1196_v46 = vld [vmem:[#allocation8 + $0x20] sm:$0xff]  ;;  %v1198_v47 = vld [vmem:[#allocation8 + $0x30] sm:$0xff] }
 0x28a   :  { %793 = vrot.lane.b32.xlu0 %v2350_v48, %s2721_s5  ;;  %v1201_v48 = vld [vmem:[#allocation8 + $0x48] sm:$0xff] }
 0x28b   :  { %2355 = vpow2.f32 %v724_v50  ;;  %631 = vst [vmem:[#allocation11 + $0xa0] sm:$0xff] %v3178_v51  ;;  %v681_v55 = vmul.f32 0.5, %v3178_v51  ;;  %v1203_v50 = vld [vmem:[#allocation8 + $0x58] sm:$0xff] }
 0x28c   :  { %v592_v56 = vpop.f32.mrb[42].mxu1 }
 0x28d   :  { %v2352_v58 = vpop.eup %2351  ;;  %v726_v59 = vmul.f32 1.442695, %v681_v55  ;;  %v3184_v62 = vadd.f32 %v3059_v43, %v592_v56  ;;  %v2082_v1 = vpop.f32.mrb[43].mxu1  ;;  %v2260_v55 = vpack.c.bf16 %v1198_v47, %v1196_v46  ;;  %v2262_v56 = vpack.c.bf16 %v1203_v50, %v1201_v48  ;;  %v637_v48 = vld [vmem:[%s3534_s1 + $0x8] sm:$0xff] }
 0x28e   :  { %795 = vrot.lane.b32.xlu1 %v2352_v58, %s2721_s5  ;;  %v1200_v58 = vld [vmem:[#allocation8 + $0x40] sm:$0xff]  ;;  %v1205_v1 = vld [vmem:[#allocation8 + $0x68] sm:$0xff] }
 0x28f   :  { %2357 = vpow2.f32 %v726_v59  ;;  %632 = vst [vmem:[#allocation11 + $0xa8] sm:$0xff] %v3184_v62  ;;  %v682_v2 = vmul.f32 0.5, %v3184_v62  ;;  %v1202_v59 = vld [vmem:[#allocation8 + $0x50] sm:$0xff] }
 0x290   :  { %v597_v3 = vpop.f32.mrb[44].mxu1 }
 0x291   :  { %v2354_v5 = vpop.eup %2353  ;;  %v728_v6 = vmul.f32 1.442695, %v682_v2  ;;  %v3190_v8 = vadd.f32 %v3059_v43, %v597_v3  ;;  %v2085_v9 = vpop.f32.mrb[45].mxu1  ;;  %v1207_v2 = vld [vmem:[#allocation8 + $0x78] sm:$0xff] }
 0x292   :  { %797 = vrot.lane.b32.xlu0 %v2354_v5, %s2721_s5  ;;  %v2264_v5 = vpack.c.bf16 %v1202_v59, %v1200_v58  ;;  %v1204_v9 = vld [vmem:[#allocation8 + $0x60] sm:$0xff] }
 0x293   :  { %2359 = vpow2.f32 %v728_v6  ;;  %633 = vst [vmem:[#allocation11 + $0xb0] sm:$0xff] %v3190_v8  ;;  %v683_v11 = vmul.f32 0.5, %v3190_v8  ;;  %v2266_v6 = vpack.c.bf16 %v1207_v2, %v1205_v1  ;;  %v638_v59 = vld [vmem:[%s3534_s1 + $0x10] sm:$0xff] }
 0x294   :  { %v602_v12 = vpop.f32.mrb[46].mxu1 }
 0x295   :  { %v2356_v13 = vpop.eup %2355  ;;  %v730_v15 = vmul.f32 1.442695, %v683_v11  ;;  %v3196_v17 = vadd.f32 %v3059_v43, %v602_v12  ;;  %v2088_v18 = vpop.f32.mrb[47].mxu1  ;;  %v1206_v11 = vld [vmem:[#allocation8 + $0x70] sm:$0xff]  ;;  %v1209_v12 = vld [vmem:[#allocation8 + $0x88] sm:$0xff] }
 0x296   :  { %799 = vrot.lane.b32.xlu1 %v2356_v13, %s2721_s5  ;;  %v1211_v13 = vld [vmem:[#allocation8 + $0x98] sm:$0xff] }
 0x297   :  { %2361 = vpow2.f32 %v730_v15  ;;  %634 = vst [vmem:[#allocation11 + $0xb8] sm:$0xff] %v3196_v17  ;;  %v684_v19 = vmul.f32 0.5, %v3196_v17  ;;  %v2268_v15 = vpack.c.bf16 %v1206_v11, %v1204_v9  ;;  %v2270_v18 = vpack.c.bf16 %v1211_v13, %v1209_v12 }
 0x298   :  { %v607_v20 = vpop.f32.mrb[48].mxu1 }
 0x299   :  { %v2358_v23 = vpop.eup %2357  ;;  %v732_v24 = vmul.f32 1.442695, %v684_v19  ;;  %v3202_v25 = vadd.f32 %v3059_v43, %v607_v20  ;;  %v2091_v26 = vpop.f32.mrb[49].mxu1  ;;  %v2254_v43 = vpack.c.bf16 %v1195_v35, %v1193_v33  ;;  %v1208_v19 = vld [vmem:[#allocation8 + $0x80] sm:$0xff]  ;;  %v1210_v20 = vld [vmem:[#allocation8 + $0x90] sm:$0xff]  ;;  %v1219_v33 = vld [vmem:[#allocation8 + $0xd8] sm:$0xff] }
 0x29a   :  { %801 = vrot.lane.b32.xlu0 %v2358_v23, %s2721_s5  ;;  %v1213_v23 = vld [vmem:[#allocation8 + $0xa8] sm:$0xff]  ;;  %v2272_v26 = vpack.c.bf16 %v1210_v20, %v1208_v19 }
 0x29b   :  { %2363 = vpow2.f32 %v732_v24  ;;  %635 = vst [vmem:[#allocation11 + $0xc0] sm:$0xff] %v3202_v25  ;;  %v685_v27 = vmul.f32 0.5, %v3202_v25  ;;  %2255 = vmatprep.subr.bf16.mxu0 %v2254_v43  ;;  %2286 = vmatprep.subr.bf16.mxu1 %v2254_v43  ;;  %v1215_v24 = vld [vmem:[#allocation8 + $0xb8] sm:$0xff]  ;;  %v1216_v43 = vld [vmem:[#allocation8 + $0xc0] sm:$0xff] }
 0x29c   :  { %2257 = vmatpush1.bf16.msra.mxu0 %v3209_v42  ;;  %v2280_v39 = vpack.c.bf16 %v1218_v38, %v1216_v43 }
 0x29d   :  { %v2360_v30 = vpop.eup %2359  ;;  %v734_v31 = vmul.f32 1.442695, %v685_v27  ;;  %2259 = vmatprep.subr.bf16.mxu0 %v3211_v44  ;;  %v2274_v27 = vpack.c.bf16 %v1215_v24, %v1213_v23 }
 0x29e   :  { %803 = vrot.lane.b32.xlu1 %v2360_v30, %s2721_s5  ;;  %v1212_v30 = vld [vmem:[#allocation8 + $0xa0] sm:$0xff] }
 0x29f   :  { %2365 = vpow2.f32 %v734_v31  ;;  %v1214_v31 = vld [vmem:[#allocation8 + $0xb0] sm:$0xff] }
 0x2a0   :  { %2261 = vmatpush1.bf16.msra.mxu0 %v2260_v55  ;;  %v2276_v35 = vpack.c.bf16 %v1214_v31, %v1212_v30 }
 0x2a1   :  { %v2362_v32 = vpop.eup %2361  ;;  %2263 = vmatprep.subr.bf16.mxu0 %v2262_v56 }
 0x2a2   :  { %805 = vrot.lane.b32.xlu0 %v2362_v32, %s2721_s5  ;;  %v1217_v32 = vld [vmem:[#allocation8 + $0xc8] sm:$0xff] }
 0x2a3   :  { %v2278_v37 = vpack.c.bf16 %v1219_v33, %v1217_v32 }
 0x2a4   :  { %2265 = vmatpush1.bf16.msra.mxu0 %v2264_v5 }
 0x2a5   :  { %v2364_v52 = vpop.eup %2363  ;;  %2267 = vmatprep.subr.bf16.mxu0 %v2266_v6 }
 0x2a6   :  { %807 = vrot.lane.b32.xlu1 %v2364_v52, %s2721_s5 }
 0x2a8   :  { %2269 = vmatpush1.bf16.msra.mxu0 %v2268_v15 }
 0x2a9   :  { %v2366_v3 = vpop.eup %2365  ;;  %2271 = vmatprep.subr.bf16.mxu0 %v2270_v18 }
 0x2aa   :  { %809 = vrot.lane.b32.xlu0 %v2366_v3, %s2721_s5 }
 0x2ac   :  { %2273 = vmatpush1.bf16.msra.mxu0 %v2272_v26 }
 0x2ad   :  { %2275 = vmatprep.subr.bf16.mxu0 %v2274_v27 }
 0x2b0   :  { %2277 = vmatpush1.bf16.msra.mxu0 %v2276_v35 }
 0x2b1   :  { %2279 = vmatprep.subr.bf16.mxu0 %v2278_v37 }
 0x2b4   :  { %2281 = vmatpush1.bf16.msra.mxu0 %v2280_v39 }
 0x2bc   :  { %v762_v46 = vpop.permute.xlu0 %761 }
 0x2bd   :  { %v836_v47 = vmul.f32 %v762_v46, %v636_v41 }
 0x2bf   :  { %v861_v50 = vadd.f32 %v836_v47, %v3062_v45  ;;  %v639_v45 = vld [vmem:[%s3534_s1 + $0x18] sm:$0xff] }
 0x2c0   :  { %v764_v52 = vpop.permute.xlu0 %763 }
 0x2c1   :  { %v837_v58 = vmul.f32 %v764_v52, %v637_v48  ;;  %2101 = vmatmul.mubr.msk.f32.vlgmr.msra.gmra.mrb[50].mxu1 %vm897_vm4, %v861_v50 }
 0x2c2   :  { %2103 = vmatprep.mubr.msk.f32.mxu1 %vm2718_vm0, %v2719_v57  ;;  %2294 = vmatpush1.bf16.msra.mxu1 %v3209_v42 }
 0x2c3   :  { %v862_v1 = vadd.f32 %v837_v58, %v3067_v49  ;;  %2287 = vmatprep.subr.bf16.mxu1 %v3211_v44  ;;  %v640_v49 = vld [vmem:[%s3534_s1 + $0x20] sm:$0xff] }
 0x2c4   :  { %v766_v2 = vpop.permute.xlu1 %765 }
 0x2c5   :  { %v838_v3 = vmul.f32 %v766_v2, %v638_v59  ;;  %2104 = vmatmul.mubr.msk.f32.gmra.mrb[52].mxu1 %vm897_vm4, %v862_v1 }
 0x2c6   :  { %2106 = vmatprep.mubr.msk.f32.mxu1 %vm2718_vm0, %v2719_v57  ;;  %2295 = vmatpush1.bf16.msra.mxu1 %v2260_v55 }
 0x2c7   :  { %v863_v9 = vadd.f32 %v838_v3, %v3072_v54  ;;  %2288 = vmatprep.subr.bf16.mxu1 %v2262_v56  ;;  %v641_v54 = vld [vmem:[%s3534_s1 + $0x28] sm:$0xff] }
 0x2c8   :  { %v768_v42 = vpop.permute.xlu1 %767 }
 0x2c9   :  { %v839_v11 = vmul.f32 %v768_v42, %v639_v45  ;;  %2107 = vmatmul.mubr.msk.f32.gmra.mrb[54].mxu1 %vm897_vm4, %v863_v9 }
 0x2ca   :  { %2109 = vmatprep.mubr.msk.f32.mxu1 %vm2718_vm0, %v2719_v57  ;;  %2296 = vmatpush1.bf16.msra.mxu1 %v2264_v5 }
 0x2cb   :  { %v864_v44 = vadd.f32 %v839_v11, %v3077_v60  ;;  %2289 = vmatprep.subr.bf16.mxu1 %v2266_v6  ;;  %v642_v60 = vld [vmem:[%s3534_s1 + $0x30] sm:$0xff] }
 0x2cc   :  { %v770_v12 = vpop.permute.xlu0 %769 }
 0x2cd   :  { %v840_v55 = vmul.f32 %v770_v12, %v640_v49  ;;  %2110 = vmatmul.mubr.msk.f32.gmra.mrb[56].mxu1 %vm897_vm4, %v864_v44 }
 0x2ce   :  { %2112 = vmatprep.mubr.msk.f32.mxu1 %vm2718_vm0, %v2719_v57  ;;  %2297 = vmatpush1.bf16.msra.mxu1 %v2268_v15 }
 0x2cf   :  { %v865_v56 = vadd.f32 %v840_v55, %v3082_v4  ;;  %2290 = vmatprep.subr.bf16.mxu1 %v2270_v18  ;;  %v643_v4 = vld [vmem:[%s3534_s1 + $0x38] sm:$0xff] }
 0x2d0   :  { %v772_v13 = vpop.permute.xlu1 %771 }
 0x2d1   :  { %v841_v5 = vmul.f32 %v772_v13, %v641_v54  ;;  %2113 = vmatmul.mubr.msk.f32.gmra.mrb[58].mxu1 %vm897_vm4, %v865_v56 }
 0x2d2   :  { %2115 = vmatprep.mubr.msk.f32.mxu1 %vm2718_vm0, %v2719_v57  ;;  %2298 = vmatpush1.bf16.msra.mxu1 %v2272_v26 }
 0x2d3   :  { %v866_v6 = vadd.f32 %v841_v5, %v3088_v10  ;;  %2291 = vmatprep.subr.bf16.mxu1 %v2274_v27  ;;  %v644_v10 = vld [vmem:[%s3534_s1 + $0x40] sm:$0xff] }
 0x2d4   :  { %v774_v19 = vpop.permute.xlu0 %773 }
 0x2d5   :  { %v842_v15 = vmul.f32 %v774_v19, %v642_v60  ;;  %2116 = vmatmul.mubr.msk.f32.gmra.mrb[60].mxu1 %vm897_vm4, %v866_v6 }
 0x2d6   :  { %2118 = vmatprep.mubr.msk.f32.mxu1 %vm2718_vm0, %v2719_v57  ;;  %2299 = vmatpush1.bf16.msra.mxu1 %v2276_v35 }
 0x2d7   :  { %v867_v18 = vadd.f32 %v842_v15, %v3094_v16  ;;  %2292 = vmatprep.subr.bf16.mxu1 %v2278_v37  ;;  %v645_v16 = vld [vmem:[%s3534_s1 + $0x48] sm:$0xff] }
 0x2d8   :  { %v776_v20 = vpop.permute.xlu1 %775 }
 0x2d9   :  { %v843_v23 = vmul.f32 %v776_v20, %v643_v4  ;;  %2119 = vmatmul.mubr.msk.f32.gmra.mrb[62].mxu1 %vm897_vm4, %v867_v18 }
 0x2da   :  { %2121 = vmatprep.mubr.msk.f32.mxu1 %vm2718_vm0, %v2719_v57  ;;  %2300 = vmatpush1.bf16.msra.mxu1 %v2280_v39 }
 0x2db   :  { %v868_v24 = vadd.f32 %v843_v23, %v3100_v22  ;;  %v646_v22 = vld [vmem:[%s3534_s1 + $0x50] sm:$0xff]  ;;  %v1221_v23 = vld [vmem:[#allocation8 + $0xe8] sm:$0xff] }
 0x2dc   :  { %v778_v26 = vpop.permute.xlu0 %777 }
 0x2dd   :  { %v844_v27 = vmul.f32 %v778_v26, %v644_v10  ;;  %2122 = vmatmul.mubr.msk.f32.gmra.mrb[64].mxu1 %vm897_vm4, %v868_v24  ;;  %v1223_v10 = vld [vmem:[#allocation8 + $0xf8] sm:$0xff] }
 0x2de   :  { %2124 = vmatprep.mubr.msk.f32.mxu1 %vm2718_vm0, %v2719_v57  ;;  %v2282_v26 = vpack.c.bf16 %v1223_v10, %v1221_v23 }
 0x2df   :  { %v869_v30 = vadd.f32 %v844_v27, %v3106_v28  ;;  %v647_v28 = vld [vmem:[%s3534_s1 + $0x58] sm:$0xff]  ;;  %v1220_v27 = vld [vmem:[#allocation8 + $0xe0] sm:$0xff] }
 0x2e0   :  { %v780_v31 = vpop.permute.xlu1 %779  ;;  %2283 = vmatprep.subr.bf16.mxu0 %v2282_v26  ;;  %2293 = vmatprep.subr.bf16.mxu1 %v2282_v26 }
 0x2e1   :  { %v845_v32 = vmul.f32 %v780_v31, %v645_v16  ;;  %2125 = vmatmul.mubr.msk.f32.gmra.mrb[66].mxu1 %vm897_vm4, %v869_v30  ;;  %v1222_v16 = vld [vmem:[#allocation8 + $0xf0] sm:$0xff] }
 0x2e2   :  { %2127 = vmatprep.mubr.msk.f32.mxu1 %vm2718_vm0, %v2719_v57 }
 0x2e3   :  { %v870_v33 = vadd.f32 %v845_v32, %v3112_v34  ;;  %v648_v34 = vld [vmem:[%s3534_s1 + $0x60] sm:$0xff]  ;;  %v659_v32 = vld [vmem:[%s3534_s1 + $0xb8] sm:$0xff] }
 0x2e4   :  { %v782_v35 = vpop.permute.xlu0 %781 }
 0x2e5   :  { %v846_v37 = vmul.f32 %v782_v35, %v646_v22  ;;  %2128 = vmatmul.mubr.msk.f32.gmra.mrb[68].mxu1 %vm897_vm4, %v870_v33  ;;  %v660_v35 = vld [vmem:[%s3534_s1 + $0xc0] sm:$0xff] }
 0x2e6   :  { %2130 = vmatprep.mubr.msk.f32.mxu1 %vm2718_vm0, %v2719_v57 }
 0x2e7   :  { %v871_v43 = vadd.f32 %v846_v37, %v3118_v40  ;;  %v649_v40 = vld [vmem:[%s3534_s1 + $0x68] sm:$0xff] }
 0x2e8   :  { %v784_v38 = vpop.permute.xlu1 %783 }
 0x2e9   :  { %v847_v39 = vmul.f32 %v784_v38, %v647_v28  ;;  %2131 = vmatmul.mubr.msk.f32.gmra.mrb[70].mxu1 %vm897_vm4, %v871_v43  ;;  %v3396_v38 = vld [vmem:[%s3540_s7] ss:$0 sm:$0xff] }
 0x2ea   :  { %2133 = vmatprep.mubr.msk.f32.mxu1 %vm2718_vm0, %v2719_v57 }
 0x2eb   :  { %v872_v41 = vadd.f32 %v847_v39, %v3124_v0  ;;  %v650_v0 = vld [vmem:[%s3534_s1 + $0x70] sm:$0xff] }
 0x2ec   :  { %v786_v46 = vpop.permute.xlu0 %785 }
 0x2ed   :  { %v848_v47 = vmul.f32 %v786_v46, %v648_v34  ;;  %2134 = vmatmul.mubr.msk.f32.gmra.mrb[72].mxu1 %vm897_vm4, %v872_v41 }
 0x2ee   :  { %2136 = vmatprep.mubr.msk.f32.mxu1 %vm2718_vm0, %v2719_v57 }
 0x2ef   :  { %v873_v48 = vadd.f32 %v848_v47, %v3130_v53  ;;  %v651_v53 = vld [vmem:[%s3534_s1 + $0x78] sm:$0xff] }
 0x2f0   :  { %v788_v50 = vpop.permute.xlu1 %787 }
 0x2f1   :  { %v849_v52 = vmul.f32 %v788_v50, %v649_v40  ;;  %2137 = vmatmul.mubr.msk.f32.gmra.mrb[74].mxu1 %vm897_vm4, %v873_v48 }
 0x2f2   :  { %2139 = vmatprep.mubr.msk.f32.mxu1 %vm2718_vm0, %v2719_v57 }
 0x2f3   :  { %v874_v58 = vadd.f32 %v849_v52, %v3136_v63  ;;  %v652_v63 = vld [vmem:[%s3534_s1 + $0x80] sm:$0xff] }
 0x2f4   :  { %v790_v59 = vpop.permute.xlu0 %789 }
 0x2f5   :  { %v850_v1 = vmul.f32 %v790_v59, %v650_v0  ;;  %2140 = vmatmul.mubr.msk.f32.gmra.mrb[76].mxu1 %vm897_vm4, %v874_v58 }
 0x2f6   :  { %2142 = vmatprep.mubr.msk.f32.mxu1 %vm2718_vm0, %v2719_v57 }
 0x2f7   :  { %v875_v2 = vadd.f32 %v850_v1, %v3142_v7  ;;  %v653_v7 = vld [vmem:[%s3534_s1 + $0x88] sm:$0xff] }
 0x2f8   :  { %v792_v3 = vpop.permute.xlu1 %791 }
 0x2f9   :  { %v851_v45 = vmul.f32 %v792_v3, %v651_v53  ;;  %2143 = vmatmul.mubr.msk.f32.gmra.mrb[78].mxu1 %vm897_vm4, %v875_v2 }
 0x2fa   :  { %2145 = vmatprep.mubr.msk.f32.mxu1 %vm2718_vm0, %v2719_v57 }
 0x2fb   :  { %v876_v9 = vadd.f32 %v851_v45, %v3148_v14  ;;  %v654_v14 = vld [vmem:[%s3534_s1 + $0x90] sm:$0xff] }
 0x2fc   :  { %v794_v42 = vpop.permute.xlu0 %793 }
 0x2fd   :  { %v852_v11 = vmul.f32 %v794_v42, %v652_v63  ;;  %2146 = vmatmul.mubr.msk.f32.gmra.mrb[80].mxu1 %vm897_vm4, %v876_v9 }
 0x2fe   :  { %2148 = vmatprep.mubr.msk.f32.mxu1 %vm2718_vm0, %v2719_v57 }
 0x2ff   :  { %v877_v49 = vadd.f32 %v852_v11, %v3154_v21  ;;  %v655_v21 = vld [vmem:[%s3534_s1 + $0x98] sm:$0xff] }
 0x300   :  { %v796_v44 = vpop.permute.xlu1 %795 }
 0x301   :  { %v853_v12 = vmul.f32 %v796_v44, %v653_v7  ;;  %2149 = vmatmul.mubr.msk.f32.gmra.mrb[82].mxu1 %vm897_vm4, %v877_v49 }
 0x302   :  { %2151 = vmatprep.mubr.msk.f32.mxu1 %vm2718_vm0, %v2719_v57 }
 0x303   :  { %v878_v55 = vadd.f32 %v853_v12, %v3160_v29  ;;  %v656_v29 = vld [vmem:[%s3534_s1 + $0xa0] sm:$0xff] }
 0x304   :  { %v798_v54 = vpop.permute.xlu0 %797 }
 0x305   :  { %v854_v56 = vmul.f32 %v798_v54, %v654_v14  ;;  %2152 = vmatmul.mubr.msk.f32.gmra.mrb[84].mxu1 %vm897_vm4, %v878_v55 }
 0x306   :  { %2154 = vmatprep.mubr.msk.f32.mxu1 %vm2718_vm0, %v2719_v57 }
 0x307   :  { %v879_v13 = vadd.f32 %v854_v56, %v3166_v36  ;;  %v657_v36 = vld [vmem:[%s3534_s1 + $0xa8] sm:$0xff] }
 0x308   :  { %v800_v5 = vpop.permute.xlu1 %799 }
 0x309   :  { %v855_v60 = vmul.f32 %v800_v5, %v655_v21  ;;  %2155 = vmatmul.mubr.msk.f32.gmra.mrb[86].mxu1 %vm897_vm4, %v879_v13 }
 0x30a   :  { %2157 = vmatprep.mubr.msk.f32.mxu1 %vm2718_vm0, %v2719_v57 }
 0x30b   :  { %v880_v6 = vadd.f32 %v855_v60, %v3172_v61  ;;  %v658_v61 = vld [vmem:[%s3534_s1 + $0xb0] sm:$0xff] }
 0x30c   :  { %v802_v19 = vpop.permute.xlu0 %801 }
 0x30d   :  { %v856_v15 = vmul.f32 %v802_v19, %v656_v29  ;;  %2158 = vmatmul.mubr.msk.f32.gmra.mrb[88].mxu1 %vm897_vm4, %v880_v6 }
 0x30e   :  { %2160 = vmatprep.mubr.msk.f32.mxu1 %vm2718_vm0, %v2719_v57 }
 0x30f   :  { %v881_v4 = vadd.f32 %v856_v15, %v3178_v51  ;;  %v2284_v51 = vpack.c.bf16 %v1222_v16, %v1220_v27 }
 0x310   :  { %v804_v18 = vpop.permute.xlu1 %803 }
 0x311   :  { %v857_v20 = vmul.f32 %v804_v18, %v657_v36  ;;  %2161 = vmatmul.mubr.msk.f32.gmra.mrb[90].mxu1 %vm897_vm4, %v881_v4  ;;  %2285 = vmatpush1.bf16.msra.mxu0 %v2284_v51 }
 0x312   :  { %2163 = vmatprep.mubr.msk.f32.mxu1 %vm2718_vm0, %v2719_v57  ;;  %2301 = vmatpush1.bf16.msra.mxu1 %v2284_v51 }
 0x313   :  { %v882_v24 = vadd.f32 %v857_v20, %v3184_v62 }
 0x314   :  { %v806_v30 = vpop.permute.xlu0 %805 }
 0x315   :  { %v858_v31 = vmul.f32 %v806_v30, %v658_v61  ;;  %2164 = vmatmul.mubr.msk.f32.gmra.mrb[92].mxu1 %vm897_vm4, %v882_v24 }
 0x316   :  { %2166 = vmatprep.mubr.msk.f32.mxu1 %vm2718_vm0, %v2719_v57 }
 0x317   :  { %v883_v22 = vadd.f32 %v858_v31, %v3190_v8 }
 0x318   :  { %v808_v62 = vpop.permute.xlu1 %807 }
 0x319   :  { %v859_v33 = vmul.f32 %v808_v62, %v659_v32  ;;  %2167 = vmatmul.mubr.msk.f32.gmra.mrb[94].mxu1 %vm897_vm4, %v883_v22 }
 0x31a   :  { %2169 = vmatprep.mubr.msk.f32.mxu1 %vm2718_vm0, %v2719_v57 }
 0x31b   :  { %v884_v37 = vadd.f32 %v859_v33, %v3196_v17 }
 0x31c   :  { %v810_v28 = vpop.permute.xlu0 %809 }
 0x31d   :  { %v860_v43 = vmul.f32 %v810_v28, %v660_v35  ;;  %2170 = vmatmul.mubr.msk.f32.gmra.mrb[96].mxu1 %vm897_vm4, %v884_v37 }
 0x31e   :  { %2172 = vmatprep.mubr.msk.f32.mxu1 %vm2718_vm0, %v2719_v57 }
 0x31f   :  { %v885_v8 = vadd.f32 %v860_v43, %v3202_v25 }
 0x321   :  { %2173 = vmatmul.mubr.msk.f32.gmra.mrb[98].mxu1 %vm897_vm4, %v885_v8 }
 0x322   :  { %1426 = vmatprep.mubr.f32.mxu1 %v2719_v57 }
 0x394   :  { %v1043_v39 = vpop.f32.mrb[50].mxu1 }
 0x395   :  { %v1044_v17 = vadd.f32 %v3396_v38, %v1043_v39  ;;  %v2102_v34 = vpop.f32.mrb[51].mxu1 }
 0x397   :  { %v1167_v41 = vmax.f32 %v1044_v17, 0.0 }
 0x398   :  { %v1048_v46 = vpop.f32.mrb[52].mxu1 }
 0x399   :  { %v1049_v47 = vadd.f32 %v3396_v38, %v1048_v46  ;;  %v2105_v40 = vpop.f32.mrb[53].mxu1  ;;  %1301 = vmatmul.mubr.f32.vlgmr.msra.gmra.mrb[50].mxu0 %v1167_v41 }
 0x39a   :  { %1306 = vmatprep.mubr.f32.mxu0 %v2719_v57 }
 0x39b   :  { %v1168_v25 = vmax.f32 %v1049_v47, 0.0 }
 0x39c   :  { %v1053_v48 = vpop.f32.mrb[54].mxu1 }
 0x39d   :  { %v1054_v50 = vadd.f32 %v3396_v38, %v1053_v48  ;;  %v2108_v52 = vpop.f32.mrb[55].mxu1  ;;  %1307 = vmatmul.mubr.f32.gmra.mrb[52].mxu0 %v1168_v25 }
 0x39e   :  { %1312 = vmatprep.mubr.f32.mxu0 %v2719_v57 }
 0x39f   :  { %v1169_v0 = vmax.f32 %v1054_v50, 0.0 }
 0x3a0   :  { %v1058_v58 = vpop.f32.mrb[56].mxu1 }
 0x3a1   :  { %v1059_v59 = vadd.f32 %v3396_v38, %v1058_v58  ;;  %v2111_v1 = vpop.f32.mrb[57].mxu1  ;;  %1313 = vmatmul.mubr.f32.gmra.mrb[54].mxu0 %v1169_v0 }
 0x3a2   :  { %1318 = vmatprep.mubr.f32.mxu0 %v2719_v57 }
 0x3a3   :  { %v1170_v53 = vmax.f32 %v1059_v59, 0.0 }
 0x3a4   :  { %v1063_v2 = vpop.f32.mrb[58].mxu1 }
 0x3a5   :  { %v1064_v3 = vadd.f32 %v3396_v38, %v1063_v2  ;;  %v2114_v45 = vpop.f32.mrb[59].mxu1  ;;  %1319 = vmatmul.mubr.f32.gmra.mrb[56].mxu0 %v1170_v53 }
 0x3a6   :  { %1324 = vmatprep.mubr.f32.mxu0 %v2719_v57 }
 0x3a7   :  { %v1171_v63 = vmax.f32 %v1064_v3, 0.0 }
 0x3a8   :  { %v1068_v9 = vpop.f32.mrb[60].mxu1 }
 0x3a9   :  { %v1069_v42 = vadd.f32 %v3396_v38, %v1068_v9  ;;  %v2117_v11 = vpop.f32.mrb[61].mxu1  ;;  %1325 = vmatmul.mubr.f32.gmra.mrb[58].mxu0 %v1171_v63 }
 0x3aa   :  { %1330 = vmatprep.mubr.f32.mxu0 %v2719_v57 }
 0x3ab   :  { %v1172_v7 = vmax.f32 %v1069_v42, 0.0 }
 0x3ac   :  { %v1073_v49 = vpop.f32.mrb[62].mxu1 }
 0x3ad   :  { %v1074_v44 = vadd.f32 %v3396_v38, %v1073_v49  ;;  %v2120_v12 = vpop.f32.mrb[63].mxu1  ;;  %1331 = vmatmul.mubr.f32.gmra.mrb[60].mxu0 %v1172_v7 }
 0x3ae   :  { %1336 = vmatprep.mubr.f32.mxu0 %v2719_v57 }
 0x3af   :  { %v1173_v14 = vmax.f32 %v1074_v44, 0.0 }
 0x3b0   :  { %v1078_v55 = vpop.f32.mrb[64].mxu1 }
 0x3b1   :  { %v1079_v54 = vadd.f32 %v3396_v38, %v1078_v55  ;;  %v2123_v56 = vpop.f32.mrb[65].mxu1  ;;  %1337 = vmatmul.mubr.f32.gmra.mrb[62].mxu0 %v1173_v14 }
 0x3b2   :  { %1342 = vmatprep.mubr.f32.mxu0 %v2719_v57 }
 0x3b3   :  { %v1174_v21 = vmax.f32 %v1079_v54, 0.0 }
 0x3b4   :  { %v1083_v13 = vpop.f32.mrb[66].mxu1 }
 0x3b5   :  { %v1084_v5 = vadd.f32 %v3396_v38, %v1083_v13  ;;  %v2126_v60 = vpop.f32.mrb[67].mxu1  ;;  %1343 = vmatmul.mubr.f32.gmra.mrb[64].mxu0 %v1174_v21 }
 0x3b6   :  { %1348 = vmatprep.mubr.f32.mxu0 %v2719_v57 }
 0x3b7   :  { %v1175_v29 = vmax.f32 %v1084_v5, 0.0 }
 0x3b8   :  { %v1088_v6 = vpop.f32.mrb[68].mxu1 }
 0x3b9   :  { %v1089_v19 = vadd.f32 %v3396_v38, %v1088_v6  ;;  %v2129_v15 = vpop.f32.mrb[69].mxu1  ;;  %1349 = vmatmul.mubr.f32.gmra.mrb[66].mxu0 %v1175_v29 }
 0x3ba   :  { %1354 = vmatprep.mubr.f32.mxu0 %v2719_v57  ;;  %v1226_v15 = vlaneseq }
 0x3bb   :  { %v1176_v36 = vmax.f32 %v1089_v19, 0.0 }
 0x3bc   :  { %v1093_v4 = vpop.f32.mrb[70].mxu1 }
 0x3bd   :  { %v1094_v18 = vadd.f32 %v3396_v38, %v1093_v4  ;;  %v2132_v20 = vpop.f32.mrb[71].mxu1  ;;  %1355 = vmatmul.mubr.f32.gmra.mrb[68].mxu0 %v1176_v36  ;;  %v1227_v36 = vshrl.u32 %v1226_v15, 7 }
 0x3be   :  { %1360 = vmatprep.mubr.f32.mxu0 %v2719_v57 }
 0x3bf   :  { %v1177_v61 = vmax.f32 %v1094_v18, 0.0  ;;  %v1228_v4 = vsub.s32 0, %v1227_v36  ;;  %v1224_v18 = vld [vmem:[%s3542_s9] sm:$0x3]  ;;  %v1232_v20 = vsub.s32 1, %v1227_v36 }
 0x3c0   :  { %v1098_v23 = vpop.f32.mrb[72].mxu1 }
 0x3c1   :  { %v1099_v10 = vadd.f32 %v3396_v38, %v1098_v23  ;;  %v2135_v24 = vpop.f32.mrb[73].mxu1  ;;  %1361 = vmatmul.mubr.f32.gmra.mrb[70].mxu0 %v1177_v61  ;;  %v3449_v61 = vrot.slane %v1224_v18, %v1228_v4  ;;  %v3451_v23 = vrot.slane %v1224_v18, %v1232_v20 }
 0x3c2   :  { %1366 = vmatprep.mubr.f32.mxu0 %v2719_v57 }
 0x3c3   :  { %v1178_v26 = vmax.f32 %v1099_v10, 0.0 }
 0x3c4   :  { %v1103_v27 = vpop.f32.mrb[74].mxu1 }
 0x3c5   :  { %v1104_v16 = vadd.f32 %v3396_v38, %v1103_v27  ;;  %v2138_v30 = vpop.f32.mrb[75].mxu1  ;;  %1367 = vmatmul.mubr.f32.gmra.mrb[72].mxu0 %v1178_v26 }
 0x3c6   :  { %1372 = vmatprep.mubr.f32.mxu0 %v2719_v57 }
 0x3c7   :  { %v1179_v51 = vmax.f32 %v1104_v16, 0.0 }
 0x3c8   :  { %v1108_v31 = vpop.f32.mrb[76].mxu1 }
 0x3c9   :  { %v1109_v32 = vadd.f32 %v3396_v38, %v1108_v31  ;;  %v2141_v22 = vpop.f32.mrb[77].mxu1  ;;  %1373 = vmatmul.mubr.f32.gmra.mrb[74].mxu0 %v1179_v51 }
 0x3ca   :  { %1378 = vmatprep.mubr.f32.mxu0 %v2719_v57 }
 0x3cb   :  { %v1180_v62 = vmax.f32 %v1109_v32, 0.0 }
 0x3cc   :  { %v1113_v33 = vpop.f32.mrb[78].mxu1 }
 0x3cd   :  { %v1114_v35 = vadd.f32 %v3396_v38, %v1113_v33  ;;  %v2144_v37 = vpop.f32.mrb[79].mxu1  ;;  %1379 = vmatmul.mubr.f32.gmra.mrb[76].mxu0 %v1180_v62 }
 0x3ce   :  { %1384 = vmatprep.mubr.f32.mxu0 %v2719_v57 }
 0x3cf   :  { %v1181_v28 = vmax.f32 %v1114_v35, 0.0 }
 0x3d0   :  { %v1118_v43 = vpop.f32.mrb[80].mxu1 }
 0x3d1   :  { %v1119_v8 = vadd.f32 %v3396_v38, %v1118_v43  ;;  %v2147_v39 = vpop.f32.mrb[81].mxu1  ;;  %1385 = vmatmul.mubr.f32.gmra.mrb[78].mxu0 %v1181_v28 }
 0x3d2   :  { %1390 = vmatprep.mubr.f32.mxu0 %v2719_v57 }
 0x3d3   :  { %v1182_v17 = vmax.f32 %v1119_v8, 0.0 }
 0x3d4   :  { %v1123_v34 = vpop.f32.mrb[82].mxu1 }
 0x3d5   :  { %v1124_v41 = vadd.f32 %v3396_v38, %v1123_v34  ;;  %v2150_v46 = vpop.f32.mrb[83].mxu1  ;;  %1391 = vmatmul.mubr.f32.gmra.mrb[80].mxu0 %v1182_v17 }
 0x3d6   :  { %1396 = vmatprep.mubr.f32.mxu0 %v2719_v57 }
 0x3d7   :  { %v1183_v47 = vmax.f32 %v1124_v41, 0.0 }
 0x3d8   :  { %v1128_v40 = vpop.f32.mrb[84].mxu1 }
 0x3d9   :  { %v1129_v25 = vadd.f32 %v3396_v38, %v1128_v40  ;;  %v2153_v48 = vpop.f32.mrb[85].mxu1  ;;  %1397 = vmatmul.mubr.f32.gmra.mrb[82].mxu0 %v1183_v47 }
 0x3da   :  { %1402 = vmatprep.mubr.f32.mxu0 %v2719_v57 }
 0x3db   :  { %v1184_v50 = vmax.f32 %v1129_v25, 0.0 }
 0x3dc   :  { %v1133_v52 = vpop.f32.mrb[86].mxu1 }
 0x3dd   :  { %v1134_v0 = vadd.f32 %v3396_v38, %v1133_v52  ;;  %v2156_v58 = vpop.f32.mrb[87].mxu1  ;;  %1403 = vmatmul.mubr.f32.gmra.mrb[84].mxu0 %v1184_v50 }
 0x3de   :  { %1408 = vmatprep.mubr.f32.mxu0 %v2719_v57 }
 0x3df   :  { %v1185_v59 = vmax.f32 %v1134_v0, 0.0 }
 0x3e0   :  { %v1138_v1 = vpop.f32.mrb[88].mxu1 }
 0x3e1   :  { %v1139_v53 = vadd.f32 %v3396_v38, %v1138_v1  ;;  %v2159_v2 = vpop.f32.mrb[89].mxu1  ;;  %1409 = vmatmul.mubr.f32.gmra.mrb[86].mxu0 %v1185_v59 }
 0x3e2   :  { %1414 = vmatprep.mubr.f32.mxu0 %v2719_v57 }
 0x3e3   :  { %v1186_v3 = vmax.f32 %v1139_v53, 0.0 }
 0x3e4   :  { %v1143_v45 = vpop.f32.mrb[90].mxu1 }
 0x3e5   :  { %v1144_v63 = vadd.f32 %v3396_v38, %v1143_v45  ;;  %v2162_v9 = vpop.f32.mrb[91].mxu1  ;;  %1415 = vmatmul.mubr.f32.gmra.mrb[88].mxu0 %v1186_v3 }
 0x3e6   :  { %1420 = vmatprep.mubr.f32.mxu0 %v2719_v57 }
 0x3e7   :  { %v1187_v42 = vmax.f32 %v1144_v63, 0.0 }
 0x3e8   :  { %v1148_v11 = vpop.f32.mrb[92].mxu1 }
 0x3e9   :  { %v1149_v7 = vadd.f32 %v3396_v38, %v1148_v11  ;;  %v2165_v49 = vpop.f32.mrb[93].mxu1  ;;  %1421 = vmatmul.mubr.f32.gmra.mrb[90].mxu0 %v1187_v42 }
 0x3eb   :  { %v1188_v44 = vmax.f32 %v1149_v7, 0.0 }
 0x3ec   :  { %v1153_v12 = vpop.f32.mrb[94].mxu1 }
 0x3ed   :  { %v1154_v14 = vadd.f32 %v3396_v38, %v1153_v12  ;;  %v2168_v55 = vpop.f32.mrb[95].mxu1  ;;  %1427 = vmatmul.mubr.f32.vlgmr.msra.gmra.mrb[100].mxu1 %v1188_v44 }
 0x3ee   :  { %1432 = vmatprep.mubr.f32.mxu1 %v2719_v57 }
 0x3ef   :  { %v1189_v54 = vmax.f32 %v1154_v14, 0.0 }
 0x3f0   :  { %v1158_v56 = vpop.f32.mrb[96].mxu1 }
 0x3f1   :  { %v1159_v21 = vadd.f32 %v3396_v38, %v1158_v56  ;;  %v2171_v13 = vpop.f32.mrb[97].mxu1  ;;  %1433 = vmatmul.mubr.f32.gmra.mrb[102].mxu1 %v1189_v54 }
 0x3f2   :  { %1438 = vmatprep.mubr.f32.mxu1 %v2719_v57 }
 0x3f3   :  { %v1190_v5 = vmax.f32 %v1159_v21, 0.0 }
 0x3f4   :  { %v1163_v60 = vpop.f32.mrb[98].mxu1 }
 0x3f5   :  { %v1164_v29 = vadd.f32 %v3396_v38, %v1163_v60  ;;  %v2174_v6 = vpop.f32.mrb[99].mxu1  ;;  %1439 = vmatmul.mubr.f32.gmra.mrb[104].mxu1 %v1190_v5 }
 0x3f6   :  { %1444 = vmatprep.mubr.f32.mxu1 %v2719_v57 }
 0x3f7   :  { %v1191_v19 = vmax.f32 %v1164_v29, 0.0 }
 0x3f9   :  { %1445 = vmatmul.mubr.f32.gmra.mrb[106].mxu1 %v1191_v19 }
 0x46c   :  { %v1302_v10 = vpop.f32.mrb[50].mxu0 }
 0x46d   :  { %v1303_v38 = vadd.f32 %v1302_v10, %v3449_v61  ;;  %v1304_v57 = vpop.f32.mrb[51].mxu0 }
 0x46e   :  { %v1305_v24 = vadd.f32 %v1304_v57, %v3451_v23 }
 0x46f   :  { %2666 = shalt.err (!%p2663_p8)
}
 0x470   :  { %s2667_s19 = scalar_lea.hbm %s3544_s11, 3200 }
 0x471   :  { %p2668_p9 = scmp.ne.s32.totalorder %s3544_s11, %s2667_s19  ;;  %p2671_p10 = scmp.lt.u32.totalorder %s2667_s19, %s3544_s11 }
 0x473   :  { %p2673_p11 = pnand %p2671_p10, %p2668_p9 }
 0x475   :  { %2676 = shalt.err (!%p2673_p11)
}
 0x476   :  { %1824 = dma.vmem_to_hbm [thread:$0]  %s1819_s26, 3200, %s3544_s11, [#allocation12], %s2710_s27, %s2710_s27, %s2711_s28   ;;  %v1865_v26 = vmul.f32 -1.442695, %v1303_v38  ;;  %v1866_v27 = vmul.f32 -1.442695, %v1305_v24 }
 0x477   :  { %v1308_v16 = vpop.f32.mrb[52].mxu0  ;;  %s2723_s11 = smov [#allocation10]  }
 0x478   :  { %2367 = vpow2.f32 %v1865_v26  ;;  %v1309_v30 = vadd.f32 %v1308_v16, %v3449_v61  ;;  %v1310_v51 = vpop.f32.mrb[53].mxu0  ;;  %s1806_s27 = sshll.u32 %s2723_s11, 4  ;;  %s1807_s27 = int_to_ptr.vmem [resolvable:$true] %s1806_s27 }
 0x479   :  { %2369 = vpow2.f32 %v1866_v27  ;;  %v1311_v31 = vadd.f32 %v1310_v51, %v3451_v23  ;;  %v1314_v62 = vpop.f32.mrb[54].mxu0  ;;  %s2677_s28 = scalar_lea.vmem %s1807_s27, 6400  ;;  %p2682_p13 = scmp.lt.s32.totalorder %s1807_s27, %s1807_s27 }
 0x47a   :  { %v1867_v32 = vmul.f32 -1.442695, %v1309_v30  ;;  %v1315_v33 = vadd.f32 %v1314_v62, %v3449_v61  ;;  %v1316_v35 = vpop.f32.mrb[55].mxu0  ;;  %p2678_p12 = scmp.ne.s32.totalorder %s1807_s27, %s2677_s28  ;;  %p2683_p0 = scmp.lt.s32.totalorder %s2677_s28, %s2677_s28 }
 0x47b   :  { %v1868_v22 = vmul.f32 -1.442695, %v1311_v31  ;;  %v1317_v37 = vadd.f32 %v1316_v35, %v3451_v23  ;;  %v1320_v8 = vpop.f32.mrb[56].mxu0 }
 0x47c   :  { %2371 = vpow2.f32 %v1867_v32  ;;  %v1869_v28 = vmul.f32 -1.442695, %v1315_v33  ;;  %v1321_v39 = vadd.f32 %v1320_v8, %v3449_v61  ;;  %v1322_v17 = vpop.f32.mrb[57].mxu0  ;;  %p2684_p1 = por %p2683_p0, %p2682_p13 }
 0x47d   :  { %2373 = vpow2.f32 %v1868_v22  ;;  %v1870_v43 = vmul.f32 -1.442695, %v1317_v37  ;;  %v1323_v34 = vadd.f32 %v1322_v17, %v3451_v23  ;;  %v1326_v48 = vpop.f32.mrb[58].mxu0 }
 0x47e   :  { %2375 = vpow2.f32 %v1869_v28  ;;  %v1871_v46 = vmul.f32 -1.442695, %v1321_v39  ;;  %v1327_v52 = vadd.f32 %v1326_v48, %v3449_v61  ;;  %v1328_v0 = vpop.f32.mrb[59].mxu0  ;;  %p2685_p2 = pnand %p2684_p1, %p2678_p12 }
 0x47f   :  { %2377 = vpow2.f32 %v1870_v43  ;;  %v1872_v25 = vmul.f32 -1.442695, %v1323_v34  ;;  %v1329_v58 = vadd.f32 %v1328_v0, %v3451_v23 }
 0x480   :  { %2379 = vpow2.f32 %v1871_v46  ;;  %v1873_v1 = vmul.f32 -1.442695, %v1327_v52  ;;  %v1332_v45 = vpop.f32.mrb[60].mxu0 }
 0x481   :  { %v1874_v3 = vmul.f32 -1.442695, %v1329_v58  ;;  %v1333_v9 = vadd.f32 %v1332_v45, %v3449_v61  ;;  %v1334_v42 = vpop.f32.mrb[61].mxu0 }
 0x482   :  { %v2368_v41 = vpop.eup %2367  ;;  %v1335_v11 = vadd.f32 %v1334_v42, %v3451_v23 }
 0x483   :  { %v2370_v47 = vpop.eup %2369  ;;  %v1601_v40 = vadd.f32 1.0, %v2368_v41  ;;  %v1875_v49 = vmul.f32 -1.442695, %v1333_v9 }
 0x484   :  { %v1602_v50 = vadd.f32 1.0, %v2370_v47  ;;  %v1876_v14 = vmul.f32 -1.442695, %v1335_v11  ;;  %v1338_v55 = vpop.f32.mrb[62].mxu0 }
 0x485   :  { %2381 = vrcp.f32 %v1601_v40  ;;  %v1339_v56 = vadd.f32 %v1338_v55, %v3449_v61  ;;  %v1340_v21 = vpop.f32.mrb[63].mxu0 }
 0x486   :  { %v2372_v59 = vpop.eup %2371  ;;  %2383 = vrcp.f32 %v1602_v50  ;;  %v1341_v13 = vadd.f32 %v1340_v21, %v3451_v23 }
 0x487   :  { %v2374_v53 = vpop.eup %2373  ;;  %v1603_v2 = vadd.f32 1.0, %v2372_v59  ;;  %2385 = vpow2.f32 %v1872_v25  ;;  %v1877_v60 = vmul.f32 -1.442695, %v1339_v56 }
 0x488   :  { %v1604_v63 = vadd.f32 1.0, %v2374_v53  ;;  %2387 = vpow2.f32 %v1873_v1  ;;  %v2376_v7 = vpop.eup %2375  ;;  %v1878_v19 = vmul.f32 -1.442695, %v1341_v13  ;;  %v1344_v15 = vpop.f32.mrb[64].mxu0 }
 0x489   :  { %2389 = vrcp.f32 %v1603_v2  ;;  %v2378_v44 = vpop.eup %2377  ;;  %v1605_v12 = vadd.f32 1.0, %v2376_v7  ;;  %v1345_v4 = vadd.f32 %v1344_v15, %v3449_v61  ;;  %v1346_v18 = vpop.f32.mrb[65].mxu0 }
 0x48a   :  { %2391 = vrcp.f32 %v1604_v63  ;;  %v1606_v54 = vadd.f32 1.0, %v2378_v44  ;;  %v2380_v5 = vpop.eup %2379  ;;  %v1347_v10 = vadd.f32 %v1346_v18, %v3451_v23 }
 0x48b   :  { %2393 = vpow2.f32 %v1874_v3  ;;  %v1607_v6 = vadd.f32 1.0, %v2380_v5  ;;  %v1879_v24 = vmul.f32 -1.442695, %v1345_v4 }
 0x48c   :  { %2395 = vpow2.f32 %v1875_v49  ;;  %v1880_v16 = vmul.f32 -1.442695, %v1347_v10  ;;  %v1350_v30 = vpop.f32.mrb[66].mxu0 }
 0x48d   :  { %2397 = vrcp.f32 %v1605_v12  ;;  %v1351_v31 = vadd.f32 %v1350_v30, %v3449_v61  ;;  %v1352_v32 = vpop.f32.mrb[67].mxu0 }
 0x48e   :  { %2399 = vrcp.f32 %v1606_v54  ;;  %v1353_v62 = vadd.f32 %v1352_v32, %v3451_v23 }
 0x48f   :  { %v2382_v29 = vpop.eup %2381  ;;  %2401 = vpow2.f32 %v1876_v14  ;;  %v1881_v37 = vmul.f32 -1.442695, %v1351_v31 }
 0x490   :  { %v2384_v36 = vpop.eup %2383  ;;  %1751 = vst [vmem:[#allocation10] sm:$0xff] %v2382_v29  ;;  %2403 = vpow2.f32 %v1877_v60  ;;  %v1882_v8 = vmul.f32 -1.442695, %v1353_v62  ;;  %v1356_v39 = vpop.f32.mrb[68].mxu0 }
 0x491   :  { %v2386_v20 = vpop.eup %2385  ;;  %1752 = vst [vmem:[#allocation10 + $0x8] sm:$0xff] %v2384_v36  ;;  %2405 = vrcp.f32 %v1607_v6  ;;  %v1357_v34 = vadd.f32 %v1356_v39, %v3449_v61  ;;  %v1358_v41 = vpop.f32.mrb[69].mxu0 }
 0x492   :  { %v2388_v38 = vpop.eup %2387  ;;  %v1608_v57 = vadd.f32 1.0, %v2386_v20  ;;  %2407 = vpow2.f32 %v1878_v19  ;;  %v1359_v47 = vadd.f32 %v1358_v41, %v3451_v23 }
 0x493   :  { %v2390_v26 = vpop.eup %2389  ;;  %v1609_v27 = vadd.f32 1.0, %v2388_v38  ;;  %v1883_v48 = vmul.f32 -1.442695, %v1357_v34 }
 0x494   :  { %v2392_v51 = vpop.eup %2391  ;;  %1753 = vst [vmem:[#allocation10 + $0x10] sm:$0xff] %v2390_v26  ;;  %2409 = vrcp.f32 %v1608_v57  ;;  %v1362_v0 = vpop.f32.mrb[70].mxu0  ;;  %v1884_v59 = vmul.f32 -1.442695, %v1359_v47 }
 0x495   :  { %v2394_v22 = vpop.eup %2393  ;;  %1754 = vst [vmem:[#allocation10 + $0x18] sm:$0xff] %v2392_v51  ;;  %2411 = vrcp.f32 %v1609_v27  ;;  %v1363_v1 = vadd.f32 %v1362_v0, %v3449_v61  ;;  %v1364_v53 = vpop.f32.mrb[71].mxu0 }
 0x496   :  { %v2396_v33 = vpop.eup %2395  ;;  %v1610_v35 = vadd.f32 1.0, %v2394_v22  ;;  %2413 = vpow2.f32 %v1879_v24  ;;  %v1365_v3 = vadd.f32 %v1364_v53, %v3451_v23 }
 0x497   :  { %v2398_v28 = vpop.eup %2397  ;;  %v1611_v43 = vadd.f32 1.0, %v2396_v33  ;;  %2415 = vpow2.f32 %v1880_v16  ;;  %v1885_v63 = vmul.f32 -1.442695, %v1363_v1 }
 0x498   :  { %v2400_v17 = vpop.eup %2399  ;;  %1755 = vst [vmem:[#allocation10 + $0x20] sm:$0xff] %v2398_v28  ;;  %2417 = vrcp.f32 %v1610_v35  ;;  %v1886_v42 = vmul.f32 -1.442695, %v1365_v3  ;;  %v1368_v11 = vpop.f32.mrb[72].mxu0 }
 0x499   :  { %v2402_v46 = vpop.eup %2401  ;;  %1756 = vst [vmem:[#allocation10 + $0x28] sm:$0xff] %v2400_v17  ;;  %2419 = vrcp.f32 %v1611_v43  ;;  %v1369_v49 = vadd.f32 %v1368_v11, %v3449_v61  ;;  %v1370_v44 = vpop.f32.mrb[73].mxu0 }
 0x49a   :  { %v2404_v40 = vpop.eup %2403  ;;  %v1612_v25 = vadd.f32 1.0, %v2402_v46  ;;  %2421 = vpow2.f32 %v1881_v37  ;;  %v1371_v55 = vadd.f32 %v1370_v44, %v3451_v23 }
 0x49b   :  { %v2406_v50 = vpop.eup %2405  ;;  %v1613_v52 = vadd.f32 1.0, %v2404_v40  ;;  %2423 = vpow2.f32 %v1882_v8  ;;  %v1887_v21 = vmul.f32 -1.442695, %v1369_v49 }
 0x49c   :  { %v2408_v58 = vpop.eup %2407  ;;  %1757 = vst [vmem:[#allocation10 + $0x30] sm:$0xff] %v2406_v50  ;;  %2425 = vrcp.f32 %v1612_v25  ;;  %v1888_v5 = vmul.f32 -1.442695, %v1371_v55  ;;  %v1374_v60 = vpop.f32.mrb[74].mxu0 }
 0x49d   :  { %2427 = vrcp.f32 %v1613_v52  ;;  %v1614_v2 = vadd.f32 1.0, %v2408_v58  ;;  %v1375_v6 = vadd.f32 %v1374_v60, %v3449_v61  ;;  %v1376_v19 = vpop.f32.mrb[75].mxu0 }
 0x49e   :  { %v2410_v45 = vpop.eup %2409  ;;  %2429 = vpow2.f32 %v1883_v48  ;;  %v1377_v4 = vadd.f32 %v1376_v19, %v3451_v23 }
 0x49f   :  { %v2412_v9 = vpop.eup %2411  ;;  %1758 = vst [vmem:[#allocation10 + $0x38] sm:$0xff] %v2410_v45  ;;  %2431 = vrcp.f32 %v1614_v2  ;;  %v1889_v10 = vmul.f32 -1.442695, %v1375_v6 }
 0x4a0   :  { %v2414_v7 = vpop.eup %2413  ;;  %1759 = vst [vmem:[#allocation10 + $0x40] sm:$0xff] %v2412_v9  ;;  %2433 = vpow2.f32 %v1884_v59  ;;  %v1890_v57 = vmul.f32 -1.442695, %v1377_v4  ;;  %v1380_v24 = vpop.f32.mrb[76].mxu0 }
 0x4a1   :  { %v2416_v12 = vpop.eup %2415  ;;  %v1615_v14 = vadd.f32 1.0, %v2414_v7  ;;  %2435 = vpow2.f32 %v1885_v63  ;;  %v1381_v27 = vadd.f32 %v1380_v24, %v3449_v61  ;;  %v1382_v16 = vpop.f32.mrb[77].mxu0 }
 0x4a2   :  { %v2418_v54 = vpop.eup %2417  ;;  %v1616_v56 = vadd.f32 1.0, %v2416_v12  ;;  %2437 = vpow2.f32 %v1886_v42  ;;  %v1383_v31 = vadd.f32 %v1382_v16, %v3451_v23 }
 0x4a3   :  { %v2420_v13 = vpop.eup %2419  ;;  %1760 = vst [vmem:[#allocation10 + $0x48] sm:$0xff] %v2418_v54  ;;  %2439 = vrcp.f32 %v1615_v14  ;;  %v1891_v22 = vmul.f32 -1.442695, %v1381_v27 }
 0x4a4   :  { %v2422_v29 = vpop.eup %2421  ;;  %1761 = vst [vmem:[#allocation10 + $0x50] sm:$0xff] %v2420_v13  ;;  %2441 = vrcp.f32 %v1616_v56  ;;  %v1386_v35 = vpop.f32.mrb[78].mxu0  ;;  %v1892_v43 = vmul.f32 -1.442695, %v1383_v31 }
 0x4a5   :  { %v2424_v15 = vpop.eup %2423  ;;  %v1617_v36 = vadd.f32 1.0, %v2422_v29  ;;  %2443 = vpow2.f32 %v1887_v21  ;;  %v1387_v8 = vadd.f32 %v1386_v35, %v3449_v61  ;;  %v1388_v39 = vpop.f32.mrb[79].mxu0 }
 0x4a6   :  { %v2426_v18 = vpop.eup %2425  ;;  %v1618_v20 = vadd.f32 1.0, %v2424_v15  ;;  %2445 = vpow2.f32 %v1888_v5  ;;  %v1389_v41 = vadd.f32 %v1388_v39, %v3451_v23 }
 0x4a7   :  { %v2428_v38 = vpop.eup %2427  ;;  %1762 = vst [vmem:[#allocation10 + $0x58] sm:$0xff] %v2426_v18  ;;  %2447 = vrcp.f32 %v1617_v36  ;;  %v1893_v47 = vmul.f32 -1.442695, %v1387_v8 }
 0x4a8   :  { %v2430_v26 = vpop.eup %2429  ;;  %1763 = vst [vmem:[#allocation10 + $0x60] sm:$0xff] %v2428_v38  ;;  %2449 = vrcp.f32 %v1618_v20  ;;  %v1392_v25 = vpop.f32.mrb[80].mxu0  ;;  %v1894_v52 = vmul.f32 -1.442695, %v1389_v41 }
 0x4a9   :  { %v2432_v30 = vpop.eup %2431  ;;  %v1619_v51 = vadd.f32 1.0, %v2430_v26  ;;  %2451 = vpow2.f32 %v1889_v10  ;;  %v1393_v0 = vadd.f32 %v1392_v25, %v3449_v61  ;;  %v1394_v58 = vpop.f32.mrb[81].mxu0 }
 0x4aa   :  { %v2434_v32 = vpop.eup %2433  ;;  %1764 = vst [vmem:[#allocation10 + $0x68] sm:$0xff] %v2432_v30  ;;  %2453 = vpow2.f32 %v1890_v57  ;;  %v1395_v53 = vadd.f32 %v1394_v58, %v3451_v23 }
 0x4ab   :  { %v2436_v62 = vpop.eup %2435  ;;  %2455 = vrcp.f32 %v1619_v51  ;;  %v1620_v33 = vadd.f32 1.0, %v2434_v32  ;;  %v1895_v3 = vmul.f32 -1.442695, %v1393_v0 }
 0x4ac   :  { %v2438_v37 = vpop.eup %2437  ;;  %v1621_v28 = vadd.f32 1.0, %v2436_v62  ;;  %2457 = vpow2.f32 %v1891_v22  ;;  %v1398_v63 = vpop.f32.mrb[82].mxu0  ;;  %v1896_v11 = vmul.f32 -1.442695, %v1395_v53 }
 0x4ad   :  { %v2440_v17 = vpop.eup %2439  ;;  %2459 = vrcp.f32 %v1620_v33  ;;  %v1622_v34 = vadd.f32 1.0, %v2438_v37  ;;  %v1399_v7 = vadd.f32 %v1398_v63, %v3449_v61  ;;  %v1400_v49 = vpop.f32.mrb[83].mxu0 }
 0x4ae   :  { %v2442_v46 = vpop.eup %2441  ;;  %1765 = vst [vmem:[#allocation10 + $0x70] sm:$0xff] %v2440_v17  ;;  %2461 = vrcp.f32 %v1621_v28  ;;  %v1401_v14 = vadd.f32 %v1400_v49, %v3451_v23 }
 0x4af   :  { %v2444_v40 = vpop.eup %2443  ;;  %1766 = vst [vmem:[#allocation10 + $0x78] sm:$0xff] %v2442_v46  ;;  %2463 = vrcp.f32 %v1622_v34  ;;  %v1897_v54 = vmul.f32 -1.442695, %v1399_v7 }
 0x4b0   :  { %v2446_v48 = vpop.eup %2445  ;;  %v1623_v50 = vadd.f32 1.0, %v2444_v40  ;;  %2465 = vpow2.f32 %v1892_v43  ;;  %v1898_v13 = vmul.f32 -1.442695, %v1401_v14  ;;  %v1404_v5 = vpop.f32.mrb[84].mxu0 }
 0x4b1   :  { %v2448_v59 = vpop.eup %2447  ;;  %v1624_v1 = vadd.f32 1.0, %v2446_v48  ;;  %2467 = vpow2.f32 %v1893_v47  ;;  %v1405_v29 = vadd.f32 %v1404_v5, %v3449_v61  ;;  %v1406_v6 = vpop.f32.mrb[85].mxu0 }
 0x4b2   :  { %v2450_v2 = vpop.eup %2449  ;;  %1767 = vst [vmem:[#allocation10 + $0x80] sm:$0xff] %v2448_v59  ;;  %2469 = vrcp.f32 %v1623_v50  ;;  %v1407_v15 = vadd.f32 %v1406_v6, %v3451_v23 }
 0x4b3   :  { %v2452_v45 = vpop.eup %2451  ;;  %1768 = vst [vmem:[#allocation10 + $0x88] sm:$0xff] %v2450_v2  ;;  %2471 = vrcp.f32 %v1624_v1  ;;  %v1899_v4 = vmul.f32 -1.442695, %v1405_v29 }
 0x4b4   :  { %v2454_v9 = vpop.eup %2453  ;;  %v1625_v42 = vadd.f32 1.0, %v2452_v45  ;;  %2473 = vpow2.f32 %v1894_v52  ;;  %v1900_v10 = vmul.f32 -1.442695, %v1407_v15  ;;  %v1410_v38 = vpop.f32.mrb[86].mxu0 }
 0x4b5   :  { %v2456_v44 = vpop.eup %2455  ;;  %v1626_v12 = vadd.f32 1.0, %v2454_v9  ;;  %2475 = vpow2.f32 %v1895_v3  ;;  %v1411_v26 = vadd.f32 %v1410_v38, %v3449_v61  ;;  %v1412_v27 = vpop.f32.mrb[87].mxu0 }
 0x4b6   :  { %v2458_v55 = vpop.eup %2457  ;;  %1769 = vst [vmem:[#allocation10 + $0x90] sm:$0xff] %v2456_v44  ;;  %2477 = vrcp.f32 %v1625_v42  ;;  %v1413_v30 = vadd.f32 %v1412_v27, %v3451_v23 }
 0x4b7   :  { %v2460_v56 = vpop.eup %2459  ;;  %2479 = vrcp.f32 %v1626_v12  ;;  %v1627_v21 = vadd.f32 1.0, %v2458_v55  ;;  %v1901_v31 = vmul.f32 -1.442695, %v1411_v26 }
 0x4b8   :  { %v2462_v60 = vpop.eup %2461  ;;  %1770 = vst [vmem:[#allocation10 + $0x98] sm:$0xff] %v2460_v56  ;;  %2481 = vpow2.f32 %v1896_v11  ;;  %v1902_v62 = vmul.f32 -1.442695, %v1413_v30  ;;  %v1416_v33 = vpop.f32.mrb[88].mxu0 }
 0x4b9   :  { %v2464_v19 = vpop.eup %2463  ;;  %1771 = vst [vmem:[#allocation10 + $0xa0] sm:$0xff] %v2462_v60  ;;  %2483 = vrcp.f32 %v1627_v21  ;;  %v1417_v28 = vadd.f32 %v1416_v33, %v3449_v61  ;;  %v1418_v43 = vpop.f32.mrb[89].mxu0 }
 0x4ba   :  { %v2466_v36 = vpop.eup %2465  ;;  %1772 = vst [vmem:[#allocation10 + $0xa8] sm:$0xff] %v2464_v19  ;;  %2485 = vpow2.f32 %v1897_v54  ;;  %v1419_v39 = vadd.f32 %v1418_v43, %v3451_v23 }
 0x4bb   :  { %v2468_v18 = vpop.eup %2467  ;;  %v1628_v20 = vadd.f32 1.0, %v2466_v36  ;;  %2487 = vpow2.f32 %v1898_v13  ;;  %v1903_v34 = vmul.f32 -1.442695, %v1417_v28 }
 0x4bc   :  { %v2470_v57 = vpop.eup %2469  ;;  %v1629_v24 = vadd.f32 1.0, %v2468_v18  ;;  %2489 = vpow2.f32 %v1899_v4  ;;  %v1904_v47 = vmul.f32 -1.442695, %v1419_v39  ;;  %v1422_v40 = vpop.f32.mrb[90].mxu0 }
 0x4bd   :  { %v2472_v16 = vpop.eup %2471  ;;  %1773 = vst [vmem:[#allocation10 + $0xb0] sm:$0xff] %v2470_v57  ;;  %2491 = vrcp.f32 %v1628_v20  ;;  %v1423_v48 = vadd.f32 %v1422_v40, %v3449_v61  ;;  %v1424_v50 = vpop.f32.mrb[91].mxu0 }
 0x4be   :  { %v2474_v51 = vpop.eup %2473  ;;  %1774 = vst [vmem:[#allocation10 + $0xb8] sm:$0xff] %v2472_v16  ;;  %2493 = vrcp.f32 %v1629_v24  ;;  %v1425_v58 = vadd.f32 %v1424_v50, %v3451_v23 }
 0x4bf   :  { %v2476_v32 = vpop.eup %2475  ;;  %v1630_v22 = vadd.f32 1.0, %v2474_v51  ;;  %2495 = vpow2.f32 %v1900_v10  ;;  %v1905_v53 = vmul.f32 -1.442695, %v1423_v48 }
 0x4c0   :  { %v2478_v35 = vpop.eup %2477  ;;  %v1631_v37 = vadd.f32 1.0, %v2476_v32  ;;  %2497 = vpow2.f32 %v1901_v31  ;;  %v1906_v45 = vmul.f32 -1.442695, %v1425_v58  ;;  %v1428_v63 = vpop.f32.mrb[100].mxu1 }
 0x4c1   :  { %v2480_v8 = vpop.eup %2479  ;;  %1775 = vst [vmem:[#allocation10 + $0xc0] sm:$0xff] %v2478_v35  ;;  %2499 = vrcp.f32 %v1630_v22  ;;  %v1429_v42 = vadd.f32 %v1428_v63, %v3449_v61  ;;  %v1430_v11 = vpop.f32.mrb[101].mxu1 }
 0x4c2   :  { %v2482_v17 = vpop.eup %2481  ;;  %1776 = vst [vmem:[#allocation10 + $0xc8] sm:$0xff] %v2480_v8  ;;  %2501 = vrcp.f32 %v1631_v37  ;;  %v1431_v49 = vadd.f32 %v1430_v11, %v3451_v23 }
 0x4c3   :  { %v2484_v41 = vpop.eup %2483  ;;  %v1632_v46 = vadd.f32 1.0, %v2482_v17  ;;  %2503 = vpow2.f32 %v1902_v62  ;;  %v1907_v14 = vmul.f32 -1.442695, %v1429_v42 }
 0x4c4   :  { %v2486_v25 = vpop.eup %2485  ;;  %1777 = vst [vmem:[#allocation10 + $0xd0] sm:$0xff] %v2484_v41  ;;  %2505 = vpow2.f32 %v1903_v34  ;;  %v1908_v56 = vmul.f32 -1.442695, %v1431_v49  ;;  %v1434_v21 = vpop.f32.mrb[102].mxu1 }
 0x4c5   :  { %v2488_v52 = vpop.eup %2487  ;;  %2507 = vrcp.f32 %v1632_v46  ;;  %v1633_v0 = vadd.f32 1.0, %v2486_v25  ;;  %v1435_v5 = vadd.f32 %v1434_v21, %v3449_v61  ;;  %v1436_v60 = vpop.f32.mrb[103].mxu1 }
 0x4c6   :  { %v2490_v59 = vpop.eup %2489  ;;  %v1634_v1 = vadd.f32 1.0, %v2488_v52  ;;  %2509 = vpow2.f32 %v1904_v47  ;;  %v1437_v6 = vadd.f32 %v1436_v60, %v3451_v23 }
 0x4c7   :  { %v2492_v2 = vpop.eup %2491  ;;  %2511 = vrcp.f32 %v1633_v0  ;;  %v1635_v3 = vadd.f32 1.0, %v2490_v59  ;;  %v1909_v36 = vmul.f32 -1.442695, %v1435_v5 }
 0x4c8   :  { %v2494_v9 = vpop.eup %2493  ;;  %1778 = vst [vmem:[#allocation10 + $0xd8] sm:$0xff] %v2492_v2  ;;  %2513 = vrcp.f32 %v1634_v1  ;;  %v1440_v20 = vpop.f32.mrb[104].mxu1  ;;  %v1910_v38 = vmul.f32 -1.442695, %v1437_v6 }
 0x4c9   :  { %v2496_v7 = vpop.eup %2495  ;;  %1779 = vst [vmem:[#allocation10 + $0xe0] sm:$0xff] %v2494_v9  ;;  %2515 = vrcp.f32 %v1635_v3  ;;  %v1441_v57 = vadd.f32 %v1440_v20, %v3449_v61  ;;  %v1442_v24 = vpop.f32.mrb[105].mxu1 }
 0x4ca   :  { %v2498_v44 = vpop.eup %2497  ;;  %v1636_v12 = vadd.f32 1.0, %v2496_v7  ;;  %2517 = vpow2.f32 %v1905_v53  ;;  %v1443_v16 = vadd.f32 %v1442_v24, %v3451_v23 }
 0x4cb   :  { %v2500_v55 = vpop.eup %2499  ;;  %v1637_v54 = vadd.f32 1.0, %v2498_v44  ;;  %2519 = vpow2.f32 %v1906_v45  ;;  %v1911_v51 = vmul.f32 -1.442695, %v1441_v57 }
 0x4cc   :  { %v2502_v13 = vpop.eup %2501  ;;  %1780 = vst [vmem:[#allocation10 + $0xe8] sm:$0xff] %v2500_v55  ;;  %2521 = vrcp.f32 %v1636_v12  ;;  %v1912_v32 = vmul.f32 -1.442695, %v1443_v16  ;;  %v1446_v22 = vpop.f32.mrb[106].mxu1 }
 0x4cd   :  { %v2504_v29 = vpop.eup %2503  ;;  %1781 = vst [vmem:[#allocation10 + $0xf0] sm:$0xff] %v2502_v13  ;;  %2523 = vrcp.f32 %v1637_v54  ;;  %v1447_v33 = vadd.f32 %v1446_v22, %v3449_v61  ;;  %v1448_v35 = vpop.f32.mrb[107].mxu1 }
 0x4ce   :  { %v2506_v19 = vpop.eup %2505  ;;  %v1638_v15 = vadd.f32 1.0, %v2504_v29  ;;  %2525 = vpow2.f32 %v1907_v14  ;;  %v1449_v43 = vadd.f32 %v1448_v35, %v3451_v23 }
 0x4cf   :  { %v2508_v4 = vpop.eup %2507  ;;  %v1639_v18 = vadd.f32 1.0, %v2506_v19  ;;  %2527 = vpow2.f32 %v1908_v56  ;;  %v1913_v17 = vmul.f32 -1.442695, %v1447_v33 }
 0x4d0   :  { %v2510_v10 = vpop.eup %2509  ;;  %1782 = vst [vmem:[#allocation10 + $0xf8] sm:$0xff] %v2508_v4  ;;  %2529 = vrcp.f32 %v1638_v15  ;;  %v1914_v41 = vmul.f32 -1.442695, %v1449_v43 }
 0x4d1   :  { %v2512_v26 = vpop.eup %2511  ;;  %2531 = vrcp.f32 %v1639_v18  ;;  %v1640_v27 = vadd.f32 1.0, %v2510_v10 }
 0x4d2   :  { %v2514_v30 = vpop.eup %2513  ;;  %1783 = vst [vmem:[#allocation10 + $0x100] sm:$0xff] %v2512_v26  ;;  %2533 = vpow2.f32 %v1909_v36 }
 0x4d3   :  { %v2516_v31 = vpop.eup %2515  ;;  %1784 = vst [vmem:[#allocation10 + $0x108] sm:$0xff] %v2514_v30  ;;  %2535 = vrcp.f32 %v1640_v27 }
 0x4d4   :  { %v2518_v62 = vpop.eup %2517  ;;  %1785 = vst [vmem:[#allocation10 + $0x110] sm:$0xff] %v2516_v31  ;;  %2537 = vpow2.f32 %v1910_v38 }
 0x4d5   :  { %v2520_v37 = vpop.eup %2519  ;;  %v1641_v28 = vadd.f32 1.0, %v2518_v62  ;;  %2539 = vpow2.f32 %v1911_v51 }
 0x4d6   :  { %v2522_v8 = vpop.eup %2521  ;;  %v1642_v39 = vadd.f32 1.0, %v2520_v37  ;;  %2541 = vpow2.f32 %v1912_v32 }
 0x4d7   :  { %v2524_v34 = vpop.eup %2523  ;;  %1786 = vst [vmem:[#allocation10 + $0x118] sm:$0xff] %v2522_v8  ;;  %2543 = vrcp.f32 %v1641_v28 }
 0x4d8   :  { %v2526_v46 = vpop.eup %2525  ;;  %1787 = vst [vmem:[#allocation10 + $0x120] sm:$0xff] %v2524_v34  ;;  %2545 = vrcp.f32 %v1642_v39 }
 0x4d9   :  { %v2528_v47 = vpop.eup %2527  ;;  %v1643_v40 = vadd.f32 1.0, %v2526_v46  ;;  %2547 = vpow2.f32 %v1913_v17 }
 0x4da   :  { %v2530_v61 = vpop.eup %2529  ;;  %v1644_v25 = vadd.f32 1.0, %v2528_v47  ;;  %2549 = vpow2.f32 %v1914_v41 }
 0x4db   :  { %v2532_v48 = vpop.eup %2531  ;;  %1788 = vst [vmem:[#allocation10 + $0x128] sm:$0xff] %v2530_v61  ;;  %2551 = vrcp.f32 %v1643_v40 }
 0x4dc   :  { %v2534_v23 = vpop.eup %2533  ;;  %1789 = vst [vmem:[#allocation10 + $0x130] sm:$0xff] %v2532_v48  ;;  %2553 = vrcp.f32 %v1644_v25 }
 0x4dd   :  { %v2536_v50 = vpop.eup %2535  ;;  %v1645_v52 = vadd.f32 1.0, %v2534_v23 }
 0x4de   :  { %v2538_v0 = vpop.eup %2537  ;;  %1790 = vst [vmem:[#allocation10 + $0x138] sm:$0xff] %v2536_v50 }
 0x4df   :  { %v2540_v58 = vpop.eup %2539  ;;  %2555 = vrcp.f32 %v1645_v52  ;;  %v1646_v59 = vadd.f32 1.0, %v2538_v0 }
 0x4e0   :  { %v2542_v1 = vpop.eup %2541  ;;  %v1647_v53 = vadd.f32 1.0, %v2540_v58 }
 0x4e1   :  { %v2544_v2 = vpop.eup %2543  ;;  %2557 = vrcp.f32 %v1646_v59  ;;  %v1648_v3 = vadd.f32 1.0, %v2542_v1 }
 0x4e2   :  { %v2546_v45 = vpop.eup %2545  ;;  %1791 = vst [vmem:[#allocation10 + $0x140] sm:$0xff] %v2544_v2  ;;  %2559 = vrcp.f32 %v1647_v53 }
 0x4e3   :  { %v2548_v63 = vpop.eup %2547  ;;  %1792 = vst [vmem:[#allocation10 + $0x148] sm:$0xff] %v2546_v45  ;;  %2561 = vrcp.f32 %v1648_v3 }
 0x4e4   :  { %v2550_v9 = vpop.eup %2549  ;;  %v1649_v42 = vadd.f32 1.0, %v2548_v63 }
 0x4e5   :  { %v2552_v11 = vpop.eup %2551  ;;  %v1650_v7 = vadd.f32 1.0, %v2550_v9 }
 0x4e6   :  { %v2554_v49 = vpop.eup %2553  ;;  %1793 = vst [vmem:[#allocation10 + $0x150] sm:$0xff] %v2552_v11  ;;  %2563 = vrcp.f32 %v1649_v42 }
 0x4e7   :  { %1794 = vst [vmem:[#allocation10 + $0x158] sm:$0xff] %v2554_v49  ;;  %2565 = vrcp.f32 %v1650_v7 }
 0x4e9   :  { %v2556_v44 = vpop.eup %2555 }
 0x4ea   :  { %1795 = vst [vmem:[#allocation10 + $0x160] sm:$0xff] %v2556_v44 }
 0x4eb   :  { %v2558_v12 = vpop.eup %2557 }
 0x4ec   :  { %v2560_v14 = vpop.eup %2559  ;;  %1796 = vst [vmem:[#allocation10 + $0x168] sm:$0xff] %v2558_v12 }
 0x4ed   :  { %v2562_v55 = vpop.eup %2561  ;;  %1797 = vst [vmem:[#allocation10 + $0x170] sm:$0xff] %v2560_v14 }
 0x4ee   :  { %1798 = vst [vmem:[#allocation10 + $0x178] sm:$0xff] %v2562_v55 }
 0x4f0   :  { %v2564_v54 = vpop.eup %2563 }
 0x4f1   :  { %v2566_v56 = vpop.eup %2565  ;;  %1799 = vst [vmem:[#allocation10 + $0x180] sm:$0xff] %v2564_v54 }
 0x4f2   :  { %1800 = vst [vmem:[#allocation10 + $0x188] sm:$0xff] %v2566_v56 }
 0x4f3   :  { %2688 = shalt.err (!%p2685_p2)
}
 0x4f4   :  { %s2689_s5 = scalar_lea.hbm %s3543_s10, 6400 }
 0x4f5   :  { %p2690_p3 = scmp.ne.s32.totalorder %s3543_s10, %s2689_s5  ;;  %p2693_p4 = scmp.lt.u32.totalorder %s2689_s5, %s3543_s10 }
 0x4f7   :  { %p2695_p5 = pnand %p2693_p4, %p2690_p3 }
 0x4f9   :  { %2698 = shalt.err (!%p2695_p5)
}
 0x4fa   :  { %1812 = dma.vmem_to_hbm [thread:$0]  %s1807_s27, 6400, %s3543_s10, [#allocation4], %s2713_s4, %s2713_s4, %s2714_s18  }
 0x4fb   :  { %2705 = dma.done.wait [#allocation4], 6400  }
 0x4fc   :  { %2706 = vsyncadd [#allocation4], 4294960896 }
 0x4fd   :  { %2707 = dma.done.wait [#allocation12], 3200  }
 0x4fe   :  { %2708 = vsyncadd [#allocation12], 4294964096 }
 0x4ff   :  { %1831 = vsyncpa [#allocation3], 1 }
 0x500   :  { %1832 = vsyncpa [#allocation6], 1 }
 0x501   :  { %1833 = vsyncpa [#allocation9], 1 }
 0x502   :  { %1834 = vsyncpa [#allocation4], 1 }
 0x503   :  { %1835 = vsyncpa [#allocation12], 1 }

// kernel: tpu_custom_call.1
= control target key start
LH: loop header
LB: loop body
LE: loop exit
PB: predicated region body
PF: predicated region fallthrough
CT: control target
= control target key end

     0   :  { %17 = vsyncpa [#allocation3], 0  ;;  %s3533_s0 = inlined_call_operand.hbm [shape: f32[200,256], index: 0, kind: input, shape index: {}]   ;;  %s3534_s1 = inlined_call_operand.vmem [shape: f32[200,30], index: 1, kind: input, shape index: {}]   ;;  %s3535_s2 = inlined_call_operand.vmem [shape: f32[256,128], index: 2, kind: input, shape index: {}]   ;;  %s3536_s3 = inlined_call_operand.vmem [shape: f32[1,128], index: 3, kind: input, shape index: {}]   ;;  %s3537_s4 = inlined_call_operand.hbm [shape: f32[128,128], index: 4, kind: input, shape index: {}]   ;;  %s3538_s5 = inlined_call_operand.vmem [shape: f32[1,128], index: 5, kind: input, shape index: {}]   ;;  %s3539_s6 = inlined_call_operand.hbm [shape: f32[30,128], index: 6, kind: input, shape index: {}]   ;;  %s3540_s7 = inlined_call_operand.vmem [shape: f32[1,128], index: 7, kind: input, shape index: {}]   ;;  %s3541_s8 = inlined_call_operand.hbm [shape: f32[128,256], index: 8, kind: input, shape index: {}]   ;;  %s3542_s9 = inlined_call_operand.vmem [shape: f32[1,256], index: 9, kind: input, shape index: {}]   ;;  %s3543_s10 = inlined_call_operand.hbm [shape: f32[200,256], index: 10, kind: output, shape index: {0}]   ;;  %s3544_s11 = inlined_call_operand.hbm [shape: f32[200,128], index: 11, kind: output, shape index: {1}]  }
   0x1   :  { %18 = vsyncpa [#allocation6], 0 }
   0x2   :  { %19 = vsyncpa [#allocation9], 0 }
   0x3   :  { %20 = vsyncpa [#allocation4], 0 }
   0x4   :  { %21 = vsyncpa [#allocation12], 0  ;;  %s2709_s17 = smov [#allocation5]   ;;  %s2567_s21 = scalar_lea.hbm %s3537_s4, 2048 }
   0x5   :  { %s45_s18 = sshll.u32 %s2709_s17, 4  ;;  %p2568_p0 = scmp.ne.s32.totalorder %s3537_s4, %s2567_s21  ;;  %s46_s18 = int_to_ptr.vmem [resolvable:$true] %s45_s18 }
   0x6   :  { %p2571_p1 = scmp.lt.u32.totalorder %s2567_s21, %s3537_s4 }
   0x8   :  { %p2573_p2 = pnand %p2571_p1, %p2568_p0 }
   0xa   :  { %2576 = shalt.err (!%p2573_p2)
}
   0xb   :  { %s2577_s26 = scalar_lea.vmem %s46_s18, 2048  ;;  %p2582_p4 = scmp.lt.s32.totalorder %s46_s18, %s46_s18 }
   0xc   :  { %p2578_p3 = scmp.ne.s32.totalorder %s46_s18, %s2577_s26  ;;  %p2583_p5 = scmp.lt.s32.totalorder %s2577_s26, %s2577_s26 }
   0xe   :  { %p2584_p6 = por %p2583_p5, %p2582_p4 }
  0x10   :  { %p2585_p7 = pnand %p2584_p6, %p2578_p3 }
  0x12   :  { %2588 = shalt.err (!%p2585_p7)
}
  0x13   :  { %s2710_s27 = smov 128   ;;  %s2711_s28 = smov 8  }
  0x14   :  { %51 = dma.hbm_to_vmem [thread:$0]  %s3537_s4, 2048, %s46_s18, [#allocation6], %s2710_s27, %s2710_s27, %s2711_s28  }
  0x15   :  { %s2712_s12 = smov [#allocation2]   ;;  %s2589_s16 = scalar_lea.hbm %s3533_s0, 6400 }
  0x16   :  { %s27_s13 = sshll.u32 %s2712_s12, 4  ;;  %p2590_p8 = scmp.ne.s32.totalorder %s3533_s0, %s2589_s16  ;;  %s28_s13 = int_to_ptr.vmem [resolvable:$true] %s27_s13 }
  0x17   :  { %p2593_p9 = scmp.lt.u32.totalorder %s2589_s16, %s3533_s0 }
  0x19   :  { %p2595_p10 = pnand %p2593_p9, %p2590_p8 }
  0x1b   :  { %2598 = shalt.err (!%p2595_p10)
}
  0x1c   :  { %s2599_s22 = scalar_lea.vmem %s28_s13, 6400  ;;  %p2604_p12 = scmp.lt.s32.totalorder %s28_s13, %s28_s13 }
  0x1d   :  { %p2600_p11 = scmp.ne.s32.totalorder %s28_s13, %s2599_s22  ;;  %p2605_p13 = scmp.lt.s32.totalorder %s2599_s22, %s2599_s22 }
  0x1f   :  { %p2606_p0 = por %p2605_p13, %p2604_p12 }
  0x21   :  { %p2607_p1 = pnand %p2606_p0, %p2600_p11 }
  0x23   :  { %2610 = shalt.err (!%p2607_p1)
}
  0x24   :  { %s2713_s4 = smov 256   ;;  %s2714_s18 = smov 16  }
  0x25   :  { %33 = dma.hbm_to_vmem [thread:$0]  %s3533_s0, 6400, %s28_s13, [#allocation3], %s2713_s4, %s2713_s4, %s2714_s18  }
  0x26   :  { %s2715_s25 = smov [#allocation7]   ;;  %s2716_s29 = smov [#allocation8]  }
  0x27   :  { %s59_s26 = sshll.u32 %s2715_s25, 4  ;;  %s73_s30 = sshll.u32 %s2716_s29, 4  ;;  %s60_s26 = int_to_ptr.vmem [resolvable:$true] %s59_s26  ;;  %s2814_s30 = int_to_ptr.vmem [resolvable:$true] %s73_s30 }
  0x28   :  { %s2611_s15 = scalar_lea.hbm %s3539_s6, 512 }
  0x29   :  { %p2612_p2 = scmp.ne.s32.totalorder %s3539_s6, %s2611_s15  ;;  %p2615_p3 = scmp.lt.u32.totalorder %s2611_s15, %s3539_s6 }
  0x2b   :  { %p2617_p4 = pnand %p2615_p3, %p2612_p2 }
  0x2d   :  { %2620 = shalt.err (!%p2617_p4)
}
  0x2e   :  { %s2621_s0 = scalar_lea.vmem %s60_s26, 512  ;;  %p2626_p6 = scmp.lt.s32.totalorder %s60_s26, %s60_s26 }
  0x2f   :  { %p2622_p5 = scmp.ne.s32.totalorder %s60_s26, %s2621_s0  ;;  %p2627_p7 = scmp.lt.s32.totalorder %s2621_s0, %s2621_s0 }
  0x31   :  { %p2628_p8 = por %p2627_p7, %p2626_p6 }
  0x33   :  { %p2629_p9 = pnand %p2628_p8, %p2622_p5 }
  0x35   :  { %2632 = shalt.err (!%p2629_p9)
}
  0x36   :  { %65 = dma.hbm_to_vmem [thread:$0]  %s3539_s6, 512, %s60_s26, [#allocation6], %s2710_s27, %s2710_s27, %s2711_s28  }
  0x37   :  { %s2633_s24 = scalar_lea.hbm %s3541_s8, 4096 }
  0x38   :  { %p2634_p10 = scmp.ne.s32.totalorder %s3541_s8, %s2633_s24  ;;  %p2637_p11 = scmp.lt.u32.totalorder %s2633_s24, %s3541_s8 }
  0x3a   :  { %p2639_p12 = pnand %p2637_p11, %p2634_p10 }
  0x3c   :  { %2642 = shalt.err (!%p2639_p12)
}
  0x3d   :  { %s2643_s15 = scalar_lea.vmem %s2814_s30, 4096  ;;  %p2648_p0 = scmp.lt.s32.totalorder %s2814_s30, %s2814_s30 }
  0x3e   :  { %p2644_p13 = scmp.ne.s32.totalorder %s2814_s30, %s2643_s15  ;;  %p2649_p1 = scmp.lt.s32.totalorder %s2643_s15, %s2643_s15 }
  0x40   :  { %p2650_p2 = por %p2649_p1, %p2648_p0 }
  0x42   :  { %p2651_p3 = pnand %p2650_p2, %p2644_p13 }
  0x44   :  { %2654 = shalt.err (!%p2651_p3)
}
  0x45   :  { %79 = dma.hbm_to_vmem [thread:$0]  %s3541_s8, 4096, %s2814_s30, [#allocation9], %s2713_s4, %s2713_s4, %s2714_s18  }
  0x46   :  { %2699 = dma.done.wait [#allocation3], 6400  }
  0x47   :  { %2700 = vsyncadd [#allocation3], 4294960896 }
  0x48   :  { %2701 = dma.done.wait [#allocation6], 2560  }
  0x49   :  { %2702 = vsyncadd [#allocation6], 4294964736 }
  0x4a   :  { %2703 = dma.done.wait [#allocation9], 4096  }
  0x4b   :  { %2704 = vsyncadd [#allocation9], 4294963200  ;;  %v2717_v0 = vmov 0.0|0.0   ;;  %v144_v1 = vld [vmem:[%s3535_s2] sm:$0xff]  ;;  %v145_v2 = vld [vmem:[%s3535_s2 + $0x8] sm:$0xff]  ;;  %vm2718_vm0 = vmmov 0  }
  0x4c   :  { %2175 = vmatprep.subr.bf16.mxu0 %v2717_v0  ;;  %2223 = vmatprep.subr.bf16.mxu1 %v2717_v0  ;;  %v146_v3 = vld [vmem:[%s3535_s2 + $0x10] sm:$0xff]  ;;  %v2176_v4 = vpack.c.bf16 %v145_v2, %v144_v1  ;;  %v147_v5 = vld [vmem:[%s3535_s2 + $0x18] sm:$0xff]  ;;  %v148_v7 = vld [vmem:[%s3535_s2 + $0x20] sm:$0xff]  ;;  %vm973_vm1 = vcmask 1045504   ;;  %vm2720_vm2 = vmmov 1   ;;  %vm897_vm4 = vcmask 244736  }
  0x4d   :  { %v2179_v6 = vpack.c.bf16 %v147_v5, %v146_v3  ;;  %v149_v8 = vld [vmem:[%s3535_s2 + $0x28] sm:$0xff]  ;;  %v150_v10 = vld [vmem:[%s3535_s2 + $0x30] sm:$0xff]  ;;  %v151_v11 = vld [vmem:[%s3535_s2 + $0x38] sm:$0xff]  ;;  %s2722_s6 = smov [#allocation11]  }
  0x4e   :  { %2177 = vmatpush1.bf16.msra.mxu0 %v2176_v4  ;;  %v2182_v9 = vpack.c.bf16 %v149_v8, %v148_v7  ;;  %v95_v12 = vld [vmem:[#allocation2 + $0x8] sm:$0xff]  ;;  %v2185_v13 = vpack.c.bf16 %v151_v11, %v150_v10  ;;  %v152_v14 = vld [vmem:[%s3535_s2 + $0x40] sm:$0xff]  ;;  %v154_v17 = vld [vmem:[%s3535_s2 + $0x50] sm:$0xff]  ;;  %s1818_s26 = sshll.u32 %s2722_s6, 4  ;;  %s1819_s26 = int_to_ptr.vmem [resolvable:$true] %s1818_s26 }
  0x4f   :  { %2178 = vmatprep.subr.bf16.mxu0 %v2717_v0  ;;  %247 = vmatprep.mubr.f32.mxu0 %v95_v12  ;;  %v153_v15 = vld [vmem:[%s3535_s2 + $0x48] sm:$0xff]  ;;  %v155_v18 = vld [vmem:[%s3535_s2 + $0x58] sm:$0xff]  ;;  %v156_v20 = vld [vmem:[%s3535_s2 + $0x60] sm:$0xff]  ;;  %s2655_s16 = scalar_lea.vmem %s1819_s26, 3200  ;;  %p2660_p5 = scmp.lt.s32.totalorder %s1819_s26, %s1819_s26 }
  0x50   :  { %v2188_v16 = vpack.c.bf16 %v153_v15, %v152_v14  ;;  %v2191_v19 = vpack.c.bf16 %v155_v18, %v154_v17  ;;  %v157_v21 = vld [vmem:[%s3535_s2 + $0x68] sm:$0xff]  ;;  %v158_v23 = vld [vmem:[%s3535_s2 + $0x70] sm:$0xff]  ;;  %v159_v24 = vld [vmem:[%s3535_s2 + $0x78] sm:$0xff]  ;;  %p2656_p4 = scmp.ne.s32.totalorder %s1819_s26, %s2655_s16  ;;  %p2661_p6 = scmp.lt.s32.totalorder %s2655_s16, %s2655_s16 }
  0x51   :  { %v2194_v22 = vpack.c.bf16 %v157_v21, %v156_v20  ;;  %v2197_v25 = vpack.c.bf16 %v159_v24, %v158_v23  ;;  %v160_v26 = vld [vmem:[%s3535_s2 + $0x80] sm:$0xff]  ;;  %v161_v27 = vld [vmem:[%s3535_s2 + $0x88] sm:$0xff]  ;;  %v162_v29 = vld [vmem:[%s3535_s2 + $0x90] sm:$0xff] }
  0x52   :  { %2180 = vmatpush1.bf16.msra.mxu0 %v2179_v6  ;;  %v2200_v28 = vpack.c.bf16 %v161_v27, %v160_v26  ;;  %v163_v30 = vld [vmem:[%s3535_s2 + $0x98] sm:$0xff]  ;;  %v398_v31 = vld [vmem:[#allocation5] sm:$0xff]  ;;  %v400_v33 = vld [vmem:[#allocation5 + $0x10] sm:$0xff]  ;;  %p2662_p7 = por %p2661_p6, %p2660_p5 }
  0x53   :  { %2181 = vmatprep.subr.bf16.mxu0 %v2717_v0  ;;  %v399_v32 = vld [vmem:[#allocation5 + $0x8] sm:$0xff]  ;;  %v2203_v34 = vpack.c.bf16 %v163_v30, %v162_v29  ;;  %v401_v36 = vld [vmem:[#allocation5 + $0x18] sm:$0xff]  ;;  %v164_v37 = vld [vmem:[%s3535_s2 + $0xa0] sm:$0xff] }
  0x54   :  { %v2224_v35 = vpack.c.bf16 %v399_v32, %v398_v31  ;;  %v165_v38 = vld [vmem:[%s3535_s2 + $0xa8] sm:$0xff]  ;;  %v2227_v39 = vpack.c.bf16 %v401_v36, %v400_v33  ;;  %v402_v40 = vld [vmem:[#allocation5 + $0x20] sm:$0xff]  ;;  %v403_v41 = vld [vmem:[#allocation5 + $0x28] sm:$0xff]  ;;  %p2663_p8 = pnand %p2662_p7, %p2656_p4 }
  0x55   :  { %v2206_v42 = vpack.c.bf16 %v165_v38, %v164_v37  ;;  %v166_v43 = vld [vmem:[%s3535_s2 + $0xb0] sm:$0xff]  ;;  %v167_v44 = vld [vmem:[%s3535_s2 + $0xb8] sm:$0xff]  ;;  %v2230_v45 = vpack.c.bf16 %v403_v41, %v402_v40  ;;  %v404_v46 = vld [vmem:[#allocation5 + $0x30] sm:$0xff] }
  0x56   :  { %2183 = vmatpush1.bf16.msra.mxu0 %v2182_v9  ;;  %2225 = vmatpush3.bf16.msra.mxu1 %v2224_v35  ;;  %v405_v47 = vld [vmem:[#allocation5 + $0x38] sm:$0xff]  ;;  %v2209_v48 = vpack.c.bf16 %v167_v44, %v166_v43  ;;  %v168_v49 = vld [vmem:[%s3535_s2 + $0xc0] sm:$0xff]  ;;  %v406_v52 = vld [vmem:[#allocation5 + $0x40] sm:$0xff] }
  0x57   :  { %2184 = vmatprep.subr.bf16.mxu0 %v2717_v0  ;;  %2226 = vmatprep.subr.bf16.mxu1 %v2717_v0  ;;  %v169_v50 = vld [vmem:[%s3535_s2 + $0xc8] sm:$0xff]  ;;  %v2233_v51 = vpack.c.bf16 %v405_v47, %v404_v46  ;;  %v407_v53 = vld [vmem:[#allocation5 + $0x48] sm:$0xff]  ;;  %v170_v55 = vld [vmem:[%s3535_s2 + $0xd0] sm:$0xff] }
  0x58   :  { %v2212_v54 = vpack.c.bf16 %v169_v50, %v168_v49  ;;  %v171_v56 = vld [vmem:[%s3535_s2 + $0xd8] sm:$0xff]  ;;  %v2236_v57 = vpack.c.bf16 %v407_v53, %v406_v52  ;;  %v408_v58 = vld [vmem:[#allocation5 + $0x50] sm:$0xff]  ;;  %v409_v59 = vld [vmem:[#allocation5 + $0x58] sm:$0xff] }
  0x59   :  { %v2215_v60 = vpack.c.bf16 %v171_v56, %v170_v55  ;;  %v172_v61 = vld [vmem:[%s3535_s2 + $0xe0] sm:$0xff]  ;;  %v173_v62 = vld [vmem:[%s3535_s2 + $0xe8] sm:$0xff]  ;;  %v2239_v63 = vpack.c.bf16 %v409_v59, %v408_v58  ;;  %v410_v1 = vld [vmem:[#allocation5 + $0x60] sm:$0xff] }
  0x5a   :  { %2186 = vmatpush1.bf16.msra.mxu0 %v2185_v13  ;;  %2228 = vmatpush3.bf16.msra.mxu1 %v2227_v39  ;;  %v411_v2 = vld [vmem:[#allocation5 + $0x68] sm:$0xff]  ;;  %v2218_v3 = vpack.c.bf16 %v173_v62, %v172_v61  ;;  %v174_v4 = vld [vmem:[%s3535_s2 + $0xf0] sm:$0xff]  ;;  %v94_v8 = vld [vmem:[#allocation2] sm:$0xff] }
  0x5b   :  { %2187 = vmatprep.subr.bf16.mxu0 %v2717_v0  ;;  %2229 = vmatprep.subr.bf16.mxu1 %v2717_v0  ;;  %v175_v5 = vld [vmem:[%s3535_s2 + $0xf8] sm:$0xff]  ;;  %v2242_v6 = vpack.c.bf16 %v411_v2, %v410_v1  ;;  %v96_v10 = vld [vmem:[#allocation2 + $0x10] sm:$0xff]  ;;  %v99_v11 = vld [vmem:[#allocation2 + $0x28] sm:$0xff] }
  0x5c   :  { %v2221_v7 = vpack.c.bf16 %v175_v5, %v174_v4  ;;  %v97_v9 = vld [vmem:[#allocation2 + $0x18] sm:$0xff]  ;;  %v98_v12 = vld [vmem:[#allocation2 + $0x20] sm:$0xff]  ;;  %v100_v14 = vld [vmem:[#allocation2 + $0x30] sm:$0xff] }
  0x5d   :  { %v101_v13 = vld [vmem:[#allocation2 + $0x38] sm:$0xff]  ;;  %v103_v15 = vld [vmem:[#allocation2 + $0x48] sm:$0xff]  ;;  %v104_v18 = vld [vmem:[#allocation2 + $0x50] sm:$0xff] }
  0x5e   :  { %2189 = vmatpush1.bf16.msra.mxu0 %v2188_v16  ;;  %2231 = vmatpush3.bf16.msra.mxu1 %v2230_v45  ;;  %v102_v16 = vld [vmem:[#allocation2 + $0x40] sm:$0xff]  ;;  %v105_v17 = vld [vmem:[#allocation2 + $0x58] sm:$0xff]  ;;  %v111_v23 = vld [vmem:[#allocation2 + $0x88] sm:$0xff] }
  0x5f   :  { %2190 = vmatprep.subr.bf16.mxu0 %v2717_v0  ;;  %2232 = vmatprep.subr.bf16.mxu1 %v2717_v0  ;;  %v106_v20 = vld [vmem:[#allocation2 + $0x60] sm:$0xff]  ;;  %v109_v21 = vld [vmem:[#allocation2 + $0x78] sm:$0xff]  ;;  %v112_v26 = vld [vmem:[#allocation2 + $0x90] sm:$0xff] }
  0x60   :  { %v110_v24 = vld [vmem:[#allocation2 + $0x80] sm:$0xff]  ;;  %v115_v27 = vld [vmem:[#allocation2 + $0xa8] sm:$0xff]  ;;  %v117_v29 = vld [vmem:[#allocation2 + $0xb8] sm:$0xff] }
  0x61   :  { %v116_v30 = vld [vmem:[#allocation2 + $0xb0] sm:$0xff]  ;;  %v119_v31 = vld [vmem:[#allocation2 + $0xc8] sm:$0xff]  ;;  %v118_v32 = vld [vmem:[#allocation2 + $0xc0] sm:$0xff] }
  0x62   :  { %2192 = vmatpush1.bf16.msra.mxu0 %v2191_v19  ;;  %2234 = vmatpush3.bf16.msra.mxu1 %v2233_v51  ;;  %v107_v19 = vld [vmem:[#allocation2 + $0x68] sm:$0xff]  ;;  %v121_v33 = vld [vmem:[#allocation2 + $0xd8] sm:$0xff]  ;;  %v122_v36 = vld [vmem:[#allocation2 + $0xe0] sm:$0xff] }
  0x63   :  { %2193 = vmatprep.subr.bf16.mxu0 %v2717_v0  ;;  %2235 = vmatprep.subr.bf16.mxu1 %v2717_v0  ;;  %v123_v35 = vld [vmem:[#allocation2 + $0xe8] sm:$0xff]  ;;  %v125_v37 = vld [vmem:[#allocation2 + $0xf8] sm:$0xff]  ;;  %v124_v38 = vld [vmem:[#allocation2 + $0xf0] sm:$0xff] }
  0x64   :  { %v127_v39 = vld [vmem:[#allocation2 + $0x108] sm:$0xff]  ;;  %v126_v40 = vld [vmem:[#allocation2 + $0x100] sm:$0xff]  ;;  %v129_v41 = vld [vmem:[#allocation2 + $0x118] sm:$0xff] }
  0x65   :  { %v131_v43 = vld [vmem:[#allocation2 + $0x128] sm:$0xff]  ;;  %v130_v44 = vld [vmem:[#allocation2 + $0x120] sm:$0xff]  ;;  %v133_v45 = vld [vmem:[#allocation2 + $0x138] sm:$0xff] }
  0x66   :  { %2195 = vmatpush1.bf16.msra.mxu0 %v2194_v22  ;;  %2237 = vmatpush3.bf16.msra.mxu1 %v2236_v57  ;;  %v108_v22 = vld [vmem:[#allocation2 + $0x70] sm:$0xff]  ;;  %v135_v47 = vld [vmem:[#allocation2 + $0x148] sm:$0xff]  ;;  %v137_v49 = vld [vmem:[#allocation2 + $0x158] sm:$0xff]  ;;  %v2719_v57 = vmov 0.0  }
  0x67   :  { %2196 = vmatprep.subr.bf16.mxu0 %v2717_v0  ;;  %2238 = vmatprep.subr.bf16.mxu1 %v2717_v0  ;;  %v132_v46 = vld [vmem:[#allocation2 + $0x130] sm:$0xff]  ;;  %v139_v51 = vld [vmem:[#allocation2 + $0x168] sm:$0xff]  ;;  %v412_v52 = vld [vmem:[#allocation5 + $0x70] sm:$0xff] }
  0x68   :  { %v136_v50 = vld [vmem:[#allocation2 + $0x150] sm:$0xff]  ;;  %v413_v53 = vld [vmem:[#allocation5 + $0x78] sm:$0xff]  ;;  %v138_v55 = vld [vmem:[#allocation2 + $0x160] sm:$0xff]  ;;  %2017 = vmatprep.mubr.msk.f32.mxu1 %vm2718_vm0, %v2719_v57 }
  0x69   :  { %v141_v56 = vld [vmem:[#allocation2 + $0x178] sm:$0xff]  ;;  %v140_v58 = vld [vmem:[#allocation2 + $0x170] sm:$0xff]  ;;  %v143_v59 = vld [vmem:[#allocation2 + $0x188] sm:$0xff] }
  0x6a   :  { %2198 = vmatpush1.bf16.msra.mxu0 %v2197_v25  ;;  %2240 = vmatpush3.bf16.msra.mxu1 %v2239_v63  ;;  %v113_v25 = vld [vmem:[#allocation2 + $0x98] sm:$0xff]  ;;  %v2978_v61 = vld [vmem:[%s3536_s3] ss:$0 sm:$0xff]  ;;  %vm2252_vm3 = vmpackc.low %vm973_vm1, %vm2720_vm2 }
  0x6b   :  { %2199 = vmatprep.subr.bf16.mxu0 %v2717_v0  ;;  %2241 = vmatprep.subr.bf16.mxu1 %v2717_v0 }
  0x6e   :  { %2201 = vmatpush1.bf16.msra.mxu0 %v2200_v28  ;;  %2243 = vmatpush3.bf16.msra.mxu1 %v2242_v6  ;;  %v114_v28 = vld [vmem:[#allocation2 + $0xa0] sm:$0xff] }
  0x6f   :  { %2202 = vmatprep.subr.bf16.mxu0 %v2717_v0  ;;  %2244 = vmatprep.subr.bf16.mxu1 %v2717_v0 }
  0x72   :  { %2204 = vmatpush1.bf16.msra.mxu0 %v2203_v34  ;;  %v120_v34 = vld [vmem:[#allocation2 + $0xd0] sm:$0xff] }
  0x73   :  { %2205 = vmatprep.subr.bf16.mxu0 %v2717_v0 }
  0x76   :  { %2207 = vmatpush1.bf16.msra.mxu0 %v2206_v42  ;;  %v128_v42 = vld [vmem:[#allocation2 + $0x110] sm:$0xff] }
  0x77   :  { %2208 = vmatprep.subr.bf16.mxu0 %v2717_v0 }
  0x7a   :  { %2210 = vmatpush1.bf16.msra.mxu0 %v2209_v48  ;;  %v134_v48 = vld [vmem:[#allocation2 + $0x140] sm:$0xff] }
  0x7b   :  { %2211 = vmatprep.subr.bf16.mxu0 %v2717_v0 }
  0x7e   :  { %2213 = vmatpush1.bf16.msra.mxu0 %v2212_v54  ;;  %v2245_v54 = vpack.c.bf16 %v413_v53, %v412_v52 }
  0x7f   :  { %2214 = vmatprep.subr.bf16.mxu0 %v2717_v0 }
  0x80   :  { %2246 = vmatpush3.bf16.msra.mxu1 %v2245_v54 }
  0x81   :  { %2247 = vmatprep.subr.bf16.mxu1 %v2717_v0 }
  0x82   :  { %2216 = vmatpush1.bf16.msra.mxu0 %v2215_v60  ;;  %v142_v60 = vld [vmem:[#allocation2 + $0x180] sm:$0xff] }
  0x83   :  { %2217 = vmatprep.subr.bf16.mxu0 %v2717_v0 }
  0x86   :  { %2219 = vmatpush1.bf16.msra.mxu0 %v2218_v3 }
  0x87   :  { %2220 = vmatprep.subr.bf16.mxu0 %v2717_v0 }
  0x8a   :  { %2222 = vmatpush1.bf16.msra.mxu0 %v2221_v7 }
  0x8d   :  { %248 = vmatmul.mubr.f32.vlgmr.msra.gmra.mrb[0].mxu0 %v94_v8 }
  0x8e   :  { %252 = vmatprep.mubr.f32.mxu0 %v97_v9 }
  0x91   :  { %253 = vmatmul.mubr.f32.gmra.mrb[2].mxu0 %v96_v10 }
  0x92   :  { %257 = vmatprep.mubr.f32.mxu0 %v99_v11 }
  0x95   :  { %258 = vmatmul.mubr.f32.gmra.mrb[4].mxu0 %v98_v12 }
  0x96   :  { %262 = vmatprep.mubr.f32.mxu0 %v101_v13 }
  0x99   :  { %263 = vmatmul.mubr.f32.gmra.mrb[6].mxu0 %v100_v14 }
  0x9a   :  { %267 = vmatprep.mubr.f32.mxu0 %v103_v15 }
  0x9d   :  { %268 = vmatmul.mubr.f32.gmra.mrb[8].mxu0 %v102_v16 }
  0x9e   :  { %272 = vmatprep.mubr.f32.mxu0 %v105_v17 }
  0xa1   :  { %273 = vmatmul.mubr.f32.gmra.mrb[10].mxu0 %v104_v18 }
  0xa2   :  { %277 = vmatprep.mubr.f32.mxu0 %v107_v19 }
  0xa5   :  { %278 = vmatmul.mubr.f32.gmra.mrb[12].mxu0 %v106_v20 }
  0xa6   :  { %282 = vmatprep.mubr.f32.mxu0 %v109_v21 }
  0xa9   :  { %283 = vmatmul.mubr.f32.gmra.mrb[14].mxu0 %v108_v22 }
  0xaa   :  { %287 = vmatprep.mubr.f32.mxu0 %v111_v23 }
  0xad   :  { %288 = vmatmul.mubr.f32.gmra.mrb[16].mxu0 %v110_v24 }
  0xae   :  { %292 = vmatprep.mubr.f32.mxu0 %v113_v25 }
  0xb1   :  { %293 = vmatmul.mubr.f32.gmra.mrb[18].mxu0 %v112_v26 }
  0xb2   :  { %297 = vmatprep.mubr.f32.mxu0 %v115_v27 }
  0xb5   :  { %298 = vmatmul.mubr.f32.gmra.mrb[20].mxu0 %v114_v28 }
  0xb6   :  { %302 = vmatprep.mubr.f32.mxu0 %v117_v29 }
  0xb9   :  { %303 = vmatmul.mubr.f32.gmra.mrb[22].mxu0 %v116_v30 }
  0xba   :  { %307 = vmatprep.mubr.f32.mxu0 %v119_v31 }
  0xbd   :  { %308 = vmatmul.mubr.f32.gmra.mrb[24].mxu0 %v118_v32 }
  0xbe   :  { %312 = vmatprep.mubr.f32.mxu0 %v121_v33 }
  0xc1   :  { %313 = vmatmul.mubr.f32.gmra.mrb[26].mxu0 %v120_v34 }
  0xc2   :  { %317 = vmatprep.mubr.f32.mxu0 %v123_v35 }
  0xc5   :  { %318 = vmatmul.mubr.f32.gmra.mrb[28].mxu0 %v122_v36 }
  0xc6   :  { %322 = vmatprep.mubr.f32.mxu0 %v125_v37 }
  0xc9   :  { %323 = vmatmul.mubr.f32.gmra.mrb[30].mxu0 %v124_v38 }
  0xca   :  { %327 = vmatprep.mubr.f32.mxu0 %v127_v39 }
  0xcd   :  { %328 = vmatmul.mubr.f32.gmra.mrb[32].mxu0 %v126_v40 }
  0xce   :  { %332 = vmatprep.mubr.f32.mxu0 %v129_v41 }
  0xd1   :  { %333 = vmatmul.mubr.f32.gmra.mrb[34].mxu0 %v128_v42 }
  0xd2   :  { %337 = vmatprep.mubr.f32.mxu0 %v131_v43 }
  0xd5   :  { %338 = vmatmul.mubr.f32.gmra.mrb[36].mxu0 %v130_v44 }
  0xd6   :  { %342 = vmatprep.mubr.f32.mxu0 %v133_v45 }
  0xd9   :  { %343 = vmatmul.mubr.f32.gmra.mrb[38].mxu0 %v132_v46 }
  0xda   :  { %347 = vmatprep.mubr.f32.mxu0 %v135_v47 }
  0xdd   :  { %348 = vmatmul.mubr.f32.gmra.mrb[40].mxu0 %v134_v48 }
  0xde   :  { %352 = vmatprep.mubr.f32.mxu0 %v137_v49 }
  0xe1   :  { %353 = vmatmul.mubr.f32.gmra.mrb[42].mxu0 %v136_v50 }
  0xe2   :  { %357 = vmatprep.mubr.f32.mxu0 %v139_v51 }
  0xe5   :  { %358 = vmatmul.mubr.f32.gmra.mrb[44].mxu0 %v138_v55 }
  0xe6   :  { %362 = vmatprep.mubr.f32.mxu0 %v141_v56 }
  0xe9   :  { %363 = vmatmul.mubr.f32.gmra.mrb[46].mxu0 %v140_v58 }
  0xea   :  { %367 = vmatprep.mubr.f32.mxu0 %v143_v59 }
  0xed   :  { %368 = vmatmul.mubr.f32.gmra.mrb[48].mxu0 %v142_v60 }
  0xee   :  { %1300 = vmatprep.mubr.f32.mxu0 %v2719_v57 }
 0x160   :  { %v249_v62 = vpop.f32.mrb[0].mxu0 }
 0x161   :  { %v250_v63 = vadd.f32 %v2978_v61, %v249_v62  ;;  %v251_v1 = vpop.f32.mrb[1].mxu0 }
 0x163   :  { %v373_v2 = vmax.f32 %v250_v63, 0.0 }
 0x164   :  { %v254_v3 = vpop.f32.mrb[2].mxu0 }
 0x165   :  { %v255_v4 = vadd.f32 %v2978_v61, %v254_v3  ;;  %v256_v5 = vpop.f32.mrb[3].mxu0  ;;  %2018 = vmatmul.mubr.f32.vlgmr.msra.gmra.mrb[0].mxu1 %v373_v2 }
 0x166   :  { %2020 = vmatprep.mubr.msk.f32.mxu1 %vm2718_vm0, %v2719_v57 }
 0x167   :  { %v374_v6 = vmax.f32 %v255_v4, 0.0 }
 0x168   :  { %v259_v7 = vpop.f32.mrb[4].mxu0 }
 0x169   :  { %v260_v8 = vadd.f32 %v2978_v61, %v259_v7  ;;  %v261_v9 = vpop.f32.mrb[5].mxu0  ;;  %2021 = vmatmul.mubr.f32.gmra.mrb[2].mxu1 %v374_v6 }
 0x16a   :  { %2023 = vmatprep.mubr.msk.f32.mxu1 %vm2718_vm0, %v2719_v57 }
 0x16b   :  { %v375_v10 = vmax.f32 %v260_v8, 0.0 }
 0x16c   :  { %v264_v11 = vpop.f32.mrb[6].mxu0 }
 0x16d   :  { %v265_v12 = vadd.f32 %v2978_v61, %v264_v11  ;;  %v266_v13 = vpop.f32.mrb[7].mxu0  ;;  %2024 = vmatmul.mubr.f32.gmra.mrb[4].mxu1 %v375_v10 }
 0x16e   :  { %2026 = vmatprep.mubr.msk.f32.mxu1 %vm2718_vm0, %v2719_v57 }
 0x16f   :  { %v376_v14 = vmax.f32 %v265_v12, 0.0 }
 0x170   :  { %v269_v15 = vpop.f32.mrb[8].mxu0 }
 0x171   :  { %v270_v16 = vadd.f32 %v2978_v61, %v269_v15  ;;  %v271_v17 = vpop.f32.mrb[9].mxu0  ;;  %2027 = vmatmul.mubr.f32.gmra.mrb[6].mxu1 %v376_v14 }
 0x172   :  { %2029 = vmatprep.mubr.msk.f32.mxu1 %vm2718_vm0, %v2719_v57 }
 0x173   :  { %v377_v18 = vmax.f32 %v270_v16, 0.0 }
 0x174   :  { %v274_v19 = vpop.f32.mrb[10].mxu0 }
 0x175   :  { %v275_v20 = vadd.f32 %v2978_v61, %v274_v19  ;;  %v276_v21 = vpop.f32.mrb[11].mxu0  ;;  %2030 = vmatmul.mubr.f32.gmra.mrb[8].mxu1 %v377_v18 }
 0x176   :  { %2032 = vmatprep.mubr.msk.f32.mxu1 %vm2718_vm0, %v2719_v57 }
 0x177   :  { %v378_v22 = vmax.f32 %v275_v20, 0.0 }
 0x178   :  { %v279_v23 = vpop.f32.mrb[12].mxu0 }
 0x179   :  { %v280_v24 = vadd.f32 %v2978_v61, %v279_v23  ;;  %v281_v25 = vpop.f32.mrb[13].mxu0  ;;  %2033 = vmatmul.mubr.f32.gmra.mrb[10].mxu1 %v378_v22 }
 0x17a   :  { %2035 = vmatprep.mubr.msk.f32.mxu1 %vm2718_vm0, %v2719_v57 }
 0x17b   :  { %v379_v26 = vmax.f32 %v280_v24, 0.0 }
 0x17c   :  { %v284_v27 = vpop.f32.mrb[14].mxu0 }
 0x17d   :  { %v285_v28 = vadd.f32 %v2978_v61, %v284_v27  ;;  %v286_v29 = vpop.f32.mrb[15].mxu0  ;;  %2036 = vmatmul.mubr.f32.gmra.mrb[12].mxu1 %v379_v26 }
 0x17e   :  { %2038 = vmatprep.mubr.msk.f32.mxu1 %vm2718_vm0, %v2719_v57 }
 0x17f   :  { %v380_v30 = vmax.f32 %v285_v28, 0.0 }
 0x180   :  { %v289_v31 = vpop.f32.mrb[16].mxu0 }
 0x181   :  { %v290_v32 = vadd.f32 %v2978_v61, %v289_v31  ;;  %v291_v33 = vpop.f32.mrb[17].mxu0  ;;  %2039 = vmatmul.mubr.f32.gmra.mrb[14].mxu1 %v380_v30 }
 0x182   :  { %2041 = vmatprep.mubr.msk.f32.mxu1 %vm2718_vm0, %v2719_v57 }
 0x183   :  { %v381_v34 = vmax.f32 %v290_v32, 0.0 }
 0x184   :  { %v294_v35 = vpop.f32.mrb[18].mxu0 }
 0x185   :  { %v295_v36 = vadd.f32 %v2978_v61, %v294_v35  ;;  %v296_v37 = vpop.f32.mrb[19].mxu0  ;;  %2042 = vmatmul.mubr.f32.gmra.mrb[16].mxu1 %v381_v34 }
 0x186   :  { %2044 = vmatprep.mubr.msk.f32.mxu1 %vm2718_vm0, %v2719_v57 }
 0x187   :  { %v382_v38 = vmax.f32 %v295_v36, 0.0 }
 0x188   :  { %v299_v39 = vpop.f32.mrb[20].mxu0 }
 0x189   :  { %v300_v40 = vadd.f32 %v2978_v61, %v299_v39  ;;  %v301_v41 = vpop.f32.mrb[21].mxu0  ;;  %2045 = vmatmul.mubr.f32.gmra.mrb[18].mxu1 %v382_v38  ;;  %v886_v38 = vld [vmem:[#allocation7] sm:$0xff]  ;;  %v887_v39 = vld [vmem:[#allocation7 + $0x8] sm:$0xff] }
 0x18a   :  { %2047 = vmatprep.mubr.msk.f32.mxu1 %vm2718_vm0, %v2719_v57  ;;  %v888_v41 = vld [vmem:[#allocation7 + $0x10] sm:$0xff] }
 0x18b   :  { %v383_v42 = vmax.f32 %v300_v40, 0.0  ;;  %v2248_v40 = vpack.c.bf16 %v887_v39, %v886_v38 }
 0x18c   :  { %v304_v43 = vpop.f32.mrb[22].mxu0 }
 0x18d   :  { %v305_v44 = vadd.f32 %v2978_v61, %v304_v43  ;;  %v306_v45 = vpop.f32.mrb[23].mxu0  ;;  %2048 = vmatmul.mubr.f32.gmra.mrb[20].mxu1 %v383_v42  ;;  %v889_v42 = vld [vmem:[#allocation7 + $0x18] sm:$0x3f]  ;;  %v3059_v43 = vld [vmem:[%s3538_s5] ss:$0 sm:$0xff]  ;;  %s2721_s5 = smov 64  }
 0x18e   :  { %2050 = vmatprep.mubr.msk.f32.mxu1 %vm2718_vm0, %v2719_v57  ;;  %2249 = vmatpush3.bf16.msra.mxu1 %v2248_v40 }
 0x18f   :  { %v384_v46 = vmax.f32 %v305_v44, 0.0  ;;  %2250 = vmatprep.subr.bf16.mxu1 %v2717_v0 }
 0x190   :  { %v309_v47 = vpop.f32.mrb[24].mxu0 }
 0x191   :  { %v310_v48 = vadd.f32 %v2978_v61, %v309_v47  ;;  %v311_v49 = vpop.f32.mrb[25].mxu0  ;;  %2051 = vmatmul.mubr.f32.gmra.mrb[22].mxu1 %v384_v46 }
 0x192   :  { %2053 = vmatprep.mubr.msk.f32.mxu1 %vm2718_vm0, %v2719_v57 }
 0x193   :  { %v385_v50 = vmax.f32 %v310_v48, 0.0 }
 0x194   :  { %v314_v51 = vpop.f32.mrb[26].mxu0 }
 0x195   :  { %v315_v52 = vadd.f32 %v2978_v61, %v314_v51  ;;  %v316_v53 = vpop.f32.mrb[27].mxu0  ;;  %2054 = vmatmul.mubr.f32.gmra.mrb[24].mxu1 %v385_v50 }
 0x196   :  { %2056 = vmatprep.mubr.msk.f32.mxu1 %vm2718_vm0, %v2719_v57 }
 0x197   :  { %v386_v54 = vmax.f32 %v315_v52, 0.0 }
 0x198   :  { %v319_v55 = vpop.f32.mrb[28].mxu0 }
 0x199   :  { %v320_v56 = vadd.f32 %v2978_v61, %v319_v55  ;;  %v321_v58 = vpop.f32.mrb[29].mxu0  ;;  %2057 = vmatmul.mubr.f32.gmra.mrb[26].mxu1 %v386_v54 }
 0x19a   :  { %2059 = vmatprep.mubr.msk.f32.mxu1 %vm2718_vm0, %v2719_v57 }
 0x19b   :  { %v387_v59 = vmax.f32 %v320_v56, 0.0 }
 0x19c   :  { %v324_v60 = vpop.f32.mrb[30].mxu0 }
 0x19d   :  { %v325_v62 = vadd.f32 %v2978_v61, %v324_v60  ;;  %v326_v63 = vpop.f32.mrb[31].mxu0  ;;  %2060 = vmatmul.mubr.f32.gmra.mrb[28].mxu1 %v387_v59 }
 0x19e   :  { %2062 = vmatprep.mubr.msk.f32.mxu1 %vm2718_vm0, %v2719_v57 }
 0x19f   :  { %v388_v1 = vmax.f32 %v325_v62, 0.0 }
 0x1a0   :  { %v329_v2 = vpop.f32.mrb[32].mxu0 }
 0x1a1   :  { %v330_v3 = vadd.f32 %v2978_v61, %v329_v2  ;;  %v331_v4 = vpop.f32.mrb[33].mxu0  ;;  %2063 = vmatmul.mubr.f32.gmra.mrb[30].mxu1 %v388_v1 }
 0x1a2   :  { %2065 = vmatprep.mubr.msk.f32.mxu1 %vm2718_vm0, %v2719_v57 }
 0x1a3   :  { %v389_v5 = vmax.f32 %v330_v3, 0.0 }
 0x1a4   :  { %v334_v6 = vpop.f32.mrb[34].mxu0 }
 0x1a5   :  { %v335_v7 = vadd.f32 %v2978_v61, %v334_v6  ;;  %v336_v8 = vpop.f32.mrb[35].mxu0  ;;  %2066 = vmatmul.mubr.f32.gmra.mrb[32].mxu1 %v389_v5 }
 0x1a6   :  { %2068 = vmatprep.mubr.msk.f32.mxu1 %vm2718_vm0, %v2719_v57 }
 0x1a7   :  { %v390_v9 = vmax.f32 %v335_v7, 0.0 }
 0x1a8   :  { %v339_v10 = vpop.f32.mrb[36].mxu0 }
 0x1a9   :  { %v340_v11 = vadd.f32 %v2978_v61, %v339_v10  ;;  %v341_v12 = vpop.f32.mrb[37].mxu0  ;;  %2069 = vmatmul.mubr.f32.gmra.mrb[34].mxu1 %v390_v9 }
 0x1aa   :  { %2071 = vmatprep.mubr.msk.f32.mxu1 %vm2718_vm0, %v2719_v57 }
 0x1ab   :  { %v391_v13 = vmax.f32 %v340_v11, 0.0 }
 0x1ac   :  { %v344_v14 = vpop.f32.mrb[38].mxu0 }
 0x1ad   :  { %v345_v15 = vadd.f32 %v2978_v61, %v344_v14  ;;  %v346_v16 = vpop.f32.mrb[39].mxu0  ;;  %2072 = vmatmul.mubr.f32.gmra.mrb[36].mxu1 %v391_v13 }
 0x1ae   :  { %2074 = vmatprep.mubr.msk.f32.mxu1 %vm2718_vm0, %v2719_v57 }
 0x1af   :  { %v392_v17 = vmax.f32 %v345_v15, 0.0 }
 0x1b0   :  { %v349_v18 = vpop.f32.mrb[40].mxu0 }
 0x1b1   :  { %v350_v19 = vadd.f32 %v2978_v61, %v349_v18  ;;  %v351_v20 = vpop.f32.mrb[41].mxu0  ;;  %2075 = vmatmul.mubr.f32.gmra.mrb[38].mxu1 %v392_v17 }
 0x1b2   :  { %2077 = vmatprep.mubr.msk.f32.mxu1 %vm2718_vm0, %v2719_v57 }
 0x1b3   :  { %v393_v21 = vmax.f32 %v350_v19, 0.0 }
 0x1b4   :  { %v354_v22 = vpop.f32.mrb[42].mxu0 }
 0x1b5   :  { %v355_v23 = vadd.f32 %v2978_v61, %v354_v22  ;;  %v356_v24 = vpop.f32.mrb[43].mxu0  ;;  %2078 = vmatmul.mubr.f32.gmra.mrb[40].mxu1 %v393_v21 }
 0x1b6   :  { %2080 = vmatprep.mubr.msk.f32.mxu1 %vm2718_vm0, %v2719_v57 }
 0x1b7   :  { %v394_v25 = vmax.f32 %v355_v23, 0.0 }
 0x1b8   :  { %v359_v26 = vpop.f32.mrb[44].mxu0 }
 0x1b9   :  { %v360_v27 = vadd.f32 %v2978_v61, %v359_v26  ;;  %v361_v28 = vpop.f32.mrb[45].mxu0  ;;  %2081 = vmatmul.mubr.f32.gmra.mrb[42].mxu1 %v394_v25 }
 0x1ba   :  { %2083 = vmatprep.mubr.msk.f32.mxu1 %vm2718_vm0, %v2719_v57 }
 0x1bb   :  { %v395_v29 = vmax.f32 %v360_v27, 0.0 }
 0x1bc   :  { %v364_v30 = vpop.f32.mrb[46].mxu0 }
 0x1bd   :  { %v365_v31 = vadd.f32 %v2978_v61, %v364_v30  ;;  %v366_v32 = vpop.f32.mrb[47].mxu0  ;;  %2084 = vmatmul.mubr.f32.gmra.mrb[44].mxu1 %v395_v29 }
 0x1be   :  { %2086 = vmatprep.mubr.msk.f32.mxu1 %vm2718_vm0, %v2719_v57 }
 0x1bf   :  { %v396_v33 = vmax.f32 %v365_v31, 0.0 }
 0x1c0   :  { %v369_v34 = vpop.f32.mrb[48].mxu0 }
 0x1c1   :  { %v370_v35 = vadd.f32 %v2978_v61, %v369_v34  ;;  %v371_v36 = vpop.f32.mrb[49].mxu0  ;;  %2087 = vmatmul.mubr.f32.gmra.mrb[46].mxu1 %v396_v33  ;;  %v2251_v61 = vpack.c.bf16 %v889_v42, %v888_v41 }
 0x1c2   :  { %2089 = vmatprep.mubr.msk.f32.mxu1 %vm2718_vm0, %v2719_v57 }
 0x1c3   :  { %v397_v37 = vmax.f32 %v370_v35, 0.0  ;;  %2253 = vmatpush3.bf16.msk.msra.mxu1 %vm2252_vm3, %v2251_v61 }
 0x1c5   :  { %2090 = vmatmul.mubr.f32.gmra.mrb[48].mxu1 %v397_v37 }
 0x1c6   :  { %2100 = vmatprep.mubr.msk.f32.mxu1 %vm2718_vm0, %v2719_v57 }
 0x238   :  { %v487_v44 = vpop.f32.mrb[0].mxu1 }
 0x239   :  { %v3062_v45 = vadd.f32 %v3059_v43, %v487_v44  ;;  %v2019_v46 = vpop.f32.mrb[1].mxu1 }
 0x23b   :  { %611 = vst [vmem:[#allocation11] sm:$0xff] %v3062_v45  ;;  %v661_v0 = vmul.f32 0.5, %v3062_v45 }
 0x23c   :  { %v492_v47 = vpop.f32.mrb[2].mxu1 }
 0x23d   :  { %v686_v48 = vmul.f32 1.442695, %v661_v0  ;;  %v3067_v49 = vadd.f32 %v3059_v43, %v492_v47  ;;  %v2022_v50 = vpop.f32.mrb[3].mxu1 }
 0x23f   :  { %2317 = vpow2.f32 %v686_v48  ;;  %612 = vst [vmem:[#allocation11 + $0x8] sm:$0xff] %v3067_v49  ;;  %v662_v51 = vmul.f32 0.5, %v3067_v49 }
 0x240   :  { %v497_v52 = vpop.f32.mrb[4].mxu1 }
 0x241   :  { %v688_v53 = vmul.f32 1.442695, %v662_v51  ;;  %v3072_v54 = vadd.f32 %v3059_v43, %v497_v52  ;;  %v2025_v55 = vpop.f32.mrb[5].mxu1 }
 0x243   :  { %2319 = vpow2.f32 %v688_v53  ;;  %613 = vst [vmem:[#allocation11 + $0x10] sm:$0xff] %v3072_v54  ;;  %v663_v56 = vmul.f32 0.5, %v3072_v54 }
 0x244   :  { %v502_v58 = vpop.f32.mrb[6].mxu1 }
 0x245   :  { %v690_v59 = vmul.f32 1.442695, %v663_v56  ;;  %v3077_v60 = vadd.f32 %v3059_v43, %v502_v58  ;;  %v2028_v62 = vpop.f32.mrb[7].mxu1 }
 0x247   :  { %2321 = vpow2.f32 %v690_v59  ;;  %614 = vst [vmem:[#allocation11 + $0x18] sm:$0xff] %v3077_v60  ;;  %v664_v63 = vmul.f32 0.5, %v3077_v60 }
 0x248   :  { %v507_v1 = vpop.f32.mrb[8].mxu1 }
 0x249   :  { %v2318_v2 = vpop.eup %2317  ;;  %v692_v3 = vmul.f32 1.442695, %v664_v63  ;;  %v3082_v4 = vadd.f32 %v3059_v43, %v507_v1  ;;  %v2031_v5 = vpop.f32.mrb[9].mxu1 }
 0x24a   :  { %761 = vrot.lane.b32.xlu0 %v2318_v2, %s2721_s5 }
 0x24b   :  { %2323 = vpow2.f32 %v692_v3  ;;  %615 = vst [vmem:[#allocation11 + $0x20] sm:$0xff] %v3082_v4  ;;  %v665_v6 = vmul.f32 0.5, %v3082_v4 }
 0x24c   :  { %v512_v7 = vpop.f32.mrb[10].mxu1 }
 0x24d   :  { %v2320_v8 = vpop.eup %2319  ;;  %v694_v9 = vmul.f32 1.442695, %v665_v6  ;;  %v3088_v10 = vadd.f32 %v3059_v43, %v512_v7  ;;  %v2034_v11 = vpop.f32.mrb[11].mxu1 }
 0x24e   :  { %763 = vrot.lane.b32.xlu0 %v2320_v8, %s2721_s5 }
 0x24f   :  { %2325 = vpow2.f32 %v694_v9  ;;  %616 = vst [vmem:[#allocation11 + $0x28] sm:$0xff] %v3088_v10  ;;  %v666_v12 = vmul.f32 0.5, %v3088_v10 }
 0x250   :  { %v517_v13 = vpop.f32.mrb[12].mxu1 }
 0x251   :  { %v2322_v14 = vpop.eup %2321  ;;  %v696_v15 = vmul.f32 1.442695, %v666_v12  ;;  %v3094_v16 = vadd.f32 %v3059_v43, %v517_v13  ;;  %v2037_v17 = vpop.f32.mrb[13].mxu1 }
 0x252   :  { %765 = vrot.lane.b32.xlu1 %v2322_v14, %s2721_s5 }
 0x253   :  { %2327 = vpow2.f32 %v696_v15  ;;  %617 = vst [vmem:[#allocation11 + $0x30] sm:$0xff] %v3094_v16  ;;  %v667_v18 = vmul.f32 0.5, %v3094_v16 }
 0x254   :  { %v522_v19 = vpop.f32.mrb[14].mxu1 }
 0x255   :  { %v2324_v20 = vpop.eup %2323  ;;  %v698_v21 = vmul.f32 1.442695, %v667_v18  ;;  %v3100_v22 = vadd.f32 %v3059_v43, %v522_v19  ;;  %v2040_v23 = vpop.f32.mrb[15].mxu1 }
 0x256   :  { %767 = vrot.lane.b32.xlu1 %v2324_v20, %s2721_s5 }
 0x257   :  { %2329 = vpow2.f32 %v698_v21  ;;  %618 = vst [vmem:[#allocation11 + $0x38] sm:$0xff] %v3100_v22  ;;  %v668_v24 = vmul.f32 0.5, %v3100_v22 }
 0x258   :  { %v527_v25 = vpop.f32.mrb[16].mxu1 }
 0x259   :  { %v2326_v26 = vpop.eup %2325  ;;  %v700_v27 = vmul.f32 1.442695, %v668_v24  ;;  %v3106_v28 = vadd.f32 %v3059_v43, %v527_v25  ;;  %v2043_v29 = vpop.f32.mrb[17].mxu1 }
 0x25a   :  { %769 = vrot.lane.b32.xlu0 %v2326_v26, %s2721_s5 }
 0x25b   :  { %2331 = vpow2.f32 %v700_v27  ;;  %619 = vst [vmem:[#allocation11 + $0x40] sm:$0xff] %v3106_v28  ;;  %v669_v30 = vmul.f32 0.5, %v3106_v28 }
 0x25c   :  { %v532_v31 = vpop.f32.mrb[18].mxu1 }
 0x25d   :  { %v2328_v32 = vpop.eup %2327  ;;  %v702_v33 = vmul.f32 1.442695, %v669_v30  ;;  %v3112_v34 = vadd.f32 %v3059_v43, %v532_v31  ;;  %v2046_v35 = vpop.f32.mrb[19].mxu1 }
 0x25e   :  { %771 = vrot.lane.b32.xlu1 %v2328_v32, %s2721_s5 }
 0x25f   :  { %2333 = vpow2.f32 %v702_v33  ;;  %620 = vst [vmem:[#allocation11 + $0x48] sm:$0xff] %v3112_v34  ;;  %v670_v36 = vmul.f32 0.5, %v3112_v34 }
 0x260   :  { %v537_v37 = vpop.f32.mrb[20].mxu1 }
 0x261   :  { %v2330_v38 = vpop.eup %2329  ;;  %v704_v39 = vmul.f32 1.442695, %v670_v36  ;;  %v3118_v40 = vadd.f32 %v3059_v43, %v537_v37  ;;  %v2049_v41 = vpop.f32.mrb[21].mxu1 }
 0x262   :  { %773 = vrot.lane.b32.xlu0 %v2330_v38, %s2721_s5 }
 0x263   :  { %2335 = vpow2.f32 %v704_v39  ;;  %621 = vst [vmem:[#allocation11 + $0x50] sm:$0xff] %v3118_v40  ;;  %v671_v42 = vmul.f32 0.5, %v3118_v40 }
 0x264   :  { %v542_v61 = vpop.f32.mrb[22].mxu1 }
 0x265   :  { %v2332_v44 = vpop.eup %2331  ;;  %v706_v46 = vmul.f32 1.442695, %v671_v42  ;;  %v3124_v0 = vadd.f32 %v3059_v43, %v542_v61  ;;  %v2052_v47 = vpop.f32.mrb[23].mxu1 }
 0x266   :  { %775 = vrot.lane.b32.xlu1 %v2332_v44, %s2721_s5 }
 0x267   :  { %2337 = vpow2.f32 %v706_v46  ;;  %622 = vst [vmem:[#allocation11 + $0x58] sm:$0xff] %v3124_v0  ;;  %v672_v48 = vmul.f32 0.5, %v3124_v0 }
 0x268   :  { %v547_v50 = vpop.f32.mrb[24].mxu1 }
 0x269   :  { %v2334_v51 = vpop.eup %2333  ;;  %v708_v52 = vmul.f32 1.442695, %v672_v48  ;;  %v3130_v53 = vadd.f32 %v3059_v43, %v547_v50  ;;  %v2055_v55 = vpop.f32.mrb[25].mxu1 }
 0x26a   :  { %777 = vrot.lane.b32.xlu0 %v2334_v51, %s2721_s5 }
 0x26b   :  { %2339 = vpow2.f32 %v708_v52  ;;  %623 = vst [vmem:[#allocation11 + $0x60] sm:$0xff] %v3130_v53  ;;  %v673_v56 = vmul.f32 0.5, %v3130_v53 }
 0x26c   :  { %v552_v58 = vpop.f32.mrb[26].mxu1 }
 0x26d   :  { %v2336_v59 = vpop.eup %2335  ;;  %v710_v62 = vmul.f32 1.442695, %v673_v56  ;;  %v3136_v63 = vadd.f32 %v3059_v43, %v552_v58  ;;  %v2058_v1 = vpop.f32.mrb[27].mxu1 }
 0x26e   :  { %779 = vrot.lane.b32.xlu1 %v2336_v59, %s2721_s5 }
 0x26f   :  { %2341 = vpow2.f32 %v710_v62  ;;  %624 = vst [vmem:[#allocation11 + $0x68] sm:$0xff] %v3136_v63  ;;  %v674_v2 = vmul.f32 0.5, %v3136_v63 }
 0x270   :  { %v557_v3 = vpop.f32.mrb[28].mxu1 }
 0x271   :  { %v2338_v5 = vpop.eup %2337  ;;  %v712_v6 = vmul.f32 1.442695, %v674_v2  ;;  %v3142_v7 = vadd.f32 %v3059_v43, %v557_v3  ;;  %v2061_v8 = vpop.f32.mrb[29].mxu1 }
 0x272   :  { %781 = vrot.lane.b32.xlu0 %v2338_v5, %s2721_s5 }
 0x273   :  { %2343 = vpow2.f32 %v712_v6  ;;  %625 = vst [vmem:[#allocation11 + $0x70] sm:$0xff] %v3142_v7  ;;  %v675_v9 = vmul.f32 0.5, %v3142_v7 }
 0x274   :  { %v562_v11 = vpop.f32.mrb[30].mxu1 }
 0x275   :  { %v2340_v12 = vpop.eup %2339  ;;  %v714_v13 = vmul.f32 1.442695, %v675_v9  ;;  %v3148_v14 = vadd.f32 %v3059_v43, %v562_v11  ;;  %v2064_v15 = vpop.f32.mrb[31].mxu1 }
 0x276   :  { %783 = vrot.lane.b32.xlu1 %v2340_v12, %s2721_s5 }
 0x277   :  { %2345 = vpow2.f32 %v714_v13  ;;  %626 = vst [vmem:[#allocation11 + $0x78] sm:$0xff] %v3148_v14  ;;  %v676_v17 = vmul.f32 0.5, %v3148_v14 }
 0x278   :  { %v567_v18 = vpop.f32.mrb[32].mxu1 }
 0x279   :  { %v2342_v19 = vpop.eup %2341  ;;  %v716_v20 = vmul.f32 1.442695, %v676_v17  ;;  %v3154_v21 = vadd.f32 %v3059_v43, %v567_v18  ;;  %v2067_v23 = vpop.f32.mrb[33].mxu1 }
 0x27a   :  { %785 = vrot.lane.b32.xlu0 %v2342_v19, %s2721_s5 }
 0x27b   :  { %2347 = vpow2.f32 %v716_v20  ;;  %627 = vst [vmem:[#allocation11 + $0x80] sm:$0xff] %v3154_v21  ;;  %v677_v24 = vmul.f32 0.5, %v3154_v21 }
 0x27c   :  { %v572_v25 = vpop.f32.mrb[34].mxu1 }
 0x27d   :  { %v2344_v26 = vpop.eup %2343  ;;  %v718_v27 = vmul.f32 1.442695, %v677_v24  ;;  %v3160_v29 = vadd.f32 %v3059_v43, %v572_v25  ;;  %v2070_v30 = vpop.f32.mrb[35].mxu1 }
 0x27e   :  { %787 = vrot.lane.b32.xlu1 %v2344_v26, %s2721_s5 }
 0x27f   :  { %2349 = vpow2.f32 %v718_v27  ;;  %628 = vst [vmem:[#allocation11 + $0x88] sm:$0xff] %v3160_v29  ;;  %v678_v31 = vmul.f32 0.5, %v3160_v29 }
 0x280   :  { %v577_v32 = vpop.f32.mrb[36].mxu1 }
 0x281   :  { %v2346_v33 = vpop.eup %2345  ;;  %v720_v35 = vmul.f32 1.442695, %v678_v31  ;;  %v3166_v36 = vadd.f32 %v3059_v43, %v577_v32  ;;  %v2073_v37 = vpop.f32.mrb[37].mxu1 }
 0x282   :  { %789 = vrot.lane.b32.xlu0 %v2346_v33, %s2721_s5  ;;  %v1193_v33 = vld [vmem:[#allocation8 + $0x8] sm:$0xff]  ;;  %v1192_v37 = vld [vmem:[#allocation8] sm:$0xff] }
 0x283   :  { %2351 = vpow2.f32 %v720_v35  ;;  %629 = vst [vmem:[#allocation11 + $0x90] sm:$0xff] %v3166_v36  ;;  %v679_v38 = vmul.f32 0.5, %v3166_v36  ;;  %v1195_v35 = vld [vmem:[#allocation8 + $0x18] sm:$0xff] }
 0x284   :  { %v582_v39 = vpop.f32.mrb[38].mxu1 }
 0x285   :  { %v2348_v41 = vpop.eup %2347  ;;  %v722_v42 = vmul.f32 1.442695, %v679_v38  ;;  %v3172_v61 = vadd.f32 %v3059_v43, %v582_v39  ;;  %v2076_v44 = vpop.f32.mrb[39].mxu1  ;;  %v1194_v38 = vld [vmem:[#allocation8 + $0x10] sm:$0xff]  ;;  %v1197_v39 = vld [vmem:[#allocation8 + $0x28] sm:$0xff] }
 0x286   :  { %791 = vrot.lane.b32.xlu1 %v2348_v41, %s2721_s5  ;;  %v1199_v41 = vld [vmem:[#allocation8 + $0x38] sm:$0xff] }
 0x287   :  { %2353 = vpow2.f32 %v722_v42  ;;  %630 = vst [vmem:[#allocation11 + $0x98] sm:$0xff] %v3172_v61  ;;  %v680_v46 = vmul.f32 0.5, %v3172_v61  ;;  %v3209_v42 = vpack.c.bf16 %v1194_v38, %v1192_v37  ;;  %v3211_v44 = vpack.c.bf16 %v1199_v41, %v1197_v39  ;;  %v1218_v38 = vld [vmem:[#allocation8 + $0xd0] sm:$0xff] }
 0x288   :  { %v587_v47 = vpop.f32.mrb[40].mxu1  ;;  %v636_v41 = vld [vmem:[%s3534_s1] sm:$0xff] }
 0x289   :  { %v2350_v48 = vpop.eup %2349  ;;  %v724_v50 = vmul.f32 1.442695, %v680_v46  ;;  %v3178_v51 = vadd.f32 %v3059_v43, %v587_v47  ;;  %v2079_v52 = vpop.f32.mrb[41].mxu1  ;;  %v1196_v46 = vld [vmem:[#allocation8 + $0x20] sm:$0xff]  ;;  %v1198_v47 = vld [vmem:[#allocation8 + $0x30] sm:$0xff] }
 0x28a   :  { %793 = vrot.lane.b32.xlu0 %v2350_v48, %s2721_s5  ;;  %v1201_v48 = vld [vmem:[#allocation8 + $0x48] sm:$0xff] }
 0x28b   :  { %2355 = vpow2.f32 %v724_v50  ;;  %631 = vst [vmem:[#allocation11 + $0xa0] sm:$0xff] %v3178_v51  ;;  %v681_v55 = vmul.f32 0.5, %v3178_v51  ;;  %v1203_v50 = vld [vmem:[#allocation8 + $0x58] sm:$0xff] }
 0x28c   :  { %v592_v56 = vpop.f32.mrb[42].mxu1 }
 0x28d   :  { %v2352_v58 = vpop.eup %2351  ;;  %v726_v59 = vmul.f32 1.442695, %v681_v55  ;;  %v3184_v62 = vadd.f32 %v3059_v43, %v592_v56  ;;  %v2082_v1 = vpop.f32.mrb[43].mxu1  ;;  %v2260_v55 = vpack.c.bf16 %v1198_v47, %v1196_v46  ;;  %v2262_v56 = vpack.c.bf16 %v1203_v50, %v1201_v48  ;;  %v637_v48 = vld [vmem:[%s3534_s1 + $0x8] sm:$0xff] }
 0x28e   :  { %795 = vrot.lane.b32.xlu1 %v2352_v58, %s2721_s5  ;;  %v1200_v58 = vld [vmem:[#allocation8 + $0x40] sm:$0xff]  ;;  %v1205_v1 = vld [vmem:[#allocation8 + $0x68] sm:$0xff] }
 0x28f   :  { %2357 = vpow2.f32 %v726_v59  ;;  %632 = vst [vmem:[#allocation11 + $0xa8] sm:$0xff] %v3184_v62  ;;  %v682_v2 = vmul.f32 0.5, %v3184_v62  ;;  %v1202_v59 = vld [vmem:[#allocation8 + $0x50] sm:$0xff] }
 0x290   :  { %v597_v3 = vpop.f32.mrb[44].mxu1 }
 0x291   :  { %v2354_v5 = vpop.eup %2353  ;;  %v728_v6 = vmul.f32 1.442695, %v682_v2  ;;  %v3190_v8 = vadd.f32 %v3059_v43, %v597_v3  ;;  %v2085_v9 = vpop.f32.mrb[45].mxu1  ;;  %v1207_v2 = vld [vmem:[#allocation8 + $0x78] sm:$0xff] }
 0x292   :  { %797 = vrot.lane.b32.xlu0 %v2354_v5, %s2721_s5  ;;  %v2264_v5 = vpack.c.bf16 %v1202_v59, %v1200_v58  ;;  %v1204_v9 = vld [vmem:[#allocation8 + $0x60] sm:$0xff] }
 0x293   :  { %2359 = vpow2.f32 %v728_v6  ;;  %633 = vst [vmem:[#allocation11 + $0xb0] sm:$0xff] %v3190_v8  ;;  %v683_v11 = vmul.f32 0.5, %v3190_v8  ;;  %v2266_v6 = vpack.c.bf16 %v1207_v2, %v1205_v1  ;;  %v638_v59 = vld [vmem:[%s3534_s1 + $0x10] sm:$0xff] }
 0x294   :  { %v602_v12 = vpop.f32.mrb[46].mxu1 }
 0x295   :  { %v2356_v13 = vpop.eup %2355  ;;  %v730_v15 = vmul.f32 1.442695, %v683_v11  ;;  %v3196_v17 = vadd.f32 %v3059_v43, %v602_v12  ;;  %v2088_v18 = vpop.f32.mrb[47].mxu1  ;;  %v1206_v11 = vld [vmem:[#allocation8 + $0x70] sm:$0xff]  ;;  %v1209_v12 = vld [vmem:[#allocation8 + $0x88] sm:$0xff] }
 0x296   :  { %799 = vrot.lane.b32.xlu1 %v2356_v13, %s2721_s5  ;;  %v1211_v13 = vld [vmem:[#allocation8 + $0x98] sm:$0xff] }
 0x297   :  { %2361 = vpow2.f32 %v730_v15  ;;  %634 = vst [vmem:[#allocation11 + $0xb8] sm:$0xff] %v3196_v17  ;;  %v684_v19 = vmul.f32 0.5, %v3196_v17  ;;  %v2268_v15 = vpack.c.bf16 %v1206_v11, %v1204_v9  ;;  %v2270_v18 = vpack.c.bf16 %v1211_v13, %v1209_v12 }
 0x298   :  { %v607_v20 = vpop.f32.mrb[48].mxu1 }
 0x299   :  { %v2358_v23 = vpop.eup %2357  ;;  %v732_v24 = vmul.f32 1.442695, %v684_v19  ;;  %v3202_v25 = vadd.f32 %v3059_v43, %v607_v20  ;;  %v2091_v26 = vpop.f32.mrb[49].mxu1  ;;  %v2254_v43 = vpack.c.bf16 %v1195_v35, %v1193_v33  ;;  %v1208_v19 = vld [vmem:[#allocation8 + $0x80] sm:$0xff]  ;;  %v1210_v20 = vld [vmem:[#allocation8 + $0x90] sm:$0xff]  ;;  %v1219_v33 = vld [vmem:[#allocation8 + $0xd8] sm:$0xff] }
 0x29a   :  { %801 = vrot.lane.b32.xlu0 %v2358_v23, %s2721_s5  ;;  %v1213_v23 = vld [vmem:[#allocation8 + $0xa8] sm:$0xff]  ;;  %v2272_v26 = vpack.c.bf16 %v1210_v20, %v1208_v19 }
 0x29b   :  { %2363 = vpow2.f32 %v732_v24  ;;  %635 = vst [vmem:[#allocation11 + $0xc0] sm:$0xff] %v3202_v25  ;;  %v685_v27 = vmul.f32 0.5, %v3202_v25  ;;  %2255 = vmatprep.subr.bf16.mxu0 %v2254_v43  ;;  %2286 = vmatprep.subr.bf16.mxu1 %v2254_v43  ;;  %v1215_v24 = vld [vmem:[#allocation8 + $0xb8] sm:$0xff]  ;;  %v1216_v43 = vld [vmem:[#allocation8 + $0xc0] sm:$0xff] }
 0x29c   :  { %2257 = vmatpush1.bf16.msra.mxu0 %v3209_v42  ;;  %v2280_v39 = vpack.c.bf16 %v1218_v38, %v1216_v43 }
 0x29d   :  { %v2360_v30 = vpop.eup %2359  ;;  %v734_v31 = vmul.f32 1.442695, %v685_v27  ;;  %2259 = vmatprep.subr.bf16.mxu0 %v3211_v44  ;;  %v2274_v27 = vpack.c.bf16 %v1215_v24, %v1213_v23 }
 0x29e   :  { %803 = vrot.lane.b32.xlu1 %v2360_v30, %s2721_s5  ;;  %v1212_v30 = vld [vmem:[#allocation8 + $0xa0] sm:$0xff] }
 0x29f   :  { %2365 = vpow2.f32 %v734_v31  ;;  %v1214_v31 = vld [vmem:[#allocation8 + $0xb0] sm:$0xff] }
 0x2a0   :  { %2261 = vmatpush1.bf16.msra.mxu0 %v2260_v55  ;;  %v2276_v35 = vpack.c.bf16 %v1214_v31, %v1212_v30 }
 0x2a1   :  { %v2362_v32 = vpop.eup %2361  ;;  %2263 = vmatprep.subr.bf16.mxu0 %v2262_v56 }
 0x2a2   :  { %805 = vrot.lane.b32.xlu0 %v2362_v32, %s2721_s5  ;;  %v1217_v32 = vld [vmem:[#allocation8 + $0xc8] sm:$0xff] }
 0x2a3   :  { %v2278_v37 = vpack.c.bf16 %v1219_v33, %v1217_v32 }
 0x2a4   :  { %2265 = vmatpush1.bf16.msra.mxu0 %v2264_v5 }
 0x2a5   :  { %v2364_v52 = vpop.eup %2363  ;;  %2267 = vmatprep.subr.bf16.mxu0 %v2266_v6 }
 0x2a6   :  { %807 = vrot.lane.b32.xlu1 %v2364_v52, %s2721_s5 }
 0x2a8   :  { %2269 = vmatpush1.bf16.msra.mxu0 %v2268_v15 }
 0x2a9   :  { %v2366_v3 = vpop.eup %2365  ;;  %2271 = vmatprep.subr.bf16.mxu0 %v2270_v18 }
 0x2aa   :  { %809 = vrot.lane.b32.xlu0 %v2366_v3, %s2721_s5 }
 0x2ac   :  { %2273 = vmatpush1.bf16.msra.mxu0 %v2272_v26 }
 0x2ad   :  { %2275 = vmatprep.subr.bf16.mxu0 %v2274_v27 }
 0x2b0   :  { %2277 = vmatpush1.bf16.msra.mxu0 %v2276_v35 }
 0x2b1   :  { %2279 = vmatprep.subr.bf16.mxu0 %v2278_v37 }
 0x2b4   :  { %2281 = vmatpush1.bf16.msra.mxu0 %v2280_v39 }
 0x2bc   :  { %v762_v46 = vpop.permute.xlu0 %761 }
 0x2bd   :  { %v836_v47 = vmul.f32 %v762_v46, %v636_v41 }
 0x2bf   :  { %v861_v50 = vadd.f32 %v836_v47, %v3062_v45  ;;  %v639_v45 = vld [vmem:[%s3534_s1 + $0x18] sm:$0xff] }
 0x2c0   :  { %v764_v52 = vpop.permute.xlu0 %763 }
 0x2c1   :  { %v837_v58 = vmul.f32 %v764_v52, %v637_v48  ;;  %2101 = vmatmul.mubr.msk.f32.vlgmr.msra.gmra.mrb[50].mxu1 %vm897_vm4, %v861_v50 }
 0x2c2   :  { %2103 = vmatprep.mubr.msk.f32.mxu1 %vm2718_vm0, %v2719_v57  ;;  %2294 = vmatpush1.bf16.msra.mxu1 %v3209_v42 }
 0x2c3   :  { %v862_v1 = vadd.f32 %v837_v58, %v3067_v49  ;;  %2287 = vmatprep.subr.bf16.mxu1 %v3211_v44  ;;  %v640_v49 = vld [vmem:[%s3534_s1 + $0x20] sm:$0xff] }
 0x2c4   :  { %v766_v2 = vpop.permute.xlu1 %765 }
 0x2c5   :  { %v838_v3 = vmul.f32 %v766_v2, %v638_v59  ;;  %2104 = vmatmul.mubr.msk.f32.gmra.mrb[52].mxu1 %vm897_vm4, %v862_v1 }
 0x2c6   :  { %2106 = vmatprep.mubr.msk.f32.mxu1 %vm2718_vm0, %v2719_v57  ;;  %2295 = vmatpush1.bf16.msra.mxu1 %v2260_v55 }
 0x2c7   :  { %v863_v9 = vadd.f32 %v838_v3, %v3072_v54  ;;  %2288 = vmatprep.subr.bf16.mxu1 %v2262_v56  ;;  %v641_v54 = vld [vmem:[%s3534_s1 + $0x28] sm:$0xff] }
 0x2c8   :  { %v768_v42 = vpop.permute.xlu1 %767 }
 0x2c9   :  { %v839_v11 = vmul.f32 %v768_v42, %v639_v45  ;;  %2107 = vmatmul.mubr.msk.f32.gmra.mrb[54].mxu1 %vm897_vm4, %v863_v9 }
 0x2ca   :  { %2109 = vmatprep.mubr.msk.f32.mxu1 %vm2718_vm0, %v2719_v57  ;;  %2296 = vmatpush1.bf16.msra.mxu1 %v2264_v5 }
 0x2cb   :  { %v864_v44 = vadd.f32 %v839_v11, %v3077_v60  ;;  %2289 = vmatprep.subr.bf16.mxu1 %v2266_v6  ;;  %v642_v60 = vld [vmem:[%s3534_s1 + $0x30] sm:$0xff] }
 0x2cc   :  { %v770_v12 = vpop.permute.xlu0 %769 }
 0x2cd   :  { %v840_v55 = vmul.f32 %v770_v12, %v640_v49  ;;  %2110 = vmatmul.mubr.msk.f32.gmra.mrb[56].mxu1 %vm897_vm4, %v864_v44 }
 0x2ce   :  { %2112 = vmatprep.mubr.msk.f32.mxu1 %vm2718_vm0, %v2719_v57  ;;  %2297 = vmatpush1.bf16.msra.mxu1 %v2268_v15 }
 0x2cf   :  { %v865_v56 = vadd.f32 %v840_v55, %v3082_v4  ;;  %2290 = vmatprep.subr.bf16.mxu1 %v2270_v18  ;;  %v643_v4 = vld [vmem:[%s3534_s1 + $0x38] sm:$0xff] }
 0x2d0   :  { %v772_v13 = vpop.permute.xlu1 %771 }
 0x2d1   :  { %v841_v5 = vmul.f32 %v772_v13, %v641_v54  ;;  %2113 = vmatmul.mubr.msk.f32.gmra.mrb[58].mxu1 %vm897_vm4, %v865_v56 }
 0x2d2   :  { %2115 = vmatprep.mubr.msk.f32.mxu1 %vm2718_vm0, %v2719_v57  ;;  %2298 = vmatpush1.bf16.msra.mxu1 %v2272_v26 }
 0x2d3   :  { %v866_v6 = vadd.f32 %v841_v5, %v3088_v10  ;;  %2291 = vmatprep.subr.bf16.mxu1 %v2274_v27  ;;  %v644_v10 = vld [vmem:[%s3534_s1 + $0x40] sm:$0xff] }
 0x2d4   :  { %v774_v19 = vpop.permute.xlu0 %773 }
 0x2d5   :  { %v842_v15 = vmul.f32 %v774_v19, %v642_v60  ;;  %2116 = vmatmul.mubr.msk.f32.gmra.mrb[60].mxu1 %vm897_vm4, %v866_v6 }
 0x2d6   :  { %2118 = vmatprep.mubr.msk.f32.mxu1 %vm2718_vm0, %v2719_v57  ;;  %2299 = vmatpush1.bf16.msra.mxu1 %v2276_v35 }
 0x2d7   :  { %v867_v18 = vadd.f32 %v842_v15, %v3094_v16  ;;  %2292 = vmatprep.subr.bf16.mxu1 %v2278_v37  ;;  %v645_v16 = vld [vmem:[%s3534_s1 + $0x48] sm:$0xff] }
 0x2d8   :  { %v776_v20 = vpop.permute.xlu1 %775 }
 0x2d9   :  { %v843_v23 = vmul.f32 %v776_v20, %v643_v4  ;;  %2119 = vmatmul.mubr.msk.f32.gmra.mrb[62].mxu1 %vm897_vm4, %v867_v18 }
 0x2da   :  { %2121 = vmatprep.mubr.msk.f32.mxu1 %vm2718_vm0, %v2719_v57  ;;  %2300 = vmatpush1.bf16.msra.mxu1 %v2280_v39 }
 0x2db   :  { %v868_v24 = vadd.f32 %v843_v23, %v3100_v22  ;;  %v646_v22 = vld [vmem:[%s3534_s1 + $0x50] sm:$0xff]  ;;  %v1221_v23 = vld [vmem:[#allocation8 + $0xe8] sm:$0xff] }
 0x2dc   :  { %v778_v26 = vpop.permute.xlu0 %777 }
 0x2dd   :  { %v844_v27 = vmul.f32 %v778_v26, %v644_v10  ;;  %2122 = vmatmul.mubr.msk.f32.gmra.mrb[64].mxu1 %vm897_vm4, %v868_v24  ;;  %v1223_v10 = vld [vmem:[#allocation8 + $0xf8] sm:$0xff] }
 0x2de   :  { %2124 = vmatprep.mubr.msk.f32.mxu1 %vm2718_vm0, %v2719_v57  ;;  %v2282_v26 = vpack.c.bf16 %v1223_v10, %v1221_v23 }
 0x2df   :  { %v869_v30 = vadd.f32 %v844_v27, %v3106_v28  ;;  %v647_v28 = vld [vmem:[%s3534_s1 + $0x58] sm:$0xff]  ;;  %v1220_v27 = vld [vmem:[#allocation8 + $0xe0] sm:$0xff] }
 0x2e0   :  { %v780_v31 = vpop.permute.xlu1 %779  ;;  %2283 = vmatprep.subr.bf16.mxu0 %v2282_v26  ;;  %2293 = vmatprep.subr.bf16.mxu1 %v2282_v26 }
 0x2e1   :  { %v845_v32 = vmul.f32 %v780_v31, %v645_v16  ;;  %2125 = vmatmul.mubr.msk.f32.gmra.mrb[66].mxu1 %vm897_vm4, %v869_v30  ;;  %v1222_v16 = vld [vmem:[#allocation8 + $0xf0] sm:$0xff] }
 0x2e2   :  { %2127 = vmatprep.mubr.msk.f32.mxu1 %vm2718_vm0, %v2719_v57 }
 0x2e3   :  { %v870_v33 = vadd.f32 %v845_v32, %v3112_v34  ;;  %v648_v34 = vld [vmem:[%s3534_s1 + $0x60] sm:$0xff]  ;;  %v659_v32 = vld [vmem:[%s3534_s1 + $0xb8] sm:$0xff] }
 0x2e4   :  { %v782_v35 = vpop.permute.xlu0 %781 }
 0x2e5   :  { %v846_v37 = vmul.f32 %v782_v35, %v646_v22  ;;  %2128 = vmatmul.mubr.msk.f32.gmra.mrb[68].mxu1 %vm897_vm4, %v870_v33  ;;  %v660_v35 = vld [vmem:[%s3534_s1 + $0xc0] sm:$0xff] }
 0x2e6   :  { %2130 = vmatprep.mubr.msk.f32.mxu1 %vm2718_vm0, %v2719_v57 }
 0x2e7   :  { %v871_v43 = vadd.f32 %v846_v37, %v3118_v40  ;;  %v649_v40 = vld [vmem:[%s3534_s1 + $0x68] sm:$0xff] }
 0x2e8   :  { %v784_v38 = vpop.permute.xlu1 %783 }
 0x2e9   :  { %v847_v39 = vmul.f32 %v784_v38, %v647_v28  ;;  %2131 = vmatmul.mubr.msk.f32.gmra.mrb[70].mxu1 %vm897_vm4, %v871_v43  ;;  %v3396_v38 = vld [vmem:[%s3540_s7] ss:$0 sm:$0xff] }
 0x2ea   :  { %2133 = vmatprep.mubr.msk.f32.mxu1 %vm2718_vm0, %v2719_v57 }
 0x2eb   :  { %v872_v41 = vadd.f32 %v847_v39, %v3124_v0  ;;  %v650_v0 = vld [vmem:[%s3534_s1 + $0x70] sm:$0xff] }
 0x2ec   :  { %v786_v46 = vpop.permute.xlu0 %785 }
 0x2ed   :  { %v848_v47 = vmul.f32 %v786_v46, %v648_v34  ;;  %2134 = vmatmul.mubr.msk.f32.gmra.mrb[72].mxu1 %vm897_vm4, %v872_v41 }
 0x2ee   :  { %2136 = vmatprep.mubr.msk.f32.mxu1 %vm2718_vm0, %v2719_v57 }
 0x2ef   :  { %v873_v48 = vadd.f32 %v848_v47, %v3130_v53  ;;  %v651_v53 = vld [vmem:[%s3534_s1 + $0x78] sm:$0xff] }
 0x2f0   :  { %v788_v50 = vpop.permute.xlu1 %787 }
 0x2f1   :  { %v849_v52 = vmul.f32 %v788_v50, %v649_v40  ;;  %2137 = vmatmul.mubr.msk.f32.gmra.mrb[74].mxu1 %vm897_vm4, %v873_v48 }
 0x2f2   :  { %2139 = vmatprep.mubr.msk.f32.mxu1 %vm2718_vm0, %v2719_v57 }
 0x2f3   :  { %v874_v58 = vadd.f32 %v849_v52, %v3136_v63  ;;  %v652_v63 = vld [vmem:[%s3534_s1 + $0x80] sm:$0xff] }
 0x2f4   :  { %v790_v59 = vpop.permute.xlu0 %789 }
 0x2f5   :  { %v850_v1 = vmul.f32 %v790_v59, %v650_v0  ;;  %2140 = vmatmul.mubr.msk.f32.gmra.mrb[76].mxu1 %vm897_vm4, %v874_v58 }
 0x2f6   :  { %2142 = vmatprep.mubr.msk.f32.mxu1 %vm2718_vm0, %v2719_v57 }
 0x2f7   :  { %v875_v2 = vadd.f32 %v850_v1, %v3142_v7  ;;  %v653_v7 = vld [vmem:[%s3534_s1 + $0x88] sm:$0xff] }
 0x2f8   :  { %v792_v3 = vpop.permute.xlu1 %791 }
 0x2f9   :  { %v851_v45 = vmul.f32 %v792_v3, %v651_v53  ;;  %2143 = vmatmul.mubr.msk.f32.gmra.mrb[78].mxu1 %vm897_vm4, %v875_v2 }
 0x2fa   :  { %2145 = vmatprep.mubr.msk.f32.mxu1 %vm2718_vm0, %v2719_v57 }
 0x2fb   :  { %v876_v9 = vadd.f32 %v851_v45, %v3148_v14  ;;  %v654_v14 = vld [vmem:[%s3534_s1 + $0x90] sm:$0xff] }
 0x2fc   :  { %v794_v42 = vpop.permute.xlu0 %793 }
 0x2fd   :  { %v852_v11 = vmul.f32 %v794_v42, %v652_v63  ;;  %2146 = vmatmul.mubr.msk.f32.gmra.mrb[80].mxu1 %vm897_vm4, %v876_v9 }
 0x2fe   :  { %2148 = vmatprep.mubr.msk.f32.mxu1 %vm2718_vm0, %v2719_v57 }
 0x2ff   :  { %v877_v49 = vadd.f32 %v852_v11, %v3154_v21  ;;  %v655_v21 = vld [vmem:[%s3534_s1 + $0x98] sm:$0xff] }
 0x300   :  { %v796_v44 = vpop.permute.xlu1 %795 }
 0x301   :  { %v853_v12 = vmul.f32 %v796_v44, %v653_v7  ;;  %2149 = vmatmul.mubr.msk.f32.gmra.mrb[82].mxu1 %vm897_vm4, %v877_v49 }
 0x302   :  { %2151 = vmatprep.mubr.msk.f32.mxu1 %vm2718_vm0, %v2719_v57 }
 0x303   :  { %v878_v55 = vadd.f32 %v853_v12, %v3160_v29  ;;  %v656_v29 = vld [vmem:[%s3534_s1 + $0xa0] sm:$0xff] }
 0x304   :  { %v798_v54 = vpop.permute.xlu0 %797 }
 0x305   :  { %v854_v56 = vmul.f32 %v798_v54, %v654_v14  ;;  %2152 = vmatmul.mubr.msk.f32.gmra.mrb[84].mxu1 %vm897_vm4, %v878_v55 }
 0x306   :  { %2154 = vmatprep.mubr.msk.f32.mxu1 %vm2718_vm0, %v2719_v57 }
 0x307   :  { %v879_v13 = vadd.f32 %v854_v56, %v3166_v36  ;;  %v657_v36 = vld [vmem:[%s3534_s1 + $0xa8] sm:$0xff] }
 0x308   :  { %v800_v5 = vpop.permute.xlu1 %799 }
 0x309   :  { %v855_v60 = vmul.f32 %v800_v5, %v655_v21  ;;  %2155 = vmatmul.mubr.msk.f32.gmra.mrb[86].mxu1 %vm897_vm4, %v879_v13 }
 0x30a   :  { %2157 = vmatprep.mubr.msk.f32.mxu1 %vm2718_vm0, %v2719_v57 }
 0x30b   :  { %v880_v6 = vadd.f32 %v855_v60, %v3172_v61  ;;  %v658_v61 = vld [vmem:[%s3534_s1 + $0xb0] sm:$0xff] }
 0x30c   :  { %v802_v19 = vpop.permute.xlu0 %801 }
 0x30d   :  { %v856_v15 = vmul.f32 %v802_v19, %v656_v29  ;;  %2158 = vmatmul.mubr.msk.f32.gmra.mrb[88].mxu1 %vm897_vm4, %v880_v6 }
 0x30e   :  { %2160 = vmatprep.mubr.msk.f32.mxu1 %vm2718_vm0, %v2719_v57 }
 0x30f   :  { %v881_v4 = vadd.f32 %v856_v15, %v3178_v51  ;;  %v2284_v51 = vpack.c.bf16 %v1222_v16, %v1220_v27 }
 0x310   :  { %v804_v18 = vpop.permute.xlu1 %803 }
 0x311   :  { %v857_v20 = vmul.f32 %v804_v18, %v657_v36  ;;  %2161 = vmatmul.mubr.msk.f32.gmra.mrb[90].mxu1 %vm897_vm4, %v881_v4  ;;  %2285 = vmatpush1.bf16.msra.mxu0 %v2284_v51 }
 0x312   :  { %2163 = vmatprep.mubr.msk.f32.mxu1 %vm2718_vm0, %v2719_v57  ;;  %2301 = vmatpush1.bf16.msra.mxu1 %v2284_v51 }
 0x313   :  { %v882_v24 = vadd.f32 %v857_v20, %v3184_v62 }
 0x314   :  { %v806_v30 = vpop.permute.xlu0 %805 }
 0x315   :  { %v858_v31 = vmul.f32 %v806_v30, %v658_v61  ;;  %2164 = vmatmul.mubr.msk.f32.gmra.mrb[92].mxu1 %vm897_vm4, %v882_v24 }
 0x316   :  { %2166 = vmatprep.mubr.msk.f32.mxu1 %vm2718_vm0, %v2719_v57 }
 0x317   :  { %v883_v22 = vadd.f32 %v858_v31, %v3190_v8 }
 0x318   :  { %v808_v62 = vpop.permute.xlu1 %807 }
 0x319   :  { %v859_v33 = vmul.f32 %v808_v62, %v659_v32  ;;  %2167 = vmatmul.mubr.msk.f32.gmra.mrb[94].mxu1 %vm897_vm4, %v883_v22 }
 0x31a   :  { %2169 = vmatprep.mubr.msk.f32.mxu1 %vm2718_vm0, %v2719_v57 }
 0x31b   :  { %v884_v37 = vadd.f32 %v859_v33, %v3196_v17 }
 0x31c   :  { %v810_v28 = vpop.permute.xlu0 %809 }
 0x31d   :  { %v860_v43 = vmul.f32 %v810_v28, %v660_v35  ;;  %2170 = vmatmul.mubr.msk.f32.gmra.mrb[96].mxu1 %vm897_vm4, %v884_v37 }
 0x31e   :  { %2172 = vmatprep.mubr.msk.f32.mxu1 %vm2718_vm0, %v2719_v57 }
 0x31f   :  { %v885_v8 = vadd.f32 %v860_v43, %v3202_v25 }
 0x321   :  { %2173 = vmatmul.mubr.msk.f32.gmra.mrb[98].mxu1 %vm897_vm4, %v885_v8 }
 0x322   :  { %1426 = vmatprep.mubr.f32.mxu1 %v2719_v57 }
 0x394   :  { %v1043_v39 = vpop.f32.mrb[50].mxu1 }
 0x395   :  { %v1044_v17 = vadd.f32 %v3396_v38, %v1043_v39  ;;  %v2102_v34 = vpop.f32.mrb[51].mxu1 }
 0x397   :  { %v1167_v41 = vmax.f32 %v1044_v17, 0.0 }
 0x398   :  { %v1048_v46 = vpop.f32.mrb[52].mxu1 }
 0x399   :  { %v1049_v47 = vadd.f32 %v3396_v38, %v1048_v46  ;;  %v2105_v40 = vpop.f32.mrb[53].mxu1  ;;  %1301 = vmatmul.mubr.f32.vlgmr.msra.gmra.mrb[50].mxu0 %v1167_v41 }
 0x39a   :  { %1306 = vmatprep.mubr.f32.mxu0 %v2719_v57 }
 0x39b   :  { %v1168_v25 = vmax.f32 %v1049_v47, 0.0 }
 0x39c   :  { %v1053_v48 = vpop.f32.mrb[54].mxu1 }
 0x39d   :  { %v1054_v50 = vadd.f32 %v3396_v38, %v1053_v48  ;;  %v2108_v52 = vpop.f32.mrb[55].mxu1  ;;  %1307 = vmatmul.mubr.f32.gmra.mrb[52].mxu0 %v1168_v25 }
 0x39e   :  { %1312 = vmatprep.mubr.f32.mxu0 %v2719_v57 }
 0x39f   :  { %v1169_v0 = vmax.f32 %v1054_v50, 0.0 }
 0x3a0   :  { %v1058_v58 = vpop.f32.mrb[56].mxu1 }
 0x3a1   :  { %v1059_v59 = vadd.f32 %v3396_v38, %v1058_v58  ;;  %v2111_v1 = vpop.f32.mrb[57].mxu1  ;;  %1313 = vmatmul.mubr.f32.gmra.mrb[54].mxu0 %v1169_v0 }
 0x3a2   :  { %1318 = vmatprep.mubr.f32.mxu0 %v2719_v57 }
 0x3a3   :  { %v1170_v53 = vmax.f32 %v1059_v59, 0.0 }
 0x3a4   :  { %v1063_v2 = vpop.f32.mrb[58].mxu1 }
 0x3a5   :  { %v1064_v3 = vadd.f32 %v3396_v38, %v1063_v2  ;;  %v2114_v45 = vpop.f32.mrb[59].mxu1  ;;  %1319 = vmatmul.mubr.f32.gmra.mrb[56].mxu0 %v1170_v53 }
 0x3a6   :  { %1324 = vmatprep.mubr.f32.mxu0 %v2719_v57 }
 0x3a7   :  { %v1171_v63 = vmax.f32 %v1064_v3, 0.0 }
 0x3a8   :  { %v1068_v9 = vpop.f32.mrb[60].mxu1 }
 0x3a9   :  { %v1069_v42 = vadd.f32 %v3396_v38, %v1068_v9  ;;  %v2117_v11 = vpop.f32.mrb[61].mxu1  ;;  %1325 = vmatmul.mubr.f32.gmra.mrb[58].mxu0 %v1171_v63 }
 0x3aa   :  { %1330 = vmatprep.mubr.f32.mxu0 %v2719_v57 }
 0x3ab   :  { %v1172_v7 = vmax.f32 %v1069_v42, 0.0 }
 0x3ac   :  { %v1073_v49 = vpop.f32.mrb[62].mxu1 }
 0x3ad   :  { %v1074_v44 = vadd.f32 %v3396_v38, %v1073_v49  ;;  %v2120_v12 = vpop.f32.mrb[63].mxu1  ;;  %1331 = vmatmul.mubr.f32.gmra.mrb[60].mxu0 %v1172_v7 }
 0x3ae   :  { %1336 = vmatprep.mubr.f32.mxu0 %v2719_v57 }
 0x3af   :  { %v1173_v14 = vmax.f32 %v1074_v44, 0.0 }
 0x3b0   :  { %v1078_v55 = vpop.f32.mrb[64].mxu1 }
 0x3b1   :  { %v1079_v54 = vadd.f32 %v3396_v38, %v1078_v55  ;;  %v2123_v56 = vpop.f32.mrb[65].mxu1  ;;  %1337 = vmatmul.mubr.f32.gmra.mrb[62].mxu0 %v1173_v14 }
 0x3b2   :  { %1342 = vmatprep.mubr.f32.mxu0 %v2719_v57 }
 0x3b3   :  { %v1174_v21 = vmax.f32 %v1079_v54, 0.0 }
 0x3b4   :  { %v1083_v13 = vpop.f32.mrb[66].mxu1 }
 0x3b5   :  { %v1084_v5 = vadd.f32 %v3396_v38, %v1083_v13  ;;  %v2126_v60 = vpop.f32.mrb[67].mxu1  ;;  %1343 = vmatmul.mubr.f32.gmra.mrb[64].mxu0 %v1174_v21 }
 0x3b6   :  { %1348 = vmatprep.mubr.f32.mxu0 %v2719_v57 }
 0x3b7   :  { %v1175_v29 = vmax.f32 %v1084_v5, 0.0 }
 0x3b8   :  { %v1088_v6 = vpop.f32.mrb[68].mxu1 }
 0x3b9   :  { %v1089_v19 = vadd.f32 %v3396_v38, %v1088_v6  ;;  %v2129_v15 = vpop.f32.mrb[69].mxu1  ;;  %1349 = vmatmul.mubr.f32.gmra.mrb[66].mxu0 %v1175_v29 }
 0x3ba   :  { %1354 = vmatprep.mubr.f32.mxu0 %v2719_v57  ;;  %v1226_v15 = vlaneseq }
 0x3bb   :  { %v1176_v36 = vmax.f32 %v1089_v19, 0.0 }
 0x3bc   :  { %v1093_v4 = vpop.f32.mrb[70].mxu1 }
 0x3bd   :  { %v1094_v18 = vadd.f32 %v3396_v38, %v1093_v4  ;;  %v2132_v20 = vpop.f32.mrb[71].mxu1  ;;  %1355 = vmatmul.mubr.f32.gmra.mrb[68].mxu0 %v1176_v36  ;;  %v1227_v36 = vshrl.u32 %v1226_v15, 7 }
 0x3be   :  { %1360 = vmatprep.mubr.f32.mxu0 %v2719_v57 }
 0x3bf   :  { %v1177_v61 = vmax.f32 %v1094_v18, 0.0  ;;  %v1228_v4 = vsub.s32 0, %v1227_v36  ;;  %v1224_v18 = vld [vmem:[%s3542_s9] sm:$0x3]  ;;  %v1232_v20 = vsub.s32 1, %v1227_v36 }
 0x3c0   :  { %v1098_v23 = vpop.f32.mrb[72].mxu1 }
 0x3c1   :  { %v1099_v10 = vadd.f32 %v3396_v38, %v1098_v23  ;;  %v2135_v24 = vpop.f32.mrb[73].mxu1  ;;  %1361 = vmatmul.mubr.f32.gmra.mrb[70].mxu0 %v1177_v61  ;;  %v3449_v61 = vrot.slane %v1224_v18, %v1228_v4  ;;  %v3451_v23 = vrot.slane %v1224_v18, %v1232_v20 }
 0x3c2   :  { %1366 = vmatprep.mubr.f32.mxu0 %v2719_v57 }
 0x3c3   :  { %v1178_v26 = vmax.f32 %v1099_v10, 0.0 }
 0x3c4   :  { %v1103_v27 = vpop.f32.mrb[74].mxu1 }
 0x3c5   :  { %v1104_v16 = vadd.f32 %v3396_v38, %v1103_v27  ;;  %v2138_v30 = vpop.f32.mrb[75].mxu1  ;;  %1367 = vmatmul.mubr.f32.gmra.mrb[72].mxu0 %v1178_v26 }
 0x3c6   :  { %1372 = vmatprep.mubr.f32.mxu0 %v2719_v57 }
 0x3c7   :  { %v1179_v51 = vmax.f32 %v1104_v16, 0.0 }
 0x3c8   :  { %v1108_v31 = vpop.f32.mrb[76].mxu1 }
 0x3c9   :  { %v1109_v32 = vadd.f32 %v3396_v38, %v1108_v31  ;;  %v2141_v22 = vpop.f32.mrb[77].mxu1  ;;  %1373 = vmatmul.mubr.f32.gmra.mrb[74].mxu0 %v1179_v51 }
 0x3ca   :  { %1378 = vmatprep.mubr.f32.mxu0 %v2719_v57 }
 0x3cb   :  { %v1180_v62 = vmax.f32 %v1109_v32, 0.0 }
 0x3cc   :  { %v1113_v33 = vpop.f32.mrb[78].mxu1 }
 0x3cd   :  { %v1114_v35 = vadd.f32 %v3396_v38, %v1113_v33  ;;  %v2144_v37 = vpop.f32.mrb[79].mxu1  ;;  %1379 = vmatmul.mubr.f32.gmra.mrb[76].mxu0 %v1180_v62 }
 0x3ce   :  { %1384 = vmatprep.mubr.f32.mxu0 %v2719_v57 }
 0x3cf   :  { %v1181_v28 = vmax.f32 %v1114_v35, 0.0 }
 0x3d0   :  { %v1118_v43 = vpop.f32.mrb[80].mxu1 }
 0x3d1   :  { %v1119_v8 = vadd.f32 %v3396_v38, %v1118_v43  ;;  %v2147_v39 = vpop.f32.mrb[81].mxu1  ;;  %1385 = vmatmul.mubr.f32.gmra.mrb[78].mxu0 %v1181_v28 }
 0x3d2   :  { %1390 = vmatprep.mubr.f32.mxu0 %v2719_v57 }
 0x3d3   :  { %v1182_v17 = vmax.f32 %v1119_v8, 0.0 }
 0x3d4   :  { %v1123_v34 = vpop.f32.mrb[82].mxu1 }
 0x3d5   :  { %v1124_v41 = vadd.f32 %v3396_v38, %v1123_v34  ;;  %v2150_v46 = vpop.f32.mrb[83].mxu1  ;;  %1391 = vmatmul.mubr.f32.gmra.mrb[80].mxu0 %v1182_v17 }
 0x3d6   :  { %1396 = vmatprep.mubr.f32.mxu0 %v2719_v57 }
 0x3d7   :  { %v1183_v47 = vmax.f32 %v1124_v41, 0.0 }
 0x3d8   :  { %v1128_v40 = vpop.f32.mrb[84].mxu1 }
 0x3d9   :  { %v1129_v25 = vadd.f32 %v3396_v38, %v1128_v40  ;;  %v2153_v48 = vpop.f32.mrb[85].mxu1  ;;  %1397 = vmatmul.mubr.f32.gmra.mrb[82].mxu0 %v1183_v47 }
 0x3da   :  { %1402 = vmatprep.mubr.f32.mxu0 %v2719_v57 }
 0x3db   :  { %v1184_v50 = vmax.f32 %v1129_v25, 0.0 }
 0x3dc   :  { %v1133_v52 = vpop.f32.mrb[86].mxu1 }
 0x3dd   :  { %v1134_v0 = vadd.f32 %v3396_v38, %v1133_v52  ;;  %v2156_v58 = vpop.f32.mrb[87].mxu1  ;;  %1403 = vmatmul.mubr.f32.gmra.mrb[84].mxu0 %v1184_v50 }
 0x3de   :  { %1408 = vmatprep.mubr.f32.mxu0 %v2719_v57 }
 0x3df   :  { %v1185_v59 = vmax.f32 %v1134_v0, 0.0 }
 0x3e0   :  { %v1138_v1 = vpop.f32.mrb[88].mxu1 }
 0x3e1   :  { %v1139_v53 = vadd.f32 %v3396_v38, %v1138_v1  ;;  %v2159_v2 = vpop.f32.mrb[89].mxu1  ;;  %1409 = vmatmul.mubr.f32.gmra.mrb[86].mxu0 %v1185_v59 }
 0x3e2   :  { %1414 = vmatprep.mubr.f32.mxu0 %v2719_v57 }
 0x3e3   :  { %v1186_v3 = vmax.f32 %v1139_v53, 0.0 }
 0x3e4   :  { %v1143_v45 = vpop.f32.mrb[90].mxu1 }
 0x3e5   :  { %v1144_v63 = vadd.f32 %v3396_v38, %v1143_v45  ;;  %v2162_v9 = vpop.f32.mrb[91].mxu1  ;;  %1415 = vmatmul.mubr.f32.gmra.mrb[88].mxu0 %v1186_v3 }
 0x3e6   :  { %1420 = vmatprep.mubr.f32.mxu0 %v2719_v57 }
 0x3e7   :  { %v1187_v42 = vmax.f32 %v1144_v63, 0.0 }
 0x3e8   :  { %v1148_v11 = vpop.f32.mrb[92].mxu1 }
 0x3e9   :  { %v1149_v7 = vadd.f32 %v3396_v38, %v1148_v11  ;;  %v2165_v49 = vpop.f32.mrb[93].mxu1  ;;  %1421 = vmatmul.mubr.f32.gmra.mrb[90].mxu0 %v1187_v42 }
 0x3eb   :  { %v1188_v44 = vmax.f32 %v1149_v7, 0.0 }
 0x3ec   :  { %v1153_v12 = vpop.f32.mrb[94].mxu1 }
 0x3ed   :  { %v1154_v14 = vadd.f32 %v3396_v38, %v1153_v12  ;;  %v2168_v55 = vpop.f32.mrb[95].mxu1  ;;  %1427 = vmatmul.mubr.f32.vlgmr.msra.gmra.mrb[100].mxu1 %v1188_v44 }
 0x3ee   :  { %1432 = vmatprep.mubr.f32.mxu1 %v2719_v57 }
 0x3ef   :  { %v1189_v54 = vmax.f32 %v1154_v14, 0.0 }
 0x3f0   :  { %v1158_v56 = vpop.f32.mrb[96].mxu1 }
 0x3f1   :  { %v1159_v21 = vadd.f32 %v3396_v38, %v1158_v56  ;;  %v2171_v13 = vpop.f32.mrb[97].mxu1  ;;  %1433 = vmatmul.mubr.f32.gmra.mrb[102].mxu1 %v1189_v54 }
 0x3f2   :  { %1438 = vmatprep.mubr.f32.mxu1 %v2719_v57 }
 0x3f3   :  { %v1190_v5 = vmax.f32 %v1159_v21, 0.0 }
 0x3f4   :  { %v1163_v60 = vpop.f32.mrb[98].mxu1 }
 0x3f5   :  { %v1164_v29 = vadd.f32 %v3396_v38, %v1163_v60  ;;  %v2174_v6 = vpop.f32.mrb[99].mxu1  ;;  %1439 = vmatmul.mubr.f32.gmra.mrb[104].mxu1 %v1190_v5 }
 0x3f6   :  { %1444 = vmatprep.mubr.f32.mxu1 %v2719_v57 }
 0x3f7   :  { %v1191_v19 = vmax.f32 %v1164_v29, 0.0 }
 0x3f9   :  { %1445 = vmatmul.mubr.f32.gmra.mrb[106].mxu1 %v1191_v19 }
 0x46c   :  { %v1302_v10 = vpop.f32.mrb[50].mxu0 }
 0x46d   :  { %v1303_v38 = vadd.f32 %v1302_v10, %v3449_v61  ;;  %v1304_v57 = vpop.f32.mrb[51].mxu0 }
 0x46e   :  { %v1305_v24 = vadd.f32 %v1304_v57, %v3451_v23 }
 0x46f   :  { %2666 = shalt.err (!%p2663_p8)
}
 0x470   :  { %s2667_s19 = scalar_lea.hbm %s3544_s11, 3200 }
 0x471   :  { %p2668_p9 = scmp.ne.s32.totalorder %s3544_s11, %s2667_s19  ;;  %p2671_p10 = scmp.lt.u32.totalorder %s2667_s19, %s3544_s11 }
 0x473   :  { %p2673_p11 = pnand %p2671_p10, %p2668_p9 }
 0x475   :  { %2676 = shalt.err (!%p2673_p11)
}
 0x476   :  { %1824 = dma.vmem_to_hbm [thread:$0]  %s1819_s26, 3200, %s3544_s11, [#allocation12], %s2710_s27, %s2710_s27, %s2711_s28   ;;  %v1865_v26 = vmul.f32 -1.442695, %v1303_v38  ;;  %v1866_v27 = vmul.f32 -1.442695, %v1305_v24 }
 0x477   :  { %v1308_v16 = vpop.f32.mrb[52].mxu0  ;;  %s2723_s11 = smov [#allocation10]  }
 0x478   :  { %2367 = vpow2.f32 %v1865_v26  ;;  %v1309_v30 = vadd.f32 %v1308_v16, %v3449_v61  ;;  %v1310_v51 = vpop.f32.mrb[53].mxu0  ;;  %s1806_s27 = sshll.u32 %s2723_s11, 4  ;;  %s1807_s27 = int_to_ptr.vmem [resolvable:$true] %s1806_s27 }
 0x479   :  { %2369 = vpow2.f32 %v1866_v27  ;;  %v1311_v31 = vadd.f32 %v1310_v51, %v3451_v23  ;;  %v1314_v62 = vpop.f32.mrb[54].mxu0  ;;  %s2677_s28 = scalar_lea.vmem %s1807_s27, 6400  ;;  %p2682_p13 = scmp.lt.s32.totalorder %s1807_s27, %s1807_s27 }
 0x47a   :  { %v1867_v32 = vmul.f32 -1.442695, %v1309_v30  ;;  %v1315_v33 = vadd.f32 %v1314_v62, %v3449_v61  ;;  %v1316_v35 = vpop.f32.mrb[55].mxu0  ;;  %p2678_p12 = scmp.ne.s32.totalorder %s1807_s27, %s2677_s28  ;;  %p2683_p0 = scmp.lt.s32.totalorder %s2677_s28, %s2677_s28 }
 0x47b   :  { %v1868_v22 = vmul.f32 -1.442695, %v1311_v31  ;;  %v1317_v37 = vadd.f32 %v1316_v35, %v3451_v23  ;;  %v1320_v8 = vpop.f32.mrb[56].mxu0 }
 0x47c   :  { %2371 = vpow2.f32 %v1867_v32  ;;  %v1869_v28 = vmul.f32 -1.442695, %v1315_v33  ;;  %v1321_v39 = vadd.f32 %v1320_v8, %v3449_v61  ;;  %v1322_v17 = vpop.f32.mrb[57].mxu0  ;;  %p2684_p1 = por %p2683_p0, %p2682_p13 }
 0x47d   :  { %2373 = vpow2.f32 %v1868_v22  ;;  %v1870_v43 = vmul.f32 -1.442695, %v1317_v37  ;;  %v1323_v34 = vadd.f32 %v1322_v17, %v3451_v23  ;;  %v1326_v48 = vpop.f32.mrb[58].mxu0 }
 0x47e   :  { %2375 = vpow2.f32 %v1869_v28  ;;  %v1871_v46 = vmul.f32 -1.442695, %v1321_v39  ;;  %v1327_v52 = vadd.f32 %v1326_v48, %v3449_v61  ;;  %v1328_v0 = vpop.f32.mrb[59].mxu0  ;;  %p2685_p2 = pnand %p2684_p1, %p2678_p12 }
 0x47f   :  { %2377 = vpow2.f32 %v1870_v43  ;;  %v1872_v25 = vmul.f32 -1.442695, %v1323_v34  ;;  %v1329_v58 = vadd.f32 %v1328_v0, %v3451_v23 }
 0x480   :  { %2379 = vpow2.f32 %v1871_v46  ;;  %v1873_v1 = vmul.f32 -1.442695, %v1327_v52  ;;  %v1332_v45 = vpop.f32.mrb[60].mxu0 }
 0x481   :  { %v1874_v3 = vmul.f32 -1.442695, %v1329_v58  ;;  %v1333_v9 = vadd.f32 %v1332_v45, %v3449_v61  ;;  %v1334_v42 = vpop.f32.mrb[61].mxu0 }
 0x482   :  { %v2368_v41 = vpop.eup %2367  ;;  %v1335_v11 = vadd.f32 %v1334_v42, %v3451_v23 }
 0x483   :  { %v2370_v47 = vpop.eup %2369  ;;  %v1601_v40 = vadd.f32 1.0, %v2368_v41  ;;  %v1875_v49 = vmul.f32 -1.442695, %v1333_v9 }
 0x484   :  { %v1602_v50 = vadd.f32 1.0, %v2370_v47  ;;  %v1876_v14 = vmul.f32 -1.442695, %v1335_v11  ;;  %v1338_v55 = vpop.f32.mrb[62].mxu0 }
 0x485   :  { %2381 = vrcp.f32 %v1601_v40  ;;  %v1339_v56 = vadd.f32 %v1338_v55, %v3449_v61  ;;  %v1340_v21 = vpop.f32.mrb[63].mxu0 }
 0x486   :  { %v2372_v59 = vpop.eup %2371  ;;  %2383 = vrcp.f32 %v1602_v50  ;;  %v1341_v13 = vadd.f32 %v1340_v21, %v3451_v23 }
 0x487   :  { %v2374_v53 = vpop.eup %2373  ;;  %v1603_v2 = vadd.f32 1.0, %v2372_v59  ;;  %2385 = vpow2.f32 %v1872_v25  ;;  %v1877_v60 = vmul.f32 -1.442695, %v1339_v56 }
 0x488   :  { %v1604_v63 = vadd.f32 1.0, %v2374_v53  ;;  %2387 = vpow2.f32 %v1873_v1  ;;  %v2376_v7 = vpop.eup %2375  ;;  %v1878_v19 = vmul.f32 -1.442695, %v1341_v13  ;;  %v1344_v15 = vpop.f32.mrb[64].mxu0 }
 0x489   :  { %2389 = vrcp.f32 %v1603_v2  ;;  %v2378_v44 = vpop.eup %2377  ;;  %v1605_v12 = vadd.f32 1.0, %v2376_v7  ;;  %v1345_v4 = vadd.f32 %v1344_v15, %v3449_v61  ;;  %v1346_v18 = vpop.f32.mrb[65].mxu0 }
 0x48a   :  { %2391 = vrcp.f32 %v1604_v63  ;;  %v1606_v54 = vadd.f32 1.0, %v2378_v44  ;;  %v2380_v5 = vpop.eup %2379  ;;  %v1347_v10 = vadd.f32 %v1346_v18, %v3451_v23 }
 0x48b   :  { %2393 = vpow2.f32 %v1874_v3  ;;  %v1607_v6 = vadd.f32 1.0, %v2380_v5  ;;  %v1879_v24 = vmul.f32 -1.442695, %v1345_v4 }
 0x48c   :  { %2395 = vpow2.f32 %v1875_v49  ;;  %v1880_v16 = vmul.f32 -1.442695, %v1347_v10  ;;  %v1350_v30 = vpop.f32.mrb[66].mxu0 }
 0x48d   :  { %2397 = vrcp.f32 %v1605_v12  ;;  %v1351_v31 = vadd.f32 %v1350_v30, %v3449_v61  ;;  %v1352_v32 = vpop.f32.mrb[67].mxu0 }
 0x48e   :  { %2399 = vrcp.f32 %v1606_v54  ;;  %v1353_v62 = vadd.f32 %v1352_v32, %v3451_v23 }
 0x48f   :  { %v2382_v29 = vpop.eup %2381  ;;  %2401 = vpow2.f32 %v1876_v14  ;;  %v1881_v37 = vmul.f32 -1.442695, %v1351_v31 }
 0x490   :  { %v2384_v36 = vpop.eup %2383  ;;  %1751 = vst [vmem:[#allocation10] sm:$0xff] %v2382_v29  ;;  %2403 = vpow2.f32 %v1877_v60  ;;  %v1882_v8 = vmul.f32 -1.442695, %v1353_v62  ;;  %v1356_v39 = vpop.f32.mrb[68].mxu0 }
 0x491   :  { %v2386_v20 = vpop.eup %2385  ;;  %1752 = vst [vmem:[#allocation10 + $0x8] sm:$0xff] %v2384_v36  ;;  %2405 = vrcp.f32 %v1607_v6  ;;  %v1357_v34 = vadd.f32 %v1356_v39, %v3449_v61  ;;  %v1358_v41 = vpop.f32.mrb[69].mxu0 }
 0x492   :  { %v2388_v38 = vpop.eup %2387  ;;  %v1608_v57 = vadd.f32 1.0, %v2386_v20  ;;  %2407 = vpow2.f32 %v1878_v19  ;;  %v1359_v47 = vadd.f32 %v1358_v41, %v3451_v23 }
 0x493   :  { %v2390_v26 = vpop.eup %2389  ;;  %v1609_v27 = vadd.f32 1.0, %v2388_v38  ;;  %v1883_v48 = vmul.f32 -1.442695, %v1357_v34 }
 0x494   :  { %v2392_v51 = vpop.eup %2391  ;;  %1753 = vst [vmem:[#allocation10 + $0x10] sm:$0xff] %v2390_v26  ;;  %2409 = vrcp.f32 %v1608_v57  ;;  %v1362_v0 = vpop.f32.mrb[70].mxu0  ;;  %v1884_v59 = vmul.f32 -1.442695, %v1359_v47 }
 0x495   :  { %v2394_v22 = vpop.eup %2393  ;;  %1754 = vst [vmem:[#allocation10 + $0x18] sm:$0xff] %v2392_v51  ;;  %2411 = vrcp.f32 %v1609_v27  ;;  %v1363_v1 = vadd.f32 %v1362_v0, %v3449_v61  ;;  %v1364_v53 = vpop.f32.mrb[71].mxu0 }
 0x496   :  { %v2396_v33 = vpop.eup %2395  ;;  %v1610_v35 = vadd.f32 1.0, %v2394_v22  ;;  %2413 = vpow2.f32 %v1879_v24  ;;  %v1365_v3 = vadd.f32 %v1364_v53, %v3451_v23 }
 0x497   :  { %v2398_v28 = vpop.eup %2397  ;;  %v1611_v43 = vadd.f32 1.0, %v2396_v33  ;;  %2415 = vpow2.f32 %v1880_v16  ;;  %v1885_v63 = vmul.f32 -1.442695, %v1363_v1 }
 0x498   :  { %v2400_v17 = vpop.eup %2399  ;;  %1755 = vst [vmem:[#allocation10 + $0x20] sm:$0xff] %v2398_v28  ;;  %2417 = vrcp.f32 %v1610_v35  ;;  %v1886_v42 = vmul.f32 -1.442695, %v1365_v3  ;;  %v1368_v11 = vpop.f32.mrb[72].mxu0 }
 0x499   :  { %v2402_v46 = vpop.eup %2401  ;;  %1756 = vst [vmem:[#allocation10 + $0x28] sm:$0xff] %v2400_v17  ;;  %2419 = vrcp.f32 %v1611_v43  ;;  %v1369_v49 = vadd.f32 %v1368_v11, %v3449_v61  ;;  %v1370_v44 = vpop.f32.mrb[73].mxu0 }
 0x49a   :  { %v2404_v40 = vpop.eup %2403  ;;  %v1612_v25 = vadd.f32 1.0, %v2402_v46  ;;  %2421 = vpow2.f32 %v1881_v37  ;;  %v1371_v55 = vadd.f32 %v1370_v44, %v3451_v23 }
 0x49b   :  { %v2406_v50 = vpop.eup %2405  ;;  %v1613_v52 = vadd.f32 1.0, %v2404_v40  ;;  %2423 = vpow2.f32 %v1882_v8  ;;  %v1887_v21 = vmul.f32 -1.442695, %v1369_v49 }
 0x49c   :  { %v2408_v58 = vpop.eup %2407  ;;  %1757 = vst [vmem:[#allocation10 + $0x30] sm:$0xff] %v2406_v50  ;;  %2425 = vrcp.f32 %v1612_v25  ;;  %v1888_v5 = vmul.f32 -1.442695, %v1371_v55  ;;  %v1374_v60 = vpop.f32.mrb[74].mxu0 }
 0x49d   :  { %2427 = vrcp.f32 %v1613_v52  ;;  %v1614_v2 = vadd.f32 1.0, %v2408_v58  ;;  %v1375_v6 = vadd.f32 %v1374_v60, %v3449_v61  ;;  %v1376_v19 = vpop.f32.mrb[75].mxu0 }
 0x49e   :  { %v2410_v45 = vpop.eup %2409  ;;  %2429 = vpow2.f32 %v1883_v48  ;;  %v1377_v4 = vadd.f32 %v1376_v19, %v3451_v23 }
 0x49f   :  { %v2412_v9 = vpop.eup %2411  ;;  %1758 = vst [vmem:[#allocation10 + $0x38] sm:$0xff] %v2410_v45  ;;  %2431 = vrcp.f32 %v1614_v2  ;;  %v1889_v10 = vmul.f32 -1.442695, %v1375_v6 }
 0x4a0   :  { %v2414_v7 = vpop.eup %2413  ;;  %1759 = vst [vmem:[#allocation10 + $0x40] sm:$0xff] %v2412_v9  ;;  %2433 = vpow2.f32 %v1884_v59  ;;  %v1890_v57 = vmul.f32 -1.442695, %v1377_v4  ;;  %v1380_v24 = vpop.f32.mrb[76].mxu0 }
 0x4a1   :  { %v2416_v12 = vpop.eup %2415  ;;  %v1615_v14 = vadd.f32 1.0, %v2414_v7  ;;  %2435 = vpow2.f32 %v1885_v63  ;;  %v1381_v27 = vadd.f32 %v1380_v24, %v3449_v61  ;;  %v1382_v16 = vpop.f32.mrb[77].mxu0 }
 0x4a2   :  { %v2418_v54 = vpop.eup %2417  ;;  %v1616_v56 = vadd.f32 1.0, %v2416_v12  ;;  %2437 = vpow2.f32 %v1886_v42  ;;  %v1383_v31 = vadd.f32 %v1382_v16, %v3451_v23 }
 0x4a3   :  { %v2420_v13 = vpop.eup %2419  ;;  %1760 = vst [vmem:[#allocation10 + $0x48] sm:$0xff] %v2418_v54  ;;  %2439 = vrcp.f32 %v1615_v14  ;;  %v1891_v22 = vmul.f32 -1.442695, %v1381_v27 }
 0x4a4   :  { %v2422_v29 = vpop.eup %2421  ;;  %1761 = vst [vmem:[#allocation10 + $0x50] sm:$0xff] %v2420_v13  ;;  %2441 = vrcp.f32 %v1616_v56  ;;  %v1386_v35 = vpop.f32.mrb[78].mxu0  ;;  %v1892_v43 = vmul.f32 -1.442695, %v1383_v31 }
 0x4a5   :  { %v2424_v15 = vpop.eup %2423  ;;  %v1617_v36 = vadd.f32 1.0, %v2422_v29  ;;  %2443 = vpow2.f32 %v1887_v21  ;;  %v1387_v8 = vadd.f32 %v1386_v35, %v3449_v61  ;;  %v1388_v39 = vpop.f32.mrb[79].mxu0 }
 0x4a6   :  { %v2426_v18 = vpop.eup %2425  ;;  %v1618_v20 = vadd.f32 1.0, %v2424_v15  ;;  %2445 = vpow2.f32 %v1888_v5  ;;  %v1389_v41 = vadd.f32 %v1388_v39, %v3451_v23 }
 0x4a7   :  { %v2428_v38 = vpop.eup %2427  ;;  %1762 = vst [vmem:[#allocation10 + $0x58] sm:$0xff] %v2426_v18  ;;  %2447 = vrcp.f32 %v1617_v36  ;;  %v1893_v47 = vmul.f32 -1.442695, %v1387_v8 }
 0x4a8   :  { %v2430_v26 = vpop.eup %2429  ;;  %1763 = vst [vmem:[#allocation10 + $0x60] sm:$0xff] %v2428_v38  ;;  %2449 = vrcp.f32 %v1618_v20  ;;  %v1392_v25 = vpop.f32.mrb[80].mxu0  ;;  %v1894_v52 = vmul.f32 -1.442695, %v1389_v41 }
 0x4a9   :  { %v2432_v30 = vpop.eup %2431  ;;  %v1619_v51 = vadd.f32 1.0, %v2430_v26  ;;  %2451 = vpow2.f32 %v1889_v10  ;;  %v1393_v0 = vadd.f32 %v1392_v25, %v3449_v61  ;;  %v1394_v58 = vpop.f32.mrb[81].mxu0 }
 0x4aa   :  { %v2434_v32 = vpop.eup %2433  ;;  %1764 = vst [vmem:[#allocation10 + $0x68] sm:$0xff] %v2432_v30  ;;  %2453 = vpow2.f32 %v1890_v57  ;;  %v1395_v53 = vadd.f32 %v1394_v58, %v3451_v23 }
 0x4ab   :  { %v2436_v62 = vpop.eup %2435  ;;  %2455 = vrcp.f32 %v1619_v51  ;;  %v1620_v33 = vadd.f32 1.0, %v2434_v32  ;;  %v1895_v3 = vmul.f32 -1.442695, %v1393_v0 }
 0x4ac   :  { %v2438_v37 = vpop.eup %2437  ;;  %v1621_v28 = vadd.f32 1.0, %v2436_v62  ;;  %2457 = vpow2.f32 %v1891_v22  ;;  %v1398_v63 = vpop.f32.mrb[82].mxu0  ;;  %v1896_v11 = vmul.f32 -1.442695, %v1395_v53 }
 0x4ad   :  { %v2440_v17 = vpop.eup %2439  ;;  %2459 = vrcp.f32 %v1620_v33  ;;  %v1622_v34 = vadd.f32 1.0, %v2438_v37  ;;  %v1399_v7 = vadd.f32 %v1398_v63, %v3449_v61  ;;  %v1400_v49 = vpop.f32.mrb[83].mxu0 }
 0x4ae   :  { %v2442_v46 = vpop.eup %2441  ;;  %1765 = vst [vmem:[#allocation10 + $0x70] sm:$0xff] %v2440_v17  ;;  %2461 = vrcp.f32 %v1621_v28  ;;  %v1401_v14 = vadd.f32 %v1400_v49, %v3451_v23 }
 0x4af   :  { %v2444_v40 = vpop.eup %2443  ;;  %1766 = vst [vmem:[#allocation10 + $0x78] sm:$0xff] %v2442_v46  ;;  %2463 = vrcp.f32 %v1622_v34  ;;  %v1897_v54 = vmul.f32 -1.442695, %v1399_v7 }
 0x4b0   :  { %v2446_v48 = vpop.eup %2445  ;;  %v1623_v50 = vadd.f32 1.0, %v2444_v40  ;;  %2465 = vpow2.f32 %v1892_v43  ;;  %v1898_v13 = vmul.f32 -1.442695, %v1401_v14  ;;  %v1404_v5 = vpop.f32.mrb[84].mxu0 }
 0x4b1   :  { %v2448_v59 = vpop.eup %2447  ;;  %v1624_v1 = vadd.f32 1.0, %v2446_v48  ;;  %2467 = vpow2.f32 %v1893_v47  ;;  %v1405_v29 = vadd.f32 %v1404_v5, %v3449_v61  ;;  %v1406_v6 = vpop.f32.mrb[85].mxu0 }
 0x4b2   :  { %v2450_v2 = vpop.eup %2449  ;;  %1767 = vst [vmem:[#allocation10 + $0x80] sm:$0xff] %v2448_v59  ;;  %2469 = vrcp.f32 %v1623_v50  ;;  %v1407_v15 = vadd.f32 %v1406_v6, %v3451_v23 }
 0x4b3   :  { %v2452_v45 = vpop.eup %2451  ;;  %1768 = vst [vmem:[#allocation10 + $0x88] sm:$0xff] %v2450_v2  ;;  %2471 = vrcp.f32 %v1624_v1  ;;  %v1899_v4 = vmul.f32 -1.442695, %v1405_v29 }
 0x4b4   :  { %v2454_v9 = vpop.eup %2453  ;;  %v1625_v42 = vadd.f32 1.0, %v2452_v45  ;;  %2473 = vpow2.f32 %v1894_v52  ;;  %v1900_v10 = vmul.f32 -1.442695, %v1407_v15  ;;  %v1410_v38 = vpop.f32.mrb[86].mxu0 }
 0x4b5   :  { %v2456_v44 = vpop.eup %2455  ;;  %v1626_v12 = vadd.f32 1.0, %v2454_v9  ;;  %2475 = vpow2.f32 %v1895_v3  ;;  %v1411_v26 = vadd.f32 %v1410_v38, %v3449_v61  ;;  %v1412_v27 = vpop.f32.mrb[87].mxu0 }
 0x4b6   :  { %v2458_v55 = vpop.eup %2457  ;;  %1769 = vst [vmem:[#allocation10 + $0x90] sm:$0xff] %v2456_v44  ;;  %2477 = vrcp.f32 %v1625_v42  ;;  %v1413_v30 = vadd.f32 %v1412_v27, %v3451_v23 }
 0x4b7   :  { %v2460_v56 = vpop.eup %2459  ;;  %2479 = vrcp.f32 %v1626_v12  ;;  %v1627_v21 = vadd.f32 1.0, %v2458_v55  ;;  %v1901_v31 = vmul.f32 -1.442695, %v1411_v26 }
 0x4b8   :  { %v2462_v60 = vpop.eup %2461  ;;  %1770 = vst [vmem:[#allocation10 + $0x98] sm:$0xff] %v2460_v56  ;;  %2481 = vpow2.f32 %v1896_v11  ;;  %v1902_v62 = vmul.f32 -1.442695, %v1413_v30  ;;  %v1416_v33 = vpop.f32.mrb[88].mxu0 }
 0x4b9   :  { %v2464_v19 = vpop.eup %2463  ;;  %1771 = vst [vmem:[#allocation10 + $0xa0] sm:$0xff] %v2462_v60  ;;  %2483 = vrcp.f32 %v1627_v21  ;;  %v1417_v28 = vadd.f32 %v1416_v33, %v3449_v61  ;;  %v1418_v43 = vpop.f32.mrb[89].mxu0 }
 0x4ba   :  { %v2466_v36 = vpop.eup %2465  ;;  %1772 = vst [vmem:[#allocation10 + $0xa8] sm:$0xff] %v2464_v19  ;;  %2485 = vpow2.f32 %v1897_v54  ;;  %v1419_v39 = vadd.f32 %v1418_v43, %v3451_v23 }
 0x4bb   :  { %v2468_v18 = vpop.eup %2467  ;;  %v1628_v20 = vadd.f32 1.0, %v2466_v36  ;;  %2487 = vpow2.f32 %v1898_v13  ;;  %v1903_v34 = vmul.f32 -1.442695, %v1417_v28 }
 0x4bc   :  { %v2470_v57 = vpop.eup %2469  ;;  %v1629_v24 = vadd.f32 1.0, %v2468_v18  ;;  %2489 = vpow2.f32 %v1899_v4  ;;  %v1904_v47 = vmul.f32 -1.442695, %v1419_v39  ;;  %v1422_v40 = vpop.f32.mrb[90].mxu0 }
 0x4bd   :  { %v2472_v16 = vpop.eup %2471  ;;  %1773 = vst [vmem:[#allocation10 + $0xb0] sm:$0xff] %v2470_v57  ;;  %2491 = vrcp.f32 %v1628_v20  ;;  %v1423_v48 = vadd.f32 %v1422_v40, %v3449_v61  ;;  %v1424_v50 = vpop.f32.mrb[91].mxu0 }
 0x4be   :  { %v2474_v51 = vpop.eup %2473  ;;  %1774 = vst [vmem:[#allocation10 + $0xb8] sm:$0xff] %v2472_v16  ;;  %2493 = vrcp.f32 %v1629_v24  ;;  %v1425_v58 = vadd.f32 %v1424_v50, %v3451_v23 }
 0x4bf   :  { %v2476_v32 = vpop.eup %2475  ;;  %v1630_v22 = vadd.f32 1.0, %v2474_v51  ;;  %2495 = vpow2.f32 %v1900_v10  ;;  %v1905_v53 = vmul.f32 -1.442695, %v1423_v48 }
 0x4c0   :  { %v2478_v35 = vpop.eup %2477  ;;  %v1631_v37 = vadd.f32 1.0, %v2476_v32  ;;  %2497 = vpow2.f32 %v1901_v31  ;;  %v1906_v45 = vmul.f32 -1.442695, %v1425_v58  ;;  %v1428_v63 = vpop.f32.mrb[100].mxu1 }
 0x4c1   :  { %v2480_v8 = vpop.eup %2479  ;;  %1775 = vst [vmem:[#allocation10 + $0xc0] sm:$0xff] %v2478_v35  ;;  %2499 = vrcp.f32 %v1630_v22  ;;  %v1429_v42 = vadd.f32 %v1428_v63, %v3449_v61  ;;  %v1430_v11 = vpop.f32.mrb[101].mxu1 }
 0x4c2   :  { %v2482_v17 = vpop.eup %2481  ;;  %1776 = vst [vmem:[#allocation10 + $0xc8] sm:$0xff] %v2480_v8  ;;  %2501 = vrcp.f32 %v1631_v37  ;;  %v1431_v49 = vadd.f32 %v1430_v11, %v3451_v23 }
 0x4c3   :  { %v2484_v41 = vpop.eup %2483  ;;  %v1632_v46 = vadd.f32 1.0, %v2482_v17  ;;  %2503 = vpow2.f32 %v1902_v62  ;;  %v1907_v14 = vmul.f32 -1.442695, %v1429_v42 }
 0x4c4   :  { %v2486_v25 = vpop.eup %2485  ;;  %1777 = vst [vmem:[#allocation10 + $0xd0] sm:$0xff] %v2484_v41  ;;  %2505 = vpow2.f32 %v1903_v34  ;;  %v1908_v56 = vmul.f32 -1.442695, %v1431_v49  ;;  %v1434_v21 = vpop.f32.mrb[102].mxu1 }
 0x4c5   :  { %v2488_v52 = vpop.eup %2487  ;;  %2507 = vrcp.f32 %v1632_v46  ;;  %v1633_v0 = vadd.f32 1.0, %v2486_v25  ;;  %v1435_v5 = vadd.f32 %v1434_v21, %v3449_v61  ;;  %v1436_v60 = vpop.f32.mrb[103].mxu1 }
 0x4c6   :  { %v2490_v59 = vpop.eup %2489  ;;  %v1634_v1 = vadd.f32 1.0, %v2488_v52  ;;  %2509 = vpow2.f32 %v1904_v47  ;;  %v1437_v6 = vadd.f32 %v1436_v60, %v3451_v23 }
 0x4c7   :  { %v2492_v2 = vpop.eup %2491  ;;  %2511 = vrcp.f32 %v1633_v0  ;;  %v1635_v3 = vadd.f32 1.0, %v2490_v59  ;;  %v1909_v36 = vmul.f32 -1.442695, %v1435_v5 }
 0x4c8   :  { %v2494_v9 = vpop.eup %2493  ;;  %1778 = vst [vmem:[#allocation10 + $0xd8] sm:$0xff] %v2492_v2  ;;  %2513 = vrcp.f32 %v1634_v1  ;;  %v1440_v20 = vpop.f32.mrb[104].mxu1  ;;  %v1910_v38 = vmul.f32 -1.442695, %v1437_v6 }
 0x4c9   :  { %v2496_v7 = vpop.eup %2495  ;;  %1779 = vst [vmem:[#allocation10 + $0xe0] sm:$0xff] %v2494_v9  ;;  %2515 = vrcp.f32 %v1635_v3  ;;  %v1441_v57 = vadd.f32 %v1440_v20, %v3449_v61  ;;  %v1442_v24 = vpop.f32.mrb[105].mxu1 }
 0x4ca   :  { %v2498_v44 = vpop.eup %2497  ;;  %v1636_v12 = vadd.f32 1.0, %v2496_v7  ;;  %2517 = vpow2.f32 %v1905_v53  ;;  %v1443_v16 = vadd.f32 %v1442_v24, %v3451_v23 }
 0x4cb   :  { %v2500_v55 = vpop.eup %2499  ;;  %v1637_v54 = vadd.f32 1.0, %v2498_v44  ;;  %2519 = vpow2.f32 %v1906_v45  ;;  %v1911_v51 = vmul.f32 -1.442695, %v1441_v57 }
 0x4cc   :  { %v2502_v13 = vpop.eup %2501  ;;  %1780 = vst [vmem:[#allocation10 + $0xe8] sm:$0xff] %v2500_v55  ;;  %2521 = vrcp.f32 %v1636_v12  ;;  %v1912_v32 = vmul.f32 -1.442695, %v1443_v16  ;;  %v1446_v22 = vpop.f32.mrb[106].mxu1 }
 0x4cd   :  { %v2504_v29 = vpop.eup %2503  ;;  %1781 = vst [vmem:[#allocation10 + $0xf0] sm:$0xff] %v2502_v13  ;;  %2523 = vrcp.f32 %v1637_v54  ;;  %v1447_v33 = vadd.f32 %v1446_v22, %v3449_v61  ;;  %v1448_v35 = vpop.f32.mrb[107].mxu1 }
 0x4ce   :  { %v2506_v19 = vpop.eup %2505  ;;  %v1638_v15 = vadd.f32 1.0, %v2504_v29  ;;  %2525 = vpow2.f32 %v1907_v14  ;;  %v1449_v43 = vadd.f32 %v1448_v35, %v3451_v23 }
 0x4cf   :  { %v2508_v4 = vpop.eup %2507  ;;  %v1639_v18 = vadd.f32 1.0, %v2506_v19  ;;  %2527 = vpow2.f32 %v1908_v56  ;;  %v1913_v17 = vmul.f32 -1.442695, %v1447_v33 }
 0x4d0   :  { %v2510_v10 = vpop.eup %2509  ;;  %1782 = vst [vmem:[#allocation10 + $0xf8] sm:$0xff] %v2508_v4  ;;  %2529 = vrcp.f32 %v1638_v15  ;;  %v1914_v41 = vmul.f32 -1.442695, %v1449_v43 }
 0x4d1   :  { %v2512_v26 = vpop.eup %2511  ;;  %2531 = vrcp.f32 %v1639_v18  ;;  %v1640_v27 = vadd.f32 1.0, %v2510_v10 }
 0x4d2   :  { %v2514_v30 = vpop.eup %2513  ;;  %1783 = vst [vmem:[#allocation10 + $0x100] sm:$0xff] %v2512_v26  ;;  %2533 = vpow2.f32 %v1909_v36 }
 0x4d3   :  { %v2516_v31 = vpop.eup %2515  ;;  %1784 = vst [vmem:[#allocation10 + $0x108] sm:$0xff] %v2514_v30  ;;  %2535 = vrcp.f32 %v1640_v27 }
 0x4d4   :  { %v2518_v62 = vpop.eup %2517  ;;  %1785 = vst [vmem:[#allocation10 + $0x110] sm:$0xff] %v2516_v31  ;;  %2537 = vpow2.f32 %v1910_v38 }
 0x4d5   :  { %v2520_v37 = vpop.eup %2519  ;;  %v1641_v28 = vadd.f32 1.0, %v2518_v62  ;;  %2539 = vpow2.f32 %v1911_v51 }
 0x4d6   :  { %v2522_v8 = vpop.eup %2521  ;;  %v1642_v39 = vadd.f32 1.0, %v2520_v37  ;;  %2541 = vpow2.f32 %v1912_v32 }
 0x4d7   :  { %v2524_v34 = vpop.eup %2523  ;;  %1786 = vst [vmem:[#allocation10 + $0x118] sm:$0xff] %v2522_v8  ;;  %2543 = vrcp.f32 %v1641_v28 }
 0x4d8   :  { %v2526_v46 = vpop.eup %2525  ;;  %1787 = vst [vmem:[#allocation10 + $0x120] sm:$0xff] %v2524_v34  ;;  %2545 = vrcp.f32 %v1642_v39 }
 0x4d9   :  { %v2528_v47 = vpop.eup %2527  ;;  %v1643_v40 = vadd.f32 1.0, %v2526_v46  ;;  %2547 = vpow2.f32 %v1913_v17 }
 0x4da   :  { %v2530_v61 = vpop.eup %2529  ;;  %v1644_v25 = vadd.f32 1.0, %v2528_v47  ;;  %2549 = vpow2.f32 %v1914_v41 }
 0x4db   :  { %v2532_v48 = vpop.eup %2531  ;;  %1788 = vst [vmem:[#allocation10 + $0x128] sm:$0xff] %v2530_v61  ;;  %2551 = vrcp.f32 %v1643_v40 }
 0x4dc   :  { %v2534_v23 = vpop.eup %2533  ;;  %1789 = vst [vmem:[#allocation10 + $0x130] sm:$0xff] %v2532_v48  ;;  %2553 = vrcp.f32 %v1644_v25 }
 0x4dd   :  { %v2536_v50 = vpop.eup %2535  ;;  %v1645_v52 = vadd.f32 1.0, %v2534_v23 }
 0x4de   :  { %v2538_v0 = vpop.eup %2537  ;;  %1790 = vst [vmem:[#allocation10 + $0x138] sm:$0xff] %v2536_v50 }
 0x4df   :  { %v2540_v58 = vpop.eup %2539  ;;  %2555 = vrcp.f32 %v1645_v52  ;;  %v1646_v59 = vadd.f32 1.0, %v2538_v0 }
 0x4e0   :  { %v2542_v1 = vpop.eup %2541  ;;  %v1647_v53 = vadd.f32 1.0, %v2540_v58 }
 0x4e1   :  { %v2544_v2 = vpop.eup %2543  ;;  %2557 = vrcp.f32 %v1646_v59  ;;  %v1648_v3 = vadd.f32 1.0, %v2542_v1 }
 0x4e2   :  { %v2546_v45 = vpop.eup %2545  ;;  %1791 = vst [vmem:[#allocation10 + $0x140] sm:$0xff] %v2544_v2  ;;  %2559 = vrcp.f32 %v1647_v53 }
 0x4e3   :  { %v2548_v63 = vpop.eup %2547  ;;  %1792 = vst [vmem:[#allocation10 + $0x148] sm:$0xff] %v2546_v45  ;;  %2561 = vrcp.f32 %v1648_v3 }
 0x4e4   :  { %v2550_v9 = vpop.eup %2549  ;;  %v1649_v42 = vadd.f32 1.0, %v2548_v63 }
 0x4e5   :  { %v2552_v11 = vpop.eup %2551  ;;  %v1650_v7 = vadd.f32 1.0, %v2550_v9 }
 0x4e6   :  { %v2554_v49 = vpop.eup %2553  ;;  %1793 = vst [vmem:[#allocation10 + $0x150] sm:$0xff] %v2552_v11  ;;  %2563 = vrcp.f32 %v1649_v42 }
 0x4e7   :  { %1794 = vst [vmem:[#allocation10 + $0x158] sm:$0xff] %v2554_v49  ;;  %2565 = vrcp.f32 %v1650_v7 }
 0x4e9   :  { %v2556_v44 = vpop.eup %2555 }
 0x4ea   :  { %1795 = vst [vmem:[#allocation10 + $0x160] sm:$0xff] %v2556_v44 }
 0x4eb   :  { %v2558_v12 = vpop.eup %2557 }
 0x4ec   :  { %v2560_v14 = vpop.eup %2559  ;;  %1796 = vst [vmem:[#allocation10 + $0x168] sm:$0xff] %v2558_v12 }
 0x4ed   :  { %v2562_v55 = vpop.eup %2561  ;;  %1797 = vst [vmem:[#allocation10 + $0x170] sm:$0xff] %v2560_v14 }
 0x4ee   :  { %1798 = vst [vmem:[#allocation10 + $0x178] sm:$0xff] %v2562_v55 }
 0x4f0   :  { %v2564_v54 = vpop.eup %2563 }
 0x4f1   :  { %v2566_v56 = vpop.eup %2565  ;;  %1799 = vst [vmem:[#allocation10 + $0x180] sm:$0xff] %v2564_v54 }
 0x4f2   :  { %1800 = vst [vmem:[#allocation10 + $0x188] sm:$0xff] %v2566_v56 }
 0x4f3   :  { %2688 = shalt.err (!%p2685_p2)
}
 0x4f4   :  { %s2689_s5 = scalar_lea.hbm %s3543_s10, 6400 }
 0x4f5   :  { %p2690_p3 = scmp.ne.s32.totalorder %s3543_s10, %s2689_s5  ;;  %p2693_p4 = scmp.lt.u32.totalorder %s2689_s5, %s3543_s10 }
 0x4f7   :  { %p2695_p5 = pnand %p2693_p4, %p2690_p3 }
 0x4f9   :  { %2698 = shalt.err (!%p2695_p5)
}
 0x4fa   :  { %1812 = dma.vmem_to_hbm [thread:$0]  %s1807_s27, 6400, %s3543_s10, [#allocation4], %s2713_s4, %s2713_s4, %s2714_s18  }
 0x4fb   :  { %2705 = dma.done.wait [#allocation4], 6400  }
 0x4fc   :  { %2706 = vsyncadd [#allocation4], 4294960896 }
 0x4fd   :  { %2707 = dma.done.wait [#allocation12], 3200  }
 0x4fe   :  { %2708 = vsyncadd [#allocation12], 4294964096 }
 0x4ff   :  { %1831 = vsyncpa [#allocation3], 1 }
 0x500   :  { %1832 = vsyncpa [#allocation6], 1 }
 0x501   :  { %1833 = vsyncpa [#allocation9], 1 }
 0x502   :  { %1834 = vsyncpa [#allocation4], 1 }
 0x503   :  { %1835 = vsyncpa [#allocation12], 1 }

</bundles_post_ra>
